<compile_context>
chip_gen: v7x
topology: tpu7x:2x2x1
jax: 0.10.0
libtpu: 0.0.40
codegen_flags: <defaults>
</compile_context>

<pallas_src>
import functools

import jax
import jax.numpy as jnp
from jax.experimental import pallas as pl
from jax.experimental.pallas import tpu as pltpu

EPS = 1e-5
LANE = 128   # channels padded to a multiple of this (lane-dense, unmasked stores)


def _round_up(x, m):
    return (x + m - 1) // m * m


@functools.lru_cache(maxsize=1)
def _device_kind():
    try:
        return jax.devices()[0].device_kind.lower()
    except Exception:
        return ""


def _vmem_limit():
    kind = _device_kind()
    if "v7" in kind:
        return 48 * 1024 * 1024   # 64 MiB/TC physical -> leave headroom
    if "v5" in kind or "v6" in kind:
        return 96 * 1024 * 1024   # 128 MiB physical on v5e/v5p/v6e
    return 32 * 1024 * 1024       # conservative default for unknown chips


def _pick_co_tile(cout_p):
    # v6e/v7x MXUs are 256 wide in N; v5e (and older) prefer 128.
    if cout_p >= 256 and cout_p % 256 == 0:
        kind = _device_kind()
        if not any(t in kind for t in ("v5e", "v5 lite", "v2", "v3", "v4")):
            return 256
    return 128


# ---------------------------------------------------------------------------
# Pass A: conv as k*k shifted matmuls over a flat phase layout (bf16 MXU inputs,
# local f32 accumulation) + partial per-block BatchNorm statistics.
# ---------------------------------------------------------------------------
def _make_conv_stats_kernel(*, ksize, stride, ho, wo, wps):
    taps = [(kh, kw) for kh in range(ksize) for kw in range(ksize)]
    mslab = ho * wps            # fixed slab length shared by all taps

    def kernel(x_ref, w_ref, y_ref, stats_ref):
        acc = None
        for t, (kh, kw) in enumerate(taps):
            phase = (kh % stride) * stride + (kw % stride)     # static int
            off = (kh // stride) * wps + (kw // stride)        # static int
            xs = x_ref[phase, off:off + mslab, :]              # (mslab, Cin_p) bf16
            contrib = jnp.dot(xs, w_ref[t], preferred_element_type=jnp.float32)
            acc = contrib if acc is None else acc + contrib
        # Drop the (wps - wo) junk columns once, on the f32 accumulator.
        if wo == wps:
            val = acc
        else:
            c = acc.shape[-1]
            val = acc.reshape(ho, wps, c)[:, :wo, :].reshape(ho * wo, c)
        y_ref[...] = val.astype(y_ref.dtype)
        # Partial per-(batch, c-tile) statistics; reduced over batch in the wrapper.
        # (row stores, no concat)
        stats_ref[0:1, :] = jnp.sum(val, axis=0, keepdims=True)
        stats_ref[1:2, :] = jnp.sum(val * val, axis=0, keepdims=True)

    return kernel


# ---------------------------------------------------------------------------
# Wrapper-side phase decomposition (space-to-batch), flattened so every conv tap
# becomes a static contiguous row-slice inside the kernel.  bf16, 1x input bytes.
# ---------------------------------------------------------------------------
def _prep_phases(x_nhwc, *, ksize, stride, padding):
    n, h, w, c = x_nhwc.shape
    k, s, p = ksize, stride, padding

    if k == 1 and p == 0:                                   # 1x1 conv: pure subsample
        xb = x_nhwc[:, ::s, ::s, :].astype(jnp.bfloat16)
        ho, wo = xb.shape[1], xb.shape[2]
        xb = xb.reshape(n, 1, ho * wo, c)
        return xb, {"ho": ho, "wo": wo, "wps": wo}

    ho = (h + 2 * p - k) // s + 1
    wo = (w + 2 * p - k) // s + 1
    hp, wp = h + 2 * p, w + 2 * p
    hps, wps = -(-hp // s), -(-wp // s)
    xb = x_nhwc.astype(jnp.bfloat16)
    xb = jnp.pad(xb, ((0, 0), (p, hps * s - hp + p), (p, wps * s - wp + p), (0, 0)))
    xb = xb.reshape(n, hps, s, wps, s, c).transpose(0, 2, 4, 1, 3, 5)
    xb = xb.reshape(n, s * s, hps * wps, c)
    # wps extra zero rows so every tap's fixed-length slab (ho*wps rows) is in bounds.
    xb = jnp.pad(xb, ((0, 0), (0, 0), (0, wps), (0, 0)))
    return xb, {"ho": ho, "wo": wo, "wps": wps}


def conv_stats(xph, w_oihw, *, ksize, stride, geom):
    """Pass A: conv (bf16 MXU, f32 accumulation) -> bf16 output + partial BN stats."""
    n, n_phase, flat, cin_p = xph.shape
    ho, wo, wps = geom["ho"], geom["wo"], geom["wps"]
    cout, cin = w_oihw.shape[0], w_oihw.shape[1]
    cout_p = _round_up(cout, LANE)
    co_tile = _pick_co_tile(cout_p)
    n_co = cout_p // co_tile
    k = ksize
    m_img = ho * wo

    # weights: (Cout, Cin, kh, kw) -> (k*k, Cin_p, Cout_p), bf16
    wt = jnp.transpose(w_oihw, (2, 3, 1, 0)).reshape(k * k, cin, cout)
    wt = jnp.pad(wt, ((0, 0), (0, cin_p - cin), (0, cout_p - cout))).astype(jnp.bfloat16)

    kernel = _make_conv_stats_kernel(ksize=k, stride=stride, ho=ho, wo=wo, wps=wps)

    # Keep the larger operand invariant across the INNER grid axis (no HBM re-reads).
    x_bytes = n_phase * flat * cin_p * 2
    w_bytes = k * k * cin_p * co_tile * 2
    if x_bytes >= w_bytes:
        grid = (n, n_co)                        # activation block resident across c
        x_map = lambda b, c: (b, 0, 0, 0)
        w_map = lambda b, c: (0, 0, c)
        o_map = lambda b, c: (b, 0, c)
    else:
        grid = (n_co, n)                        # weight tile resident across b
        x_map = lambda c, b: (b, 0, 0, 0)
        w_map = lambda c, b: (0, 0, c)
        o_map = lambda c, b: (b, 0, c)

    y, stats = pl.pallas_call(
        kernel,
        out_shape=(jax.ShapeDtypeStruct((n, m_img, cout_p), jnp.bfloat16),
                   jax.ShapeDtypeStruct((n, 2, cout_p), jnp.float32)),
        grid_spec=pltpu.PrefetchScalarGridSpec(
            num_scalar_prefetch=0,
            grid=grid,
            in_specs=[
                pl.BlockSpec((None, n_phase, flat, cin_p), x_map),
                pl.BlockSpec((k * k, cin_p, co_tile), w_map),
            ],
            out_specs=[
                pl.BlockSpec((None, m_img, co_tile), o_map),
                pl.BlockSpec((None, 2, co_tile), o_map),
            ],
        ),
        compiler_params=pltpu.CompilerParams(
            dimension_semantics=("parallel", "parallel"),
            vmem_limit_bytes=_vmem_limit(),
        ),
    )(xph, wt)
    # TODO(synk): add a halo'd spatial-M grid axis for ImageNet-scale feature maps;
    # per-image pass-A blocks are sized for CIFAR-scale (<= 32x32) activations.
    return y, stats, cout_p


# ---------------------------------------------------------------------------
# Fold training-mode BatchNorm (batch stats, biased variance) into scale/shift.
# ---------------------------------------------------------------------------
def _fold_bn(stats, gamma, beta, count, cout_p):
    cout = gamma.shape[0]
    s = jnp.sum(stats, axis=0)                       # reduce partial stats over batch
    mean = s[0] / count
    var = jnp.maximum(s[1] / count - mean * mean, 0.0)   # f32 sum/sumsq; fine at
    g = jnp.pad(gamma.astype(jnp.float32), (0, cout_p - cout))   # activation scale
    b = jnp.pad(beta.astype(jnp.float32), (0, cout_p - cout))
    scale = g * jax.lax.rsqrt(var + EPS)
    shift = b - mean * scale
    return scale.reshape(1, cout_p), shift.reshape(1, cout_p)


# ---------------------------------------------------------------------------
# Pass B (single elementwise pass for the whole block):
#   out = relu(y*scale + shift + r*rscale + rshift)
# ---------------------------------------------------------------------------
def _bn_add_relu_kernel(y_ref, s_ref, b_ref, r_ref, rs_ref, rb_ref, o_ref):
    y = y_ref[...].astype(jnp.float32) * s_ref[...] + b_ref[...]
    r = r_ref[...].astype(jnp.float32) * rs_ref[...] + rb_ref[...]
    o_ref[...] = jnp.maximum(y + r, 0.0).astype(o_ref.dtype)


def bn_add_relu(y2d, scale, shift, r2d, rscale, rshift, out_dtype=jnp.float32):
    m, cout_p = y2d.shape
    cn = cout_p if cout_p <= 512 else 512            # full cout_p on lanes when small
    if cout_p % cn:
        cn = LANE
    tm = m if m <= 2048 else 1024                    # wide, lane-dense blocks
    grid = (pl.cdiv(m, tm), cout_p // cn)
    row = lambda i, c: (i, c)
    vec = lambda i, c: (0, c)
    return pl.pallas_call(
        _bn_add_relu_kernel,
        out_shape=jax.ShapeDtypeStruct((m, cout_p), out_dtype),
        grid_spec=pltpu.PrefetchScalarGridSpec(
            num_scalar_prefetch=0,
            grid=grid,
            in_specs=[pl.BlockSpec((tm, cn), row),
                      pl.BlockSpec((1, cn), vec),
                      pl.BlockSpec((1, cn), vec),
                      pl.BlockSpec((tm, cn), row),
                      pl.BlockSpec((1, cn), vec),
                      pl.BlockSpec((1, cn), vec)],
            out_specs=pl.BlockSpec((tm, cn), row),
        ),
        compiler_params=pltpu.CompilerParams(
            dimension_semantics=("parallel", "parallel"),
            vmem_limit_bytes=_vmem_limit(),
        ),
    )(y2d, scale, shift, r2d, rscale, rshift)


# ---------------------------------------------------------------------------
# ResidualBlock forward (training-mode BN semantics, matches the PyTorch module).
# ---------------------------------------------------------------------------
def residual_block(x_nchw, params, *, inchannel, outchannel, stride):
    n, cin, h, w = x_nchw.shape
    cin_p = _round_up(cin, LANE)
    cout = outchannel
    cout_p = _round_up(cout, LANE)

    # NCHW <-> NHWC only at the module boundary; channels lane-padded inside.
    x = jnp.transpose(x_nchw, (0, 2, 3, 1))
    x = jnp.pad(x, ((0, 0), (0, 0), (0, 0), (0, cin_p - cin)))

    # ---- conv1 (3x3, stride) -------------------------------------------------
    xph1, geo1 = _prep_phases(x, ksize=3, stride=stride, padding=1)
    y1, st1, _ = conv_stats(xph1, params["w1"], ksize=3, stride=stride, geom=geo1)
    m1 = geo1["ho"] * geo1["wo"]
    sc1, sh1 = _fold_bn(st1, params["g1"], params["b1"], n * m1, cout_p)
    # BN1 + ReLU folded into conv2's input prep (XLA fuses the elementwise with the
    # pad / space-to-batch below) -> no separate Pallas elementwise pass for h1.
    h1 = jnp.maximum(y1.astype(jnp.float32) * sc1 + sh1, 0.0)
    h1 = h1.reshape(n, geo1["ho"], geo1["wo"], cout_p)

    # ---- shortcut --------------------------------------------------------------
    if stride != 1 or inchannel != outchannel:
        xphs, geos = _prep_phases(x, ksize=1, stride=stride, padding=0)
        assert geos["ho"] * geos["wo"] == m1
        ysc, sts, _ = conv_stats(xphs, params["w_sc"], ksize=1, stride=stride, geom=geos)
        rscale, rshift = _fold_bn(sts, params["g_sc"], params["b_sc"], n * m1, cout_p)
        resid = ysc.reshape(n * m1, cout_p)     # raw conv output; its BN rides in pass B
    else:
        resid = x.reshape(n * h * w, cin_p)     # identity shortcut stays f32
        rscale = jnp.ones((1, cout_p), jnp.float32)
        rshift = jnp.zeros((1, cout_p), jnp.float32)

    # ---- conv2 (3x3, stride 1) + BN2 + residual-BN + add + ReLU -----------------
    xph2, geo2 = _prep_phases(h1, ksize=3, stride=1, padding=1)
    y2, st2, _ = conv_stats(xph2, params["w2"], ksize=3, stride=1, geom=geo2)
    m2 = geo2["ho"] * geo2["wo"]
    sc2, sh2 = _fold_bn(st2, params["g2"], params["b2"], n * m2, cout_p)

    out = bn_add_relu(y2.reshape(n * m2, cout_p), sc2, sh2, resid, rscale, rshift)
    out = out.reshape(n, geo2["ho"], geo2["wo"], cout_p)[..., :cout]
    return jnp.transpose(out, (0, 3, 1, 2))
    # TODO(synk): BatchNorm running_mean/running_var buffer updates (training-time
    # side effect) are not materialized; they do not affect the forward output.


# ---------------------------------------------------------------------------
# Pure-JAX reference for verification.
# ---------------------------------------------------------------------------
def _ref_conv(x_nhwc, w_oihw, stride, padding):
    w_hwio = jnp.transpose(w_oihw, (2, 3, 1, 0))
    return jax.lax.conv_general_dilated(
        x_nhwc, w_hwio, (stride, stride), [(padding, padding)] * 2,
        dimension_numbers=("NHWC", "HWIO", "NHWC"),
        precision=jax.lax.Precision.HIGHEST)


def _ref_bn(y, g, b):
    mean = y.mean(axis=(0, 1, 2), keepdims=True)
    var = jnp.square(y - mean).mean(axis=(0, 1, 2), keepdims=True)
    return (y - mean) * jax.lax.rsqrt(var + EPS) * g.reshape(1, 1, 1, -1) + b.reshape(1, 1, 1, -1)


def residual_block_ref(x_nchw, params, *, inchannel, outchannel, stride):
    x = jnp.transpose(x_nchw, (0, 2, 3, 1))
    if stride != 1 or inchannel != outchannel:
        sc = _ref_bn(_ref_conv(x, params["w_sc"], stride, 0), params["g_sc"], params["b_sc"])
    else:
        sc = x
    h = jax.nn.relu(_ref_bn(_ref_conv(x, params["w1"], stride, 1), params["g1"], params["b1"]))
    out = _ref_bn(_ref_conv(h, params["w2"], 1, 1), params["g2"], params["b2"]) + sc
    out = jax.nn.relu(out)
    return jnp.transpose(out, (0, 3, 1, 2))


# ---------------------------------------------------------------------------
if __name__ == "__main__":
    key = jax.random.PRNGKey(0)
    ks = jax.random.split(key, 16)

    # Config 1: downsampling block (stride=2, channel expansion) -> conv shortcut.
    N, Cin, Cout, H, W, stride = 2, 4, 8, 16, 16, 2
    params = {
        "w1":   0.1 * jax.random.normal(ks[0], (Cout, Cin, 3, 3), jnp.float32),
        "g1":   1.0 + 0.1 * jax.random.normal(ks[1], (Cout,), jnp.float32),
        "b1":   0.1 * jax.random.normal(ks[2], (Cout,), jnp.float32),
        "w2":   0.1 * jax.random.normal(ks[3], (Cout, Cout, 3, 3), jnp.float32),
        "g2":   1.0 + 0.1 * jax.random.normal(ks[4], (Cout,), jnp.float32),
        "b2":   0.1 * jax.random.normal(ks[5], (Cout,), jnp.float32),
        "w_sc": 0.1 * jax.random.normal(ks[6], (Cout, Cin, 1, 1), jnp.float32),
        "g_sc": 1.0 + 0.1 * jax.random.normal(ks[7], (Cout,), jnp.float32),
        "b_sc": 0.1 * jax.random.normal(ks[8], (Cout,), jnp.float32),
    }
    x = jax.random.normal(ks[9], (N, Cin, H, W), jnp.float32)

    fwd = jax.jit(functools.partial(residual_block,
                                    inchannel=Cin, outchannel=Cout, stride=stride))
    out = jax.block_until_ready(fwd(x, params))
    ref = residual_block_ref(x, params, inchannel=Cin, outchannel=Cout, stride=stride)
    assert out.shape == (N, Cout, H // stride, W // stride), out.shape
    err1 = float(jnp.max(jnp.abs(out - ref)))
    assert jnp.allclose(out, ref, atol=3e-2, rtol=3e-2), err1

    # Config 2: identity shortcut (stride=1, same channels).
    C2, H2, W2 = 8, 8, 8
    params2 = {
        "w1": 0.1 * jax.random.normal(ks[10], (C2, C2, 3, 3), jnp.float32),
        "g1": 1.0 + 0.1 * jax.random.normal(ks[11], (C2,), jnp.float32),
        "b1": 0.1 * jax.random.normal(ks[12], (C2,), jnp.float32),
        "w2": 0.1 * jax.random.normal(ks[13], (C2, C2, 3, 3), jnp.float32),
        "g2": 1.0 + 0.1 * jax.random.normal(ks[14], (C2,), jnp.float32),
        "b2": 0.1 * jax.random.normal(ks[15], (C2,), jnp.float32),
    }
    x2 = jax.random.normal(jax.random.fold_in(key, 1), (N, C2, H2, W2), jnp.float32)
    fwd2 = jax.jit(functools.partial(residual_block,
                                     inchannel=C2, outchannel=C2, stride=1))
    out2 = jax.block_until_ready(fwd2(x2, params2))
    ref2 = residual_block_ref(x2, params2, inchannel=C2, outchannel=C2, stride=1)
    assert out2.shape == (N, C2, H2, W2), out2.shape
    err2 = float(jnp.max(jnp.abs(out2 - ref2)))
    assert jnp.allclose(out2, ref2, atol=3e-2, rtol=3e-2), err2

    print("KERNEL_OK")
</pallas_src>

<mosaic_0001>
module attributes {stable_mosaic.version = 11 : i64} {
  func.func @kernel(%arg0: i32, %arg1: i32, %arg2: memref<1x4x90x128xbf16, #tpu.memory_space<vmem>>, %arg3: memref<9x128x128xbf16, #tpu.memory_space<vmem>>, %arg4: memref<1x64x128xbf16, #tpu.memory_space<vmem>>, %arg5: memref<1x2x128xf32, #tpu.memory_space<vmem>>) attributes {dimension_semantics = [#tpu.dimension_semantics<parallel>, #tpu.dimension_semantics<parallel>], iteration_bounds = array<i64: 1, 2>, scalar_prefetch = 0 : i64, scratch_operands = 0 : i64, tpu.core_type = #tpu.core_type<tc>, window_params = [{transform_indices = @transform_0, window_bounds = array<i64: 1, 4, 90, 128>}, {transform_indices = @transform_1, window_bounds = array<i64: 9, 128, 128>}, {transform_indices = @transform_2, window_bounds = array<i64: 1, 64, 128>}, {transform_indices = @transform_3, window_bounds = array<i64: 1, 2, 128>}]} {
    %c0 = arith.constant 0 : index
    %c0_0 = arith.constant 0 : index
    %c0_1 = arith.constant 0 : index
    %c0_2 = arith.constant 0 : index
    %0 = vector.load %arg2[%c0, %c0_0, %c0_1, %c0_2] : memref<1x4x90x128xbf16, #tpu.memory_space<vmem>>, vector<1x1x72x128xbf16>
    %1 = vector.shape_cast %0 : vector<1x1x72x128xbf16> to vector<72x128xbf16>
    %c0_3 = arith.constant 0 : index
    %c0_4 = arith.constant 0 : index
    %c0_5 = arith.constant 0 : index
    %2 = vector.load %arg3[%c0_3, %c0_4, %c0_5] : memref<9x128x128xbf16, #tpu.memory_space<vmem>>, vector<1x128x128xbf16>
    %3 = vector.shape_cast %2 : vector<1x128x128xbf16> to vector<128x128xbf16>
    %cst = arith.constant dense<0.000000e+00> : vector<72x128xf32>
    %4 = tpu.matmul %1, %3, %cst {dimension_numbers = #tpu.dot_dimension_numbers<[1], [0], [0], [1], [0, 0, 1, 1], [], []>} : vector<72x128xbf16>, vector<128x128xbf16>, vector<72x128xf32> -> vector<72x128xf32>
    %c0_6 = arith.constant 0 : index
    %c1 = arith.constant 1 : index
    %c0_7 = arith.constant 0 : index
    %c0_8 = arith.constant 0 : index
    %5 = vector.load %arg2[%c0_6, %c1, %c0_7, %c0_8] : memref<1x4x90x128xbf16, #tpu.memory_space<vmem>>, vector<1x1x72x128xbf16>
    %6 = vector.shape_cast %5 : vector<1x1x72x128xbf16> to vector<72x128xbf16>
    %c1_9 = arith.constant 1 : index
    %c0_10 = arith.constant 0 : index
    %c0_11 = arith.constant 0 : index
    %7 = vector.load %arg3[%c1_9, %c0_10, %c0_11] : memref<9x128x128xbf16, #tpu.memory_space<vmem>>, vector<1x128x128xbf16>
    %8 = vector.shape_cast %7 : vector<1x128x128xbf16> to vector<128x128xbf16>
    %cst_12 = arith.constant dense<0.000000e+00> : vector<72x128xf32>
    %9 = tpu.matmul %6, %8, %cst_12 {dimension_numbers = #tpu.dot_dimension_numbers<[1], [0], [0], [1], [0, 0, 1, 1], [], []>} : vector<72x128xbf16>, vector<128x128xbf16>, vector<72x128xf32> -> vector<72x128xf32>
    %10 = arith.addf %4, %9 : vector<72x128xf32>
    %c0_13 = arith.constant 0 : index
    %c0_14 = arith.constant 0 : index
    %c1_15 = arith.constant 1 : index
    %c0_16 = arith.constant 0 : index
    %11 = vector.load %arg2[%c0_13, %c0_14, %c1_15, %c0_16] : memref<1x4x90x128xbf16, #tpu.memory_space<vmem>>, vector<1x1x72x128xbf16>
    %12 = vector.shape_cast %11 : vector<1x1x72x128xbf16> to vector<72x128xbf16>
    %c2 = arith.constant 2 : index
    %c0_17 = arith.constant 0 : index
    %c0_18 = arith.constant 0 : index
    %13 = vector.load %arg3[%c2, %c0_17, %c0_18] : memref<9x128x128xbf16, #tpu.memory_space<vmem>>, vector<1x128x128xbf16>
    %14 = vector.shape_cast %13 : vector<1x128x128xbf16> to vector<128x128xbf16>
    %cst_19 = arith.constant dense<0.000000e+00> : vector<72x128xf32>
    %15 = tpu.matmul %12, %14, %cst_19 {dimension_numbers = #tpu.dot_dimension_numbers<[1], [0], [0], [1], [0, 0, 1, 1], [], []>} : vector<72x128xbf16>, vector<128x128xbf16>, vector<72x128xf32> -> vector<72x128xf32>
    %16 = arith.addf %10, %15 : vector<72x128xf32>
    %c0_20 = arith.constant 0 : index
    %c2_21 = arith.constant 2 : index
    %c0_22 = arith.constant 0 : index
    %c0_23 = arith.constant 0 : index
    %17 = vector.load %arg2[%c0_20, %c2_21, %c0_22, %c0_23] : memref<1x4x90x128xbf16, #tpu.memory_space<vmem>>, vector<1x1x72x128xbf16>
    %18 = vector.shape_cast %17 : vector<1x1x72x128xbf16> to vector<72x128xbf16>
    %c3 = arith.constant 3 : index
    %c0_24 = arith.constant 0 : index
    %c0_25 = arith.constant 0 : index
    %19 = vector.load %arg3[%c3, %c0_24, %c0_25] : memref<9x128x128xbf16, #tpu.memory_space<vmem>>, vector<1x128x128xbf16>
    %20 = vector.shape_cast %19 : vector<1x128x128xbf16> to vector<128x128xbf16>
    %cst_26 = arith.constant dense<0.000000e+00> : vector<72x128xf32>
    %21 = tpu.matmul %18, %20, %cst_26 {dimension_numbers = #tpu.dot_dimension_numbers<[1], [0], [0], [1], [0, 0, 1, 1], [], []>} : vector<72x128xbf16>, vector<128x128xbf16>, vector<72x128xf32> -> vector<72x128xf32>
    %22 = arith.addf %16, %21 : vector<72x128xf32>
    %c0_27 = arith.constant 0 : index
    %c3_28 = arith.constant 3 : index
    %c0_29 = arith.constant 0 : index
    %c0_30 = arith.constant 0 : index
    %23 = vector.load %arg2[%c0_27, %c3_28, %c0_29, %c0_30] : memref<1x4x90x128xbf16, #tpu.memory_space<vmem>>, vector<1x1x72x128xbf16>
    %24 = vector.shape_cast %23 : vector<1x1x72x128xbf16> to vector<72x128xbf16>
    %c4 = arith.constant 4 : index
    %c0_31 = arith.constant 0 : index
    %c0_32 = arith.constant 0 : index
    %25 = vector.load %arg3[%c4, %c0_31, %c0_32] : memref<9x128x128xbf16, #tpu.memory_space<vmem>>, vector<1x128x128xbf16>
    %26 = vector.shape_cast %25 : vector<1x128x128xbf16> to vector<128x128xbf16>
    %cst_33 = arith.constant dense<0.000000e+00> : vector<72x128xf32>
    %27 = tpu.matmul %24, %26, %cst_33 {dimension_numbers = #tpu.dot_dimension_numbers<[1], [0], [0], [1], [0, 0, 1, 1], [], []>} : vector<72x128xbf16>, vector<128x128xbf16>, vector<72x128xf32> -> vector<72x128xf32>
    %28 = arith.addf %22, %27 : vector<72x128xf32>
    %c0_34 = arith.constant 0 : index
    %c2_35 = arith.constant 2 : index
    %c1_36 = arith.constant 1 : index
    %c0_37 = arith.constant 0 : index
    %29 = vector.load %arg2[%c0_34, %c2_35, %c1_36, %c0_37] : memref<1x4x90x128xbf16, #tpu.memory_space<vmem>>, vector<1x1x72x128xbf16>
    %30 = vector.shape_cast %29 : vector<1x1x72x128xbf16> to vector<72x128xbf16>
    %c5 = arith.constant 5 : index
    %c0_38 = arith.constant 0 : index
    %c0_39 = arith.constant 0 : index
    %31 = vector.load %arg3[%c5, %c0_38, %c0_39] : memref<9x128x128xbf16, #tpu.memory_space<vmem>>, vector<1x128x128xbf16>
    %32 = vector.shape_cast %31 : vector<1x128x128xbf16> to vector<128x128xbf16>
    %cst_40 = arith.constant dense<0.000000e+00> : vector<72x128xf32>
    %33 = tpu.matmul %30, %32, %cst_40 {dimension_numbers = #tpu.dot_dimension_numbers<[1], [0], [0], [1], [0, 0, 1, 1], [], []>} : vector<72x128xbf16>, vector<128x128xbf16>, vector<72x128xf32> -> vector<72x128xf32>
    %34 = arith.addf %28, %33 : vector<72x128xf32>
    %c0_41 = arith.constant 0 : index
    %c0_42 = arith.constant 0 : index
    %c9 = arith.constant 9 : index
    %c0_43 = arith.constant 0 : index
    %35 = vector.load %arg2[%c0_41, %c0_42, %c9, %c0_43] : memref<1x4x90x128xbf16, #tpu.memory_space<vmem>>, vector<1x1x72x128xbf16>
    %36 = vector.shape_cast %35 : vector<1x1x72x128xbf16> to vector<72x128xbf16>
    %c6 = arith.constant 6 : index
    %c0_44 = arith.constant 0 : index
    %c0_45 = arith.constant 0 : index
    %37 = vector.load %arg3[%c6, %c0_44, %c0_45] : memref<9x128x128xbf16, #tpu.memory_space<vmem>>, vector<1x128x128xbf16>
    %38 = vector.shape_cast %37 : vector<1x128x128xbf16> to vector<128x128xbf16>
    %cst_46 = arith.constant dense<0.000000e+00> : vector<72x128xf32>
    %39 = tpu.matmul %36, %38, %cst_46 {dimension_numbers = #tpu.dot_dimension_numbers<[1], [0], [0], [1], [0, 0, 1, 1], [], []>} : vector<72x128xbf16>, vector<128x128xbf16>, vector<72x128xf32> -> vector<72x128xf32>
    %40 = arith.addf %34, %39 : vector<72x128xf32>
    %c0_47 = arith.constant 0 : index
    %c1_48 = arith.constant 1 : index
    %c9_49 = arith.constant 9 : index
    %c0_50 = arith.constant 0 : index
    %41 = vector.load %arg2[%c0_47, %c1_48, %c9_49, %c0_50] : memref<1x4x90x128xbf16, #tpu.memory_space<vmem>>, vector<1x1x72x128xbf16>
    %42 = vector.shape_cast %41 : vector<1x1x72x128xbf16> to vector<72x128xbf16>
    %c7 = arith.constant 7 : index
    %c0_51 = arith.constant 0 : index
    %c0_52 = arith.constant 0 : index
    %43 = vector.load %arg3[%c7, %c0_51, %c0_52] : memref<9x128x128xbf16, #tpu.memory_space<vmem>>, vector<1x128x128xbf16>
    %44 = vector.shape_cast %43 : vector<1x128x128xbf16> to vector<128x128xbf16>
    %cst_53 = arith.constant dense<0.000000e+00> : vector<72x128xf32>
    %45 = tpu.matmul %42, %44, %cst_53 {dimension_numbers = #tpu.dot_dimension_numbers<[1], [0], [0], [1], [0, 0, 1, 1], [], []>} : vector<72x128xbf16>, vector<128x128xbf16>, vector<72x128xf32> -> vector<72x128xf32>
    %46 = arith.addf %40, %45 : vector<72x128xf32>
    %c0_54 = arith.constant 0 : index
    %c0_55 = arith.constant 0 : index
    %c10 = arith.constant 10 : index
    %c0_56 = arith.constant 0 : index
    %47 = vector.load %arg2[%c0_54, %c0_55, %c10, %c0_56] : memref<1x4x90x128xbf16, #tpu.memory_space<vmem>>, vector<1x1x72x128xbf16>
    %48 = vector.shape_cast %47 : vector<1x1x72x128xbf16> to vector<72x128xbf16>
    %c8 = arith.constant 8 : index
    %c0_57 = arith.constant 0 : index
    %c0_58 = arith.constant 0 : index
    %49 = vector.load %arg3[%c8, %c0_57, %c0_58] : memref<9x128x128xbf16, #tpu.memory_space<vmem>>, vector<1x128x128xbf16>
    %50 = vector.shape_cast %49 : vector<1x128x128xbf16> to vector<128x128xbf16>
    %cst_59 = arith.constant dense<0.000000e+00> : vector<72x128xf32>
    %51 = tpu.matmul %48, %50, %cst_59 {dimension_numbers = #tpu.dot_dimension_numbers<[1], [0], [0], [1], [0, 0, 1, 1], [], []>} : vector<72x128xbf16>, vector<128x128xbf16>, vector<72x128xf32> -> vector<72x128xf32>
    %52 = arith.addf %46, %51 : vector<72x128xf32>
    %53 = vector.shape_cast %52 : vector<72x128xf32> to vector<8x9x128xf32>
    %54 = vector.extract_strided_slice %53 {offsets = [0, 0, 0], sizes = [8, 8, 128], strides = [1, 1, 1]} : vector<8x9x128xf32> to vector<8x8x128xf32>
    %55 = vector.shape_cast %54 : vector<8x8x128xf32> to vector<64x128xf32>
    %56 = arith.truncf %55 : vector<64x128xf32> to vector<64x128xbf16>
    %c0_60 = arith.constant 0 : index
    %c0_61 = arith.constant 0 : index
    %c0_62 = arith.constant 0 : index
    %57 = vector.load %arg4[%c0_60, %c0_61, %c0_62] : memref<1x64x128xbf16, #tpu.memory_space<vmem>>, vector<1x64x128xbf16>
    %58 = vector.shape_cast %57 : vector<1x64x128xbf16> to vector<64x128xbf16>
    %59 = vector.shape_cast %56 : vector<64x128xbf16> to vector<1x64x128xbf16>
    tpu.vector_store %arg4[%c0_60, %c0_61, %c0_62], %59 {strides = array<i32>} : memref<1x64x128xbf16, #tpu.memory_space<vmem>>, vector<1x64x128xbf16>,
    %cst_63 = arith.constant dense<0.000000e+00> : vector<128xf32>
    %60 = vector.multi_reduction <add>, %55, %cst_63 [0] : vector<64x128xf32> to vector<128xf32>
    %61 = vector.shape_cast %60 : vector<128xf32> to vector<1x128xf32>
    %c0_64 = arith.constant 0 : index
    %c0_65 = arith.constant 0 : index
    %c0_66 = arith.constant 0 : index
    %62 = vector.load %arg5[%c0_64, %c0_65, %c0_66] : memref<1x2x128xf32, #tpu.memory_space<vmem>>, vector<1x1x128xf32>
    %63 = vector.shape_cast %62 : vector<1x1x128xf32> to vector<1x128xf32>
    %64 = vector.shape_cast %61 : vector<1x128xf32> to vector<1x1x128xf32>
    tpu.vector_store %arg5[%c0_64, %c0_65, %c0_66], %64 {strides = array<i32>} : memref<1x2x128xf32, #tpu.memory_space<vmem>>, vector<1x1x128xf32>,
    %65 = arith.mulf %55, %55 : vector<64x128xf32>
    %cst_67 = arith.constant dense<0.000000e+00> : vector<128xf32>
    %66 = vector.multi_reduction <add>, %65, %cst_67 [0] : vector<64x128xf32> to vector<128xf32>
    %67 = vector.shape_cast %66 : vector<128xf32> to vector<1x128xf32>
    %c0_68 = arith.constant 0 : index
    %c1_69 = arith.constant 1 : index
    %c0_70 = arith.constant 0 : index
    %68 = vector.load %arg5[%c0_68, %c1_69, %c0_70] : memref<1x2x128xf32, #tpu.memory_space<vmem>>, vector<1x1x128xf32>
    %69 = vector.shape_cast %68 : vector<1x1x128xf32> to vector<1x128xf32>
    %70 = vector.shape_cast %67 : vector<1x128xf32> to vector<1x1x128xf32>
    tpu.vector_store %arg5[%c0_68, %c1_69, %c0_70], %70 {strides = array<i32>} : memref<1x2x128xf32, #tpu.memory_space<vmem>>, vector<1x1x128xf32>,
    return
  }
  func.func @transform_0(%arg0: i32, %arg1: i32) -> (i32, i32, i32, i32) {
    %c0_i32 = arith.constant 0 : i32
    %c0_i32_0 = arith.constant 0 : i32
    %c0_i32_1 = arith.constant 0 : i32
    %c0_i32_2 = arith.constant 0 : i32
    return %arg1, %c0_i32, %c0_i32_0, %c0_i32_1 : i32, i32, i32, i32
  }
  func.func @transform_1(%arg0: i32, %arg1: i32) -> (i32, i32, i32) {
    %c0_i32 = arith.constant 0 : i32
    %c0_i32_0 = arith.constant 0 : i32
    %c0_i32_1 = arith.constant 0 : i32
    return %c0_i32, %c0_i32_0, %arg0 : i32, i32, i32
  }
  func.func @transform_2(%arg0: i32, %arg1: i32) -> (i32, i32, i32) {
    %c0_i32 = arith.constant 0 : i32
    %c0_i32_0 = arith.constant 0 : i32
    return %arg1, %c0_i32, %arg0 : i32, i32, i32
  }
  func.func @transform_3(%arg0: i32, %arg1: i32) -> (i32, i32, i32) {
    %c0_i32 = arith.constant 0 : i32
    %c0_i32_0 = arith.constant 0 : i32
    return %arg1, %c0_i32, %arg0 : i32, i32, i32
  }
}

module attributes {stable_mosaic.version = 11 : i64} {
  func.func @kernel(%arg0: i32, %arg1: i32, %arg2: memref<1x1x110x128xbf16, #tpu.memory_space<vmem>>, %arg3: memref<9x128x128xbf16, #tpu.memory_space<vmem>>, %arg4: memref<1x64x128xbf16, #tpu.memory_space<vmem>>, %arg5: memref<1x2x128xf32, #tpu.memory_space<vmem>>) attributes {dimension_semantics = [#tpu.dimension_semantics<parallel>, #tpu.dimension_semantics<parallel>], iteration_bounds = array<i64: 1, 2>, scalar_prefetch = 0 : i64, scratch_operands = 0 : i64, tpu.core_type = #tpu.core_type<tc>, window_params = [{transform_indices = @transform_0, window_bounds = array<i64: 1, 1, 110, 128>}, {transform_indices = @transform_1, window_bounds = array<i64: 9, 128, 128>}, {transform_indices = @transform_2, window_bounds = array<i64: 1, 64, 128>}, {transform_indices = @transform_3, window_bounds = array<i64: 1, 2, 128>}]} {
    %c0 = arith.constant 0 : index
    %c0_0 = arith.constant 0 : index
    %c0_1 = arith.constant 0 : index
    %c0_2 = arith.constant 0 : index
    %0 = vector.load %arg2[%c0, %c0_0, %c0_1, %c0_2] : memref<1x1x110x128xbf16, #tpu.memory_space<vmem>>, vector<1x1x80x128xbf16>
    %1 = vector.shape_cast %0 : vector<1x1x80x128xbf16> to vector<80x128xbf16>
    %c0_3 = arith.constant 0 : index
    %c0_4 = arith.constant 0 : index
    %c0_5 = arith.constant 0 : index
    %2 = vector.load %arg3[%c0_3, %c0_4, %c0_5] : memref<9x128x128xbf16, #tpu.memory_space<vmem>>, vector<1x128x128xbf16>
    %3 = vector.shape_cast %2 : vector<1x128x128xbf16> to vector<128x128xbf16>
    %cst = arith.constant dense<0.000000e+00> : vector<80x128xf32>
    %4 = tpu.matmul %1, %3, %cst {dimension_numbers = #tpu.dot_dimension_numbers<[1], [0], [0], [1], [0, 0, 1, 1], [], []>} : vector<80x128xbf16>, vector<128x128xbf16>, vector<80x128xf32> -> vector<80x128xf32>
    %c0_6 = arith.constant 0 : index
    %c0_7 = arith.constant 0 : index
    %c1 = arith.constant 1 : index
    %c0_8 = arith.constant 0 : index
    %5 = vector.load %arg2[%c0_6, %c0_7, %c1, %c0_8] : memref<1x1x110x128xbf16, #tpu.memory_space<vmem>>, vector<1x1x80x128xbf16>
    %6 = vector.shape_cast %5 : vector<1x1x80x128xbf16> to vector<80x128xbf16>
    %c1_9 = arith.constant 1 : index
    %c0_10 = arith.constant 0 : index
    %c0_11 = arith.constant 0 : index
    %7 = vector.load %arg3[%c1_9, %c0_10, %c0_11] : memref<9x128x128xbf16, #tpu.memory_space<vmem>>, vector<1x128x128xbf16>
    %8 = vector.shape_cast %7 : vector<1x128x128xbf16> to vector<128x128xbf16>
    %cst_12 = arith.constant dense<0.000000e+00> : vector<80x128xf32>
    %9 = tpu.matmul %6, %8, %cst_12 {dimension_numbers = #tpu.dot_dimension_numbers<[1], [0], [0], [1], [0, 0, 1, 1], [], []>} : vector<80x128xbf16>, vector<128x128xbf16>, vector<80x128xf32> -> vector<80x128xf32>
    %10 = arith.addf %4, %9 : vector<80x128xf32>
    %c0_13 = arith.constant 0 : index
    %c0_14 = arith.constant 0 : index
    %c2 = arith.constant 2 : index
    %c0_15 = arith.constant 0 : index
    %11 = vector.load %arg2[%c0_13, %c0_14, %c2, %c0_15] : memref<1x1x110x128xbf16, #tpu.memory_space<vmem>>, vector<1x1x80x128xbf16>
    %12 = vector.shape_cast %11 : vector<1x1x80x128xbf16> to vector<80x128xbf16>
    %c2_16 = arith.constant 2 : index
    %c0_17 = arith.constant 0 : index
    %c0_18 = arith.constant 0 : index
    %13 = vector.load %arg3[%c2_16, %c0_17, %c0_18] : memref<9x128x128xbf16, #tpu.memory_space<vmem>>, vector<1x128x128xbf16>
    %14 = vector.shape_cast %13 : vector<1x128x128xbf16> to vector<128x128xbf16>
    %cst_19 = arith.constant dense<0.000000e+00> : vector<80x128xf32>
    %15 = tpu.matmul %12, %14, %cst_19 {dimension_numbers = #tpu.dot_dimension_numbers<[1], [0], [0], [1], [0, 0, 1, 1], [], []>} : vector<80x128xbf16>, vector<128x128xbf16>, vector<80x128xf32> -> vector<80x128xf32>
    %16 = arith.addf %10, %15 : vector<80x128xf32>
    %c0_20 = arith.constant 0 : index
    %c0_21 = arith.constant 0 : index
    %c10 = arith.constant 10 : index
    %c0_22 = arith.constant 0 : index
    %17 = vector.load %arg2[%c0_20, %c0_21, %c10, %c0_22] : memref<1x1x110x128xbf16, #tpu.memory_space<vmem>>, vector<1x1x80x128xbf16>
    %18 = vector.shape_cast %17 : vector<1x1x80x128xbf16> to vector<80x128xbf16>
    %c3 = arith.constant 3 : index
    %c0_23 = arith.constant 0 : index
    %c0_24 = arith.constant 0 : index
    %19 = vector.load %arg3[%c3, %c0_23, %c0_24] : memref<9x128x128xbf16, #tpu.memory_space<vmem>>, vector<1x128x128xbf16>
    %20 = vector.shape_cast %19 : vector<1x128x128xbf16> to vector<128x128xbf16>
    %cst_25 = arith.constant dense<0.000000e+00> : vector<80x128xf32>
    %21 = tpu.matmul %18, %20, %cst_25 {dimension_numbers = #tpu.dot_dimension_numbers<[1], [0], [0], [1], [0, 0, 1, 1], [], []>} : vector<80x128xbf16>, vector<128x128xbf16>, vector<80x128xf32> -> vector<80x128xf32>
    %22 = arith.addf %16, %21 : vector<80x128xf32>
    %c0_26 = arith.constant 0 : index
    %c0_27 = arith.constant 0 : index
    %c11 = arith.constant 11 : index
    %c0_28 = arith.constant 0 : index
    %23 = vector.load %arg2[%c0_26, %c0_27, %c11, %c0_28] : memref<1x1x110x128xbf16, #tpu.memory_space<vmem>>, vector<1x1x80x128xbf16>
    %24 = vector.shape_cast %23 : vector<1x1x80x128xbf16> to vector<80x128xbf16>
    %c4 = arith.constant 4 : index
    %c0_29 = arith.constant 0 : index
    %c0_30 = arith.constant 0 : index
    %25 = vector.load %arg3[%c4, %c0_29, %c0_30] : memref<9x128x128xbf16, #tpu.memory_space<vmem>>, vector<1x128x128xbf16>
    %26 = vector.shape_cast %25 : vector<1x128x128xbf16> to vector<128x128xbf16>
    %cst_31 = arith.constant dense<0.000000e+00> : vector<80x128xf32>
    %27 = tpu.matmul %24, %26, %cst_31 {dimension_numbers = #tpu.dot_dimension_numbers<[1], [0], [0], [1], [0, 0, 1, 1], [], []>} : vector<80x128xbf16>, vector<128x128xbf16>, vector<80x128xf32> -> vector<80x128xf32>
    %28 = arith.addf %22, %27 : vector<80x128xf32>
    %c0_32 = arith.constant 0 : index
    %c0_33 = arith.constant 0 : index
    %c12 = arith.constant 12 : index
    %c0_34 = arith.constant 0 : index
    %29 = vector.load %arg2[%c0_32, %c0_33, %c12, %c0_34] : memref<1x1x110x128xbf16, #tpu.memory_space<vmem>>, vector<1x1x80x128xbf16>
    %30 = vector.shape_cast %29 : vector<1x1x80x128xbf16> to vector<80x128xbf16>
    %c5 = arith.constant 5 : index
    %c0_35 = arith.constant 0 : index
    %c0_36 = arith.constant 0 : index
    %31 = vector.load %arg3[%c5, %c0_35, %c0_36] : memref<9x128x128xbf16, #tpu.memory_space<vmem>>, vector<1x128x128xbf16>
    %32 = vector.shape_cast %31 : vector<1x128x128xbf16> to vector<128x128xbf16>
    %cst_37 = arith.constant dense<0.000000e+00> : vector<80x128xf32>
    %33 = tpu.matmul %30, %32, %cst_37 {dimension_numbers = #tpu.dot_dimension_numbers<[1], [0], [0], [1], [0, 0, 1, 1], [], []>} : vector<80x128xbf16>, vector<128x128xbf16>, vector<80x128xf32> -> vector<80x128xf32>
    %34 = arith.addf %28, %33 : vector<80x128xf32>
    %c0_38 = arith.constant 0 : index
    %c0_39 = arith.constant 0 : index
    %c20 = arith.constant 20 : index
    %c0_40 = arith.constant 0 : index
    %35 = vector.load %arg2[%c0_38, %c0_39, %c20, %c0_40] : memref<1x1x110x128xbf16, #tpu.memory_space<vmem>>, vector<1x1x80x128xbf16>
    %36 = vector.shape_cast %35 : vector<1x1x80x128xbf16> to vector<80x128xbf16>
    %c6 = arith.constant 6 : index
    %c0_41 = arith.constant 0 : index
    %c0_42 = arith.constant 0 : index
    %37 = vector.load %arg3[%c6, %c0_41, %c0_42] : memref<9x128x128xbf16, #tpu.memory_space<vmem>>, vector<1x128x128xbf16>
    %38 = vector.shape_cast %37 : vector<1x128x128xbf16> to vector<128x128xbf16>
    %cst_43 = arith.constant dense<0.000000e+00> : vector<80x128xf32>
    %39 = tpu.matmul %36, %38, %cst_43 {dimension_numbers = #tpu.dot_dimension_numbers<[1], [0], [0], [1], [0, 0, 1, 1], [], []>} : vector<80x128xbf16>, vector<128x128xbf16>, vector<80x128xf32> -> vector<80x128xf32>
    %40 = arith.addf %34, %39 : vector<80x128xf32>
    %c0_44 = arith.constant 0 : index
    %c0_45 = arith.constant 0 : index
    %c21 = arith.constant 21 : index
    %c0_46 = arith.constant 0 : index
    %41 = vector.load %arg2[%c0_44, %c0_45, %c21, %c0_46] : memref<1x1x110x128xbf16, #tpu.memory_space<vmem>>, vector<1x1x80x128xbf16>
    %42 = vector.shape_cast %41 : vector<1x1x80x128xbf16> to vector<80x128xbf16>
    %c7 = arith.constant 7 : index
    %c0_47 = arith.constant 0 : index
    %c0_48 = arith.constant 0 : index
    %43 = vector.load %arg3[%c7, %c0_47, %c0_48] : memref<9x128x128xbf16, #tpu.memory_space<vmem>>, vector<1x128x128xbf16>
    %44 = vector.shape_cast %43 : vector<1x128x128xbf16> to vector<128x128xbf16>
    %cst_49 = arith.constant dense<0.000000e+00> : vector<80x128xf32>
    %45 = tpu.matmul %42, %44, %cst_49 {dimension_numbers = #tpu.dot_dimension_numbers<[1], [0], [0], [1], [0, 0, 1, 1], [], []>} : vector<80x128xbf16>, vector<128x128xbf16>, vector<80x128xf32> -> vector<80x128xf32>
    %46 = arith.addf %40, %45 : vector<80x128xf32>
    %c0_50 = arith.constant 0 : index
    %c0_51 = arith.constant 0 : index
    %c22 = arith.constant 22 : index
    %c0_52 = arith.constant 0 : index
    %47 = vector.load %arg2[%c0_50, %c0_51, %c22, %c0_52] : memref<1x1x110x128xbf16, #tpu.memory_space<vmem>>, vector<1x1x80x128xbf16>
    %48 = vector.shape_cast %47 : vector<1x1x80x128xbf16> to vector<80x128xbf16>
    %c8 = arith.constant 8 : index
    %c0_53 = arith.constant 0 : index
    %c0_54 = arith.constant 0 : index
    %49 = vector.load %arg3[%c8, %c0_53, %c0_54] : memref<9x128x128xbf16, #tpu.memory_space<vmem>>, vector<1x128x128xbf16>
    %50 = vector.shape_cast %49 : vector<1x128x128xbf16> to vector<128x128xbf16>
    %cst_55 = arith.constant dense<0.000000e+00> : vector<80x128xf32>
    %51 = tpu.matmul %48, %50, %cst_55 {dimension_numbers = #tpu.dot_dimension_numbers<[1], [0], [0], [1], [0, 0, 1, 1], [], []>} : vector<80x128xbf16>, vector<128x128xbf16>, vector<80x128xf32> -> vector<80x128xf32>
    %52 = arith.addf %46, %51 : vector<80x128xf32>
    %53 = vector.shape_cast %52 : vector<80x128xf32> to vector<8x10x128xf32>
    %54 = vector.extract_strided_slice %53 {offsets = [0, 0, 0], sizes = [8, 8, 128], strides = [1, 1, 1]} : vector<8x10x128xf32> to vector<8x8x128xf32>
    %55 = vector.shape_cast %54 : vector<8x8x128xf32> to vector<64x128xf32>
    %56 = arith.truncf %55 : vector<64x128xf32> to vector<64x128xbf16>
    %c0_56 = arith.constant 0 : index
    %c0_57 = arith.constant 0 : index
    %c0_58 = arith.constant 0 : index
    %57 = vector.load %arg4[%c0_56, %c0_57, %c0_58] : memref<1x64x128xbf16, #tpu.memory_space<vmem>>, vector<1x64x128xbf16>
    %58 = vector.shape_cast %57 : vector<1x64x128xbf16> to vector<64x128xbf16>
    %59 = vector.shape_cast %56 : vector<64x128xbf16> to vector<1x64x128xbf16>
    tpu.vector_store %arg4[%c0_56, %c0_57, %c0_58], %59 {strides = array<i32>} : memref<1x64x128xbf16, #tpu.memory_space<vmem>>, vector<1x64x128xbf16>,
    %cst_59 = arith.constant dense<0.000000e+00> : vector<128xf32>
    %60 = vector.multi_reduction <add>, %55, %cst_59 [0] : vector<64x128xf32> to vector<128xf32>
    %61 = vector.shape_cast %60 : vector<128xf32> to vector<1x128xf32>
    %c0_60 = arith.constant 0 : index
    %c0_61 = arith.constant 0 : index
    %c0_62 = arith.constant 0 : index
    %62 = vector.load %arg5[%c0_60, %c0_61, %c0_62] : memref<1x2x128xf32, #tpu.memory_space<vmem>>, vector<1x1x128xf32>
    %63 = vector.shape_cast %62 : vector<1x1x128xf32> to vector<1x128xf32>
    %64 = vector.shape_cast %61 : vector<1x128xf32> to vector<1x1x128xf32>
    tpu.vector_store %arg5[%c0_60, %c0_61, %c0_62], %64 {strides = array<i32>} : memref<1x2x128xf32, #tpu.memory_space<vmem>>, vector<1x1x128xf32>,
    %65 = arith.mulf %55, %55 : vector<64x128xf32>
    %cst_63 = arith.constant dense<0.000000e+00> : vector<128xf32>
    %66 = vector.multi_reduction <add>, %65, %cst_63 [0] : vector<64x128xf32> to vector<128xf32>
    %67 = vector.shape_cast %66 : vector<128xf32> to vector<1x128xf32>
    %c0_64 = arith.constant 0 : index
    %c1_65 = arith.constant 1 : index
    %c0_66 = arith.constant 0 : index
    %68 = vector.load %arg5[%c0_64, %c1_65, %c0_66] : memref<1x2x128xf32, #tpu.memory_space<vmem>>, vector<1x1x128xf32>
    %69 = vector.shape_cast %68 : vector<1x1x128xf32> to vector<1x128xf32>
    %70 = vector.shape_cast %67 : vector<1x128xf32> to vector<1x1x128xf32>
    tpu.vector_store %arg5[%c0_64, %c1_65, %c0_66], %70 {strides = array<i32>} : memref<1x2x128xf32, #tpu.memory_space<vmem>>, vector<1x1x128xf32>,
    return
  }
  func.func @transform_0(%arg0: i32, %arg1: i32) -> (i32, i32, i32, i32) {
    %c0_i32 = arith.constant 0 : i32
    %c0_i32_0 = arith.constant 0 : i32
    %c0_i32_1 = arith.constant 0 : i32
    %c0_i32_2 = arith.constant 0 : i32
    return %arg1, %c0_i32, %c0_i32_0, %c0_i32_1 : i32, i32, i32, i32
  }
  func.func @transform_1(%arg0: i32, %arg1: i32) -> (i32, i32, i32) {
    %c0_i32 = arith.constant 0 : i32
    %c0_i32_0 = arith.constant 0 : i32
    %c0_i32_1 = arith.constant 0 : i32
    return %c0_i32, %c0_i32_0, %arg0 : i32, i32, i32
  }
  func.func @transform_2(%arg0: i32, %arg1: i32) -> (i32, i32, i32) {
    %c0_i32 = arith.constant 0 : i32
    %c0_i32_0 = arith.constant 0 : i32
    return %arg1, %c0_i32, %arg0 : i32, i32, i32
  }
  func.func @transform_3(%arg0: i32, %arg1: i32) -> (i32, i32, i32) {
    %c0_i32 = arith.constant 0 : i32
    %c0_i32_0 = arith.constant 0 : i32
    return %arg1, %c0_i32, %arg0 : i32, i32, i32
  }
}

module attributes {stable_mosaic.version = 11 : i64} {
  func.func @kernel(%arg0: i32, %arg1: i32, %arg2: memref<1x1x64x128xbf16, #tpu.memory_space<vmem>>, %arg3: memref<1x128x128xbf16, #tpu.memory_space<vmem>>, %arg4: memref<1x64x128xbf16, #tpu.memory_space<vmem>>, %arg5: memref<1x2x128xf32, #tpu.memory_space<vmem>>) attributes {dimension_semantics = [#tpu.dimension_semantics<parallel>, #tpu.dimension_semantics<parallel>], iteration_bounds = array<i64: 1, 2>, scalar_prefetch = 0 : i64, scratch_operands = 0 : i64, tpu.core_type = #tpu.core_type<tc>, window_params = [{transform_indices = @transform_0, window_bounds = array<i64: 1, 1, 64, 128>}, {transform_indices = @transform_1, window_bounds = array<i64: 1, 128, 128>}, {transform_indices = @transform_2, window_bounds = array<i64: 1, 64, 128>}, {transform_indices = @transform_3, window_bounds = array<i64: 1, 2, 128>}]} {
    %c0 = arith.constant 0 : index
    %c0_0 = arith.constant 0 : index
    %c0_1 = arith.constant 0 : index
    %c0_2 = arith.constant 0 : index
    %0 = vector.load %arg2[%c0, %c0_0, %c0_1, %c0_2] : memref<1x1x64x128xbf16, #tpu.memory_space<vmem>>, vector<1x1x64x128xbf16>
    %1 = vector.shape_cast %0 : vector<1x1x64x128xbf16> to vector<64x128xbf16>
    %c0_3 = arith.constant 0 : index
    %c0_4 = arith.constant 0 : index
    %c0_5 = arith.constant 0 : index
    %2 = vector.load %arg3[%c0_3, %c0_4, %c0_5] : memref<1x128x128xbf16, #tpu.memory_space<vmem>>, vector<1x128x128xbf16>
    %3 = vector.shape_cast %2 : vector<1x128x128xbf16> to vector<128x128xbf16>
    %cst = arith.constant dense<0.000000e+00> : vector<64x128xf32>
    %4 = tpu.matmul %1, %3, %cst {dimension_numbers = #tpu.dot_dimension_numbers<[1], [0], [0], [1], [0, 0, 1, 1], [], []>} : vector<64x128xbf16>, vector<128x128xbf16>, vector<64x128xf32> -> vector<64x128xf32>
    %5 = arith.truncf %4 : vector<64x128xf32> to vector<64x128xbf16>
    %c0_6 = arith.constant 0 : index
    %c0_7 = arith.constant 0 : index
    %c0_8 = arith.constant 0 : index
    %6 = vector.load %arg4[%c0_6, %c0_7, %c0_8] : memref<1x64x128xbf16, #tpu.memory_space<vmem>>, vector<1x64x128xbf16>
    %7 = vector.shape_cast %6 : vector<1x64x128xbf16> to vector<64x128xbf16>
    %8 = vector.shape_cast %5 : vector<64x128xbf16> to vector<1x64x128xbf16>
    tpu.vector_store %arg4[%c0_6, %c0_7, %c0_8], %8 {strides = array<i32>} : memref<1x64x128xbf16, #tpu.memory_space<vmem>>, vector<1x64x128xbf16>,
    %cst_9 = arith.constant dense<0.000000e+00> : vector<128xf32>
    %9 = vector.multi_reduction <add>, %4, %cst_9 [0] : vector<64x128xf32> to vector<128xf32>
    %10 = vector.shape_cast %9 : vector<128xf32> to vector<1x128xf32>
    %c0_10 = arith.constant 0 : index
    %c0_11 = arith.constant 0 : index
    %c0_12 = arith.constant 0 : index
    %11 = vector.load %arg5[%c0_10, %c0_11, %c0_12] : memref<1x2x128xf32, #tpu.memory_space<vmem>>, vector<1x1x128xf32>
    %12 = vector.shape_cast %11 : vector<1x1x128xf32> to vector<1x128xf32>
    %13 = vector.shape_cast %10 : vector<1x128xf32> to vector<1x1x128xf32>
    tpu.vector_store %arg5[%c0_10, %c0_11, %c0_12], %13 {strides = array<i32>} : memref<1x2x128xf32, #tpu.memory_space<vmem>>, vector<1x1x128xf32>,
    %14 = arith.mulf %4, %4 : vector<64x128xf32>
    %cst_13 = arith.constant dense<0.000000e+00> : vector<128xf32>
    %15 = vector.multi_reduction <add>, %14, %cst_13 [0] : vector<64x128xf32> to vector<128xf32>
    %16 = vector.shape_cast %15 : vector<128xf32> to vector<1x128xf32>
    %c0_14 = arith.constant 0 : index
    %c1 = arith.constant 1 : index
    %c0_15 = arith.constant 0 : index
    %17 = vector.load %arg5[%c0_14, %c1, %c0_15] : memref<1x2x128xf32, #tpu.memory_space<vmem>>, vector<1x1x128xf32>
    %18 = vector.shape_cast %17 : vector<1x1x128xf32> to vector<1x128xf32>
    %19 = vector.shape_cast %16 : vector<1x128xf32> to vector<1x1x128xf32>
    tpu.vector_store %arg5[%c0_14, %c1, %c0_15], %19 {strides = array<i32>} : memref<1x2x128xf32, #tpu.memory_space<vmem>>, vector<1x1x128xf32>,
    return
  }
  func.func @transform_0(%arg0: i32, %arg1: i32) -> (i32, i32, i32, i32) {
    %c0_i32 = arith.constant 0 : i32
    %c0_i32_0 = arith.constant 0 : i32
    %c0_i32_1 = arith.constant 0 : i32
    %c0_i32_2 = arith.constant 0 : i32
    return %arg1, %c0_i32, %c0_i32_0, %c0_i32_1 : i32, i32, i32, i32
  }
  func.func @transform_1(%arg0: i32, %arg1: i32) -> (i32, i32, i32) {
    %c0_i32 = arith.constant 0 : i32
    %c0_i32_0 = arith.constant 0 : i32
    %c0_i32_1 = arith.constant 0 : i32
    return %c0_i32, %c0_i32_0, %arg0 : i32, i32, i32
  }
  func.func @transform_2(%arg0: i32, %arg1: i32) -> (i32, i32, i32) {
    %c0_i32 = arith.constant 0 : i32
    %c0_i32_0 = arith.constant 0 : i32
    return %arg1, %c0_i32, %arg0 : i32, i32, i32
  }
  func.func @transform_3(%arg0: i32, %arg1: i32) -> (i32, i32, i32) {
    %c0_i32 = arith.constant 0 : i32
    %c0_i32_0 = arith.constant 0 : i32
    return %arg1, %c0_i32, %arg0 : i32, i32, i32
  }
}

module attributes {stable_mosaic.version = 11 : i64} {
  func.func @_bn_add_relu_kernel(%arg0: i32, %arg1: i32, %arg2: memref<128x128xbf16, #tpu.memory_space<vmem>>, %arg3: memref<1x128xf32, #tpu.memory_space<vmem>>, %arg4: memref<1x128xf32, #tpu.memory_space<vmem>>, %arg5: memref<128x128xbf16, #tpu.memory_space<vmem>>, %arg6: memref<1x128xf32, #tpu.memory_space<vmem>>, %arg7: memref<1x128xf32, #tpu.memory_space<vmem>>, %arg8: memref<128x128xf32, #tpu.memory_space<vmem>>) attributes {dimension_semantics = [#tpu.dimension_semantics<parallel>, #tpu.dimension_semantics<parallel>], iteration_bounds = array<i64: 1, 1>, scalar_prefetch = 0 : i64, scratch_operands = 0 : i64, tpu.core_type = #tpu.core_type<tc>, window_params = [{transform_indices = @transform_0, window_bounds = array<i64: 128, 128>}, {transform_indices = @transform_1, window_bounds = array<i64: 1, 128>}, {transform_indices = @transform_2, window_bounds = array<i64: 1, 128>}, {transform_indices = @transform_3, window_bounds = array<i64: 128, 128>}, {transform_indices = @transform_4, window_bounds = array<i64: 1, 128>}, {transform_indices = @transform_5, window_bounds = array<i64: 1, 128>}, {transform_indices = @transform_6, window_bounds = array<i64: 128, 128>}]} {
    %c0 = arith.constant 0 : index
    %c0_0 = arith.constant 0 : index
    %0 = vector.load %arg2[%c0, %c0_0] : memref<128x128xbf16, #tpu.memory_space<vmem>>, vector<128x128xbf16>
    %1 = arith.extf %0 : vector<128x128xbf16> to vector<128x128xf32>
    %c0_1 = arith.constant 0 : index
    %c0_2 = arith.constant 0 : index
    %2 = vector.load %arg3[%c0_1, %c0_2] : memref<1x128xf32, #tpu.memory_space<vmem>>, vector<1x128xf32>
    %3 = vector.broadcast %2 : vector<1x128xf32> to vector<128x128xf32>
    %4 = arith.mulf %1, %3 : vector<128x128xf32>
    %c0_3 = arith.constant 0 : index
    %c0_4 = arith.constant 0 : index
    %5 = vector.load %arg4[%c0_3, %c0_4] : memref<1x128xf32, #tpu.memory_space<vmem>>, vector<1x128xf32>
    %6 = vector.broadcast %5 : vector<1x128xf32> to vector<128x128xf32>
    %7 = arith.addf %4, %6 : vector<128x128xf32>
    %c0_5 = arith.constant 0 : index
    %c0_6 = arith.constant 0 : index
    %8 = vector.load %arg5[%c0_5, %c0_6] : memref<128x128xbf16, #tpu.memory_space<vmem>>, vector<128x128xbf16>
    %9 = arith.extf %8 : vector<128x128xbf16> to vector<128x128xf32>
    %c0_7 = arith.constant 0 : index
    %c0_8 = arith.constant 0 : index
    %10 = vector.load %arg6[%c0_7, %c0_8] : memref<1x128xf32, #tpu.memory_space<vmem>>, vector<1x128xf32>
    %11 = vector.broadcast %10 : vector<1x128xf32> to vector<128x128xf32>
    %12 = arith.mulf %9, %11 : vector<128x128xf32>
    %c0_9 = arith.constant 0 : index
    %c0_10 = arith.constant 0 : index
    %13 = vector.load %arg7[%c0_9, %c0_10] : memref<1x128xf32, #tpu.memory_space<vmem>>, vector<1x128xf32>
    %14 = vector.broadcast %13 : vector<1x128xf32> to vector<128x128xf32>
    %15 = arith.addf %12, %14 : vector<128x128xf32>
    %16 = arith.addf %7, %15 : vector<128x128xf32>
    %cst = arith.constant 0.000000e+00 : f32
    %17 = vector.broadcast %cst : f32 to vector<128x128xf32>
    %18 = arith.maximumf %16, %17 : vector<128x128xf32>
    %c0_11 = arith.constant 0 : index
    %c0_12 = arith.constant 0 : index
    %19 = vector.load %arg8[%c0_11, %c0_12] : memref<128x128xf32, #tpu.memory_space<vmem>>, vector<128x128xf32>
    tpu.vector_store %arg8[%c0_11, %c0_12], %18 {strides = array<i32>} : memref<128x128xf32, #tpu.memory_space<vmem>>, vector<128x128xf32>,
    return
  }
  func.func @transform_0(%arg0: i32, %arg1: i32) -> (i32, i32) {
    %c0_i32 = arith.constant 0 : i32
    return %arg0, %arg1 : i32, i32
  }
  func.func @transform_1(%arg0: i32, %arg1: i32) -> (i32, i32) {
    %c0_i32 = arith.constant 0 : i32
    %c0_i32_0 = arith.constant 0 : i32
    return %c0_i32, %arg1 : i32, i32
  }
  func.func @transform_2(%arg0: i32, %arg1: i32) -> (i32, i32) {
    %c0_i32 = arith.constant 0 : i32
    %c0_i32_0 = arith.constant 0 : i32
    return %c0_i32, %arg1 : i32, i32
  }
  func.func @transform_3(%arg0: i32, %arg1: i32) -> (i32, i32) {
    %c0_i32 = arith.constant 0 : i32
    return %arg0, %arg1 : i32, i32
  }
  func.func @transform_4(%arg0: i32, %arg1: i32) -> (i32, i32) {
    %c0_i32 = arith.constant 0 : i32
    %c0_i32_0 = arith.constant 0 : i32
    return %c0_i32, %arg1 : i32, i32
  }
  func.func @transform_5(%arg0: i32, %arg1: i32) -> (i32, i32) {
    %c0_i32 = arith.constant 0 : i32
    %c0_i32_0 = arith.constant 0 : i32
    return %c0_i32, %arg1 : i32, i32
  }
  func.func @transform_6(%arg0: i32, %arg1: i32) -> (i32, i32) {
    %c0_i32 = arith.constant 0 : i32
    return %arg0, %arg1 : i32, i32
  }
}

</mosaic_0001>

<bundles_post_ra>
// kernel: residual_block.4
= control target key start
LH: loop header
LB: loop body
LE: loop exit
PB: predicated region body
PF: predicated region fallthrough
CT: control target
= control target key end

     0   :  { %s4787_s12 = smov 0   ;;  %s4789_s13 = smov 0   ;;  %s5690_s0 = inlined_call_operand.vmem [shape: bf16[2,4,90,128], index: 0, kind: input, shape index: {}]   ;;  %s5691_s1 = inlined_call_operand.vmem [shape: bf16[9,128,128], index: 1, kind: input, shape index: {}]   ;;  %s5692_s2 = inlined_call_operand.vmem [shape: bf16[2,64,128], index: 2, kind: output, shape index: {0}]   ;;  %s5693_s3 = inlined_call_operand.vmem [shape: f32[2,2,128], index: 3, kind: output, shape index: {1}]  }
   0x1   :  { %s4791_s14 = smov 0  }
   0x2 LB: > { %s23_s15 = sadd.s32 1, %s4758_s13  ;;  %p3655_p0 = scmp.ge.s32.totalorder %s4762_s14, 1  ;;  %s4762_s14 = sphi %s4791_s14, %s14_s14   ;;  %s4758_s13 = sphi %s4789_s13, %s5696_s13   ;;  %s4754_s12 = sphi %s4787_s12, %s5695_s12  }
   0x3   : > { %p24_p1 = scmp.ge.s32.totalorder %s23_s15, 2  ;;  %p165_p2 = scmp.lt.s32.totalorder %s4762_s14, 3 }
   0x5   : > { %s5698_s15 = smov (%p24_p1, %s23_s15), 0  ;;  %p166_p3 = pnand %p3655_p0, %p165_p2 }
   0x6   : > { %v4627_v0 = vld [vmem:[%s5691_s1 + $0x40] sm:$0xff] (!%p166_p3)   ;;  %v4764_v1 = vmov (!%p166_p3), 0.0   ;;  %v4629_v3 = vld [vmem:[%s5691_s1 + $0x48] sm:$0xff] (!%p166_p3)   ;;  %vm4765_vm0 = vmmov (!%p166_p3), 0   ;;  %p203_p4 = scmp.lt.s32.totalorder (!%p166_p3), %s4754_s12, 1  ;;  %v4631_v5 = vld [vmem:[%s5691_s1 + $0x50] sm:$0xff] (!%p166_p3)  }
   0x7   : > { %169 = sbr.rel (%p166_p3) target bundleno = 539 (0x21b), region = 28  ;;  %4115 = vmatprep.subr.bf16.mxu1 (!%p166_p3), %v4764_v1  ;;  %4259 = vmatprep.subr.bf16.mxu0 (!%p166_p3), %v4764_v1  ;;  %v4628_v2 = vld [vmem:[%s5691_s1 + $0x100] sm:$0xff] (!%p166_p3)   ;;  %v4630_v4 = vld [vmem:[%s5691_s1 + $0x108] sm:$0xff] (!%p166_p3)   ;;  %v4632_v6 = vld [vmem:[%s5691_s1 + $0x110] sm:$0xff] (!%p166_p3)   ;;  %vm628_vm1 = vsmask.f32 (!%p166_p3), 7424 }
   0x8   : > { %4116 = vmatpush3.bf16.msra.mxu1 (!%p166_p3), %v4627_v0  ;;  %4131 = vmatprep.mubr.msk.bf16.mxu1 (!%p166_p3), %vm4765_vm0, %v4764_v1  ;;  %v4633_v7 = vld [vmem:[%s5691_s1 + $0x58] sm:$0xff] (!%p166_p3)   ;;  %v4635_v9 = vld [vmem:[%s5691_s1 + $0x60] sm:$0xff] (!%p166_p3)   ;;  %v4637_v11 = vld [vmem:[%s5691_s1 + $0x68] sm:$0xff] (!%p166_p3)   ;;  %vm1866_vm2 = vcmask (!%p166_p3), 1046528  }
   0x9   : > { %4260 = vmatpush3.bf16.msra.mxu0 (!%p166_p3), %v4628_v2  ;;  %4117 = vmatprep.subr.bf16.mxu1 (!%p166_p3), %v4764_v1  ;;  %v4634_v8 = vld [vmem:[%s5691_s1 + $0x118] sm:$0xff] (!%p166_p3)   ;;  %v4636_v10 = vld [vmem:[%s5691_s1 + $0x120] sm:$0xff] (!%p166_p3)   ;;  %v4638_v12 = vld [vmem:[%s5691_s1 + $0x128] sm:$0xff] (!%p166_p3)  }
   0xa   : > { %4261 = vmatprep.subr.bf16.mxu0 (!%p166_p3), %v4764_v1  ;;  %4275 = vmatprep.mubr.msk.bf16.mxu0 (!%p166_p3), %vm4765_vm0, %v4764_v1  ;;  %v4639_v13 = vld [vmem:[%s5691_s1 + $0x70] sm:$0xff] (!%p166_p3)   ;;  %v4641_v15 = vld [vmem:[%s5691_s1 + $0x78] sm:$0xff] (!%p166_p3)   ;;  %v4645_v19 = vld [vmem:[%s5691_s1 + $0x140] sm:$0xff] (!%p166_p3)  }
   0xb   : > { %v4640_v14 = vld [vmem:[%s5691_s1 + $0x130] sm:$0xff] (!%p166_p3)   ;;  %v4642_v16 = vld [vmem:[%s5691_s1 + $0x138] sm:$0xff] (!%p166_p3)   ;;  %v4649_v20 = vld [vmem:[%s5691_s1] sm:$0xff] (!%p166_p3)  }
   0xc   : > { %4118 = vmatpush3.bf16.msra.mxu1 (!%p166_p3), %v4629_v3  ;;  %v4646_v21 = vld [vmem:[%s5691_s1 + $0x148] sm:$0xff] (!%p166_p3)   ;;  %v4650_v25 = vld [vmem:[%s5691_s1 + $0x150] sm:$0xff] (!%p166_p3)   ;;  %v4654_v27 = vld [vmem:[%s5691_s1 + $0x158] sm:$0xff] (!%p166_p3)  }
   0xd   : > { %4262 = vmatpush3.bf16.msra.mxu0 (!%p166_p3), %v4630_v4  ;;  %4119 = vmatprep.subr.bf16.mxu1 (!%p166_p3), %v4764_v1  ;;  %v4651_v22 = vld [vmem:[%s5691_s1 + $0x8] sm:$0xff] (!%p166_p3)   ;;  %v4655_v26 = vld [vmem:[%s5691_s1 + $0x10] sm:$0xff] (!%p166_p3)   ;;  %v4656_v29 = vld [vmem:[%s5691_s1 + $0x18] sm:$0xff] (!%p166_p3)  }
   0xe   : > { %s5700_s12 = smov (!%p203_p4, %s4754_s12), 1  ;;  %4263 = vmatprep.subr.bf16.mxu0 %v4764_v1  ;;  %v4657_v31 = vld [vmem:[%s5691_s1 + $0x160] sm:$0xff]   ;;  %v4661_v34 = vld [vmem:[%s5691_s1 + $0x168] sm:$0xff]   ;;  %v4663_v37 = vld [vmem:[%s5691_s1 + $0x170] sm:$0xff]  }
   0xf   : > { %s4599_s5 = smul.u32 192, %s5700_s12  ;;  %v4660_v32 = vld [vmem:[%s5691_s1 + $0x20] sm:$0xff]   ;;  %v4662_v35 = vld [vmem:[%s5691_s1 + $0x28] sm:$0xff]   ;;  %v4666_v39 = vld [vmem:[%s5691_s1 + $0x30] sm:$0xff]   ;;  %s3659_s7 = sshll.u32 %s5700_s12, 1 }
  0x10   : > { %4120 = vmatpush3.bf16.msra.mxu1 %v4631_v5  ;;  %v4667_v42 = vld [vmem:[%s5691_s1 + $0x178] sm:$0xff]   ;;  %v4672_v53 = vld [vmem:[%s5691_s1 + $0x180] sm:$0xff]   ;;  %v4673_v59 = vld [vmem:[%s5691_s1 + $0x188] sm:$0xff]   ;;  %s226_s10 = scalar_lea.vmem %s5693_s3, %s3659_s7 }
  0x11   : > { %4264 = vmatpush3.bf16.msra.mxu0 %v4632_v6  ;;  %4121 = vmatprep.subr.bf16.mxu1 %v4764_v1  ;;  %s4858_s16 = scalar_lea.vmem %s5690_s0, %s4599_s5  ;;  %v4668_v44 = vld [vmem:[%s5691_s1 + $0x38] sm:$0xff]   ;;  %v4676_v57 = vld [vmem:[%s5691_s1 + $0x80] sm:$0xff]   ;;  %v4678_v62 = vld [vmem:[%s5691_s1 + $0x88] sm:$0xff]  }
  0x12   : > { %4265 = vmatprep.subr.bf16.mxu0 %v4764_v1  ;;  %v4643_v17 = vld [vmem:[%s4858_s16 + $0x30] sm:$0xff]   ;;  %v4647_v23 = vld [vmem:[%s4858_s16 + $0x38] sm:$0xff]   ;;  %v4652_v28 = vld [vmem:[%s4858_s16 + $0x40] sm:$0xff]  }
  0x13   : > { %v4644_v18 = vld [vmem:[%s4858_s16 + $0x90] sm:$0xff]   ;;  %v4648_v24 = vld [vmem:[%s4858_s16 + $0x98] sm:$0xff]   ;;  %v4653_v30 = vld [vmem:[%s4858_s16 + $0xa0] sm:$0xff]  }
  0x14   : > { %4122 = vmatpush3.bf16.msra.mxu1 %v4633_v7  ;;  %v4658_v33 = vld [vmem:[%s4858_s16 + $0x48] sm:$0xff]   ;;  %v4670_v38 = vld [vmem:[%s4858_s16 + $0x60] sm:$0xff]   ;;  %v4664_v41 = vld [vmem:[%s4858_s16 + $0x50] ss:$0 sps:$4 sm:$0xff]  }
  0x15   : > { %4266 = vmatpush3.bf16.msra.mxu0 %v4634_v8  ;;  %4123 = vmatprep.subr.bf16.mxu1 %v4764_v1  ;;  %v4659_v36 = vld [vmem:[%s4858_s16 + $0xa8] sm:$0xff]   ;;  %v1225_v43 = vshll.u32 %v4670_v38, 16  ;;  %v4665_v45 = vld [vmem:[%s4858_s16 + $0xb0] ss:$0 sps:$4 sm:$0xff]   ;;  %v1223_v47 = vshrl.u32 %v4670_v38, 16  ;;  %v4669_v52 = vld [vmem:[%s4858_s16] sm:$0xff]  }
  0x16   : > { %4267 = vmatprep.subr.bf16.mxu0 %v4764_v1  ;;  %v4671_v40 = vld [vmem:[%s4858_s16 + $0x68] sm:$0xff]   ;;  %v4675_v50 = vld [vmem:[%s4858_s16 + $0x70] sm:$0xff]   ;;  %v4680_v58 = vld [vmem:[%s4858_s16 + $0x78] sm:$0xff]  }
  0x17   : > { %v1230_v46 = vshll.u32 %v4671_v40, 16  ;;  %v1227_v48 = vrot.slane %v1225_v43, 1  ;;  %v1234_v55 = vshrl.u32 %v4671_v40, 16  ;;  %v1238_v56 = vshll.u32 %v4675_v50, 16  ;;  %v4674_v63 = vld [vmem:[%s4858_s16 + $0x8] sm:$0xff]   ;;  %v4677_v3 = vld [vmem:[%s5691_s1 + $0x190] sm:$0xff]  }
  0x18   : > { %4124 = vmatpush3.bf16.msra.mxu1 %v4635_v9  ;;  %v1246_v0 = vshll.u32 %v4680_v58, 16  ;;  %v1242_v4 = vshrl.u32 %v4675_v50, 16  ;;  %v4682_v5 = vld [vmem:[%s5691_s1 + $0x90] sm:$0xff]   ;;  %v4681_v7 = vld [vmem:[%s5691_s1 + $0x198] sm:$0xff]   ;;  %v5023_v9 = vld [vmem:[%s4858_s16 + $0x80] sm:$0x1f]  }
  0x19   : > { %4268 = vmatpush3.bf16.msra.mxu0 %v4636_v10  ;;  %4125 = vmatprep.subr.bf16.mxu1 %v4764_v1  ;;  %v1232_v49 = vrot.slane %v1230_v46, 1  ;;  %v1228_v51 = vor.u32 %v1227_v48, %v1223_v47  ;;  %v1240_v61 = vrot.slane %v1238_v56, 1  ;;  %v4683_v10 = vld [vmem:[%s5691_s1 + $0x98] sm:$0xff]   ;;  %v1258_v38 = vshrl.u32 %v5023_v9, 16  ;;  %v4691_v40 = vld [vmem:[%s4858_s16 + $0x20] ss:$0 sps:$4 sm:$0xff]  }
  0x1a   : > { %4269 = vmatprep.subr.bf16.mxu0 %v4764_v1  ;;  %v1248_v6 = vrot.slane %v1246_v0, 1  ;;  %v4694_v43 = vld [vmem:[%s5691_s1 + $0xb8] sm:$0xff]   ;;  %v1845_v0 = vld [vmem:[%s4858_s16 + $0x4] sm:$0xe] }
  0x1b   : > { %v1233_v54 = vsel %vm628_vm1, %v1228_v51, %v1232_v49  ;;  %v1236_v60 = vor.u32 %v1234_v55, %v1232_v49  ;;  %v1244_v8 = vor.u32 %v1242_v4, %v1240_v61  ;;  %v4701_v51 = vld [vmem:[%s4858_s16 + $0x10] sm:$0xff]   ;;  %v4706_v4 = vld [vmem:[%s4858_s16 + $0x18] sm:$0xff]  }
  0x1c   : > { %4126 = vmatpush3.bf16.msra.mxu1 %v4637_v11  ;;  %v4679_v11 = vld [vmem:[%s4858_s16 + $0x10] sm:$0xff]  }
  0x1d   : > { %4270 = vmatpush3.bf16.msra.mxu0 %v4638_v12  ;;  %4127 = vmatprep.subr.bf16.mxu1 %v4764_v1  ;;  %v1241_v2 = vsel %vm628_vm1, %v1236_v60, %v1240_v61  ;;  %v1250_v12 = vshrl.u32 %v4680_v58, 16  ;;  %v4699_v60 = vld [vmem:[%s5691_s1 + $0x1c0] sm:$0xff]  }
  0x1e   : > { %4271 = vmatprep.subr.bf16.mxu0 %v4764_v1 }
  0x20   : > { %4128 = vmatpush3.bf16.msra.mxu1 %v4639_v13  ;;  %v1249_v13 = vsel %vm628_vm1, %v1244_v8, %v1248_v6 }
  0x21   : > { %4272 = vmatpush3.bf16.msra.mxu0 %v4640_v14  ;;  %4129 = vmatprep.subr.bf16.mxu1 %v4764_v1  ;;  %v4684_v14 = vld [vmem:[%s5691_s1 + $0x1a0] sm:$0xff]  }
  0x22   : > { %4273 = vmatprep.subr.bf16.mxu0 %v4764_v1 }
  0x24   : > { %4130 = vmatpush3.bf16.msra.mxu1 %v4641_v15  ;;  %v1254_v15 = vshll.u32 %v5023_v9, 16  ;;  %v4705_v9 = vld [vmem:[%s5691_s1 + $0xc8] sm:$0xff]  }
  0x25   : > { %4274 = vmatpush3.bf16.msra.mxu0 %v4642_v16  ;;  %4151 = vmatprep.subr.bf16.mxu1 %v4764_v1  ;;  %v4687_v16 = vld [vmem:[%s5691_s1 + $0xa0] sm:$0xff]  }
  0x26   : > { %4295 = vmatprep.subr.bf16.mxu0 %v4764_v1 }
  0x27   : > { %4132 = vmatmul.mubr.bf16.vlgmr.msra.gmra.mrb[0].mxu1 %v4643_v17  ;;  %v4688_v17 = vld [vmem:[%s5691_s1 + $0x1a8] sm:$0xff]  }
  0x28   : > { %4276 = vmatmul.mubr.bf16.vlgmr.msra.gmra.mrb[0].mxu0 %v4644_v18  ;;  %4135 = vmatprep.mubr.msk.bf16.mxu1 %vm4765_vm0, %v4764_v1  ;;  %v4689_v18 = vld [vmem:[%s5691_s1 + $0xa8] sm:$0xff]  }
  0x29   : > { %4296 = vmatpush3.bf16.msra.mxu0 %v4645_v19  ;;  %4279 = vmatprep.mubr.msk.bf16.mxu0 %vm4765_vm0, %v4764_v1  ;;  %v1395_v19 = vld [vmem:[%s4858_s16 + $0x4] sm:$0xf] }
  0x2a   : > { %4297 = vmatprep.subr.bf16.mxu0 %v4764_v1  ;;  %4152 = vmatpush3.bf16.msra.mxu1 %v4649_v20  ;;  %v4685_v20 = vld [vmem:[%s4858_s16 + $0x18] sm:$0xff]  }
  0x2b   : > { %4153 = vmatprep.subr.bf16.mxu1 %v4764_v1 }
  0x2d   : > { %4298 = vmatpush3.bf16.msra.mxu0 %v4646_v21  ;;  %v1252_v21 = vor.u32 %v1250_v12, %v1248_v6  ;;  %v4700_v6 = vld [vmem:[%s5691_s1 + $0x1c8] sm:$0xff]   ;;  %v649_v12 = vshrl.u32 %v4701_v51, 16 }
  0x2e   : > { %4299 = vmatprep.subr.bf16.mxu0 %v4764_v1  ;;  %4154 = vmatpush3.bf16.msra.mxu1 %v4651_v22  ;;  %v1256_v22 = vrot.slane %v1254_v15, 1 }
  0x2f   : > { %4136 = vmatmul.mubr.bf16.gmra.mrb[4].mxu1 %v4647_v23  ;;  %4155 = vmatprep.subr.bf16.mxu1 %v4764_v1  ;;  %v5054_v23 = vld [vmem:[%s4858_s16 + $0x8] sm:$0xf] }
  0x30   : > { %4280 = vmatmul.mubr.bf16.gmra.mrb[4].mxu0 %v4648_v24  ;;  %4139 = vmatprep.mubr.msk.bf16.mxu1 %vm4765_vm0, %v4764_v1  ;;  %v5057_v24 = vld [vmem:[%s4858_s16 + $0xc] sm:$0xff]   ;;  %v1260_v46 = vor.u32 %v1258_v38, %v1256_v22 }
  0x31   : > { %4300 = vmatpush3.bf16.msra.mxu0 %v4650_v25  ;;  %4283 = vmatprep.mubr.msk.bf16.mxu0 %vm4765_vm0, %v4764_v1  ;;  %v5061_v25 = vld [vmem:[%s4858_s16 + $0x14] sm:$0xff]   ;;  %v1455_v50 = vshll.u32 %v5057_v24, 16  ;;  %v1459_v61 = vshrl.u32 %v5057_v24, 16 }
  0x32   : > { %4301 = vmatprep.subr.bf16.mxu0 %v4764_v1  ;;  %4156 = vmatpush3.bf16.msra.mxu1 %v4655_v26  ;;  %v4690_v26 = vld [vmem:[%s5691_s1 + $0x1b0] sm:$0xff]  }
  0x33   : > { %4157 = vmatprep.subr.bf16.mxu1 %v4764_v1  ;;  %v1457_v55 = vrot.slane %v1455_v50, 1  ;;  %v4718_v50 = vld [vmem:[%s5691_s1 + $0xf0] sm:$0xff]  }
  0x35   : > { %4302 = vmatpush3.bf16.msra.mxu0 %v4654_v27  ;;  %v5068_v27 = vld [vmem:[%s4858_s16 + $0x1c] sm:$0xff]  }
  0x36   : > { %4303 = vmatprep.subr.bf16.mxu0 %v4764_v1  ;;  %4158 = vmatpush3.bf16.msra.mxu1 %v4656_v29  ;;  %v4695_v29 = vld [vmem:[%s4858_s16] sm:$0xff]  }
  0x37   : > { %4140 = vmatmul.mubr.bf16.gmra.mrb[8].mxu1 %v4652_v28  ;;  %4159 = vmatprep.subr.bf16.mxu1 %v4764_v1  ;;  %v4692_v28 = vld [vmem:[%s5691_s1 + $0xb0] sm:$0xff]  }
  0x38   : > { %4284 = vmatmul.mubr.bf16.gmra.mrb[8].mxu0 %v4653_v30  ;;  %4143 = vmatprep.mubr.msk.bf16.mxu1 %vm4765_vm0, %v4764_v1  ;;  %v1868_v30 = vrot.slane %v5057_v24, 1 }
  0x39   : > { %4304 = vmatpush3.bf16.msra.mxu0 %v4657_v31  ;;  %4287 = vmatprep.mubr.msk.bf16.mxu0 %vm4765_vm0, %v4764_v1  ;;  %v1257_v31 = vsel %vm628_vm1, %v1252_v21, %v1256_v22  ;;  %v4712_v22 = vld [vmem:[%s4858_s16 + $0x20] sm:$0x1f]  }
  0x3a   : > { %4160 = vmatpush3.bf16.msra.mxu1 %v4660_v32  ;;  %4305 = vmatprep.subr.bf16.mxu0 %v4764_v1  ;;  %v3871_v32 = vcombine.low %v1395_v19, %v5054_v23  ;;  %v4709_v19 = vld [vmem:[%s5691_s1 + $0xd0] sm:$0xff]  }
  0x3b   : > { %4161 = vmatprep.subr.bf16.mxu1 %v4764_v1 }
  0x3c   : > { %v1448_v48 = vshrl.u32 %v3871_v32, 16 }
  0x3d   : > { %4306 = vmatpush3.bf16.msra.mxu0 %v4661_v34  ;;  %v1870_v34 = vrot.slane %v5061_v25, 1 }
  0x3e   : > { %4162 = vmatpush3.bf16.msra.mxu1 %v4662_v35  ;;  %4307 = vmatprep.subr.bf16.mxu0 %v4764_v1  ;;  %v4696_v35 = vld [vmem:[%s4858_s16 + $0x8] sm:$0xff]  }
  0x3f   : > { %4144 = vmatmul.mubr.bf16.gmra.mrb[12].mxu1 %v4658_v33  ;;  %4163 = vmatprep.subr.bf16.mxu1 %v4764_v1  ;;  %v1872_v33 = vrot.slane %v5068_v27, 1  ;;  %v641_v56 = vshrl.u32 %v4696_v35, 16 }
  0x40   : > { %4288 = vmatmul.mubr.bf16.gmra.mrb[12].mxu0 %v4659_v36  ;;  %4147 = vmatprep.mubr.msk.bf16.mxu1 %vm4765_vm0, %v4764_v1  ;;  %v5085_v36 = vsel %vm1866_vm2, %v1868_v30, %v1870_v34 }
  0x41   : > { %4291 = vmatprep.mubr.msk.bf16.mxu0 %vm4765_vm0, %v4764_v1  ;;  %4308 = vmatpush3.bf16.msra.mxu0 %v4663_v37  ;;  %v5090_v37 = vsel %vm1866_vm2, %v1870_v34, %v1872_v33  ;;  %v4711_v34 = vld [vmem:[%s5691_s1 + $0x1e0] sm:$0xff]  }
  0x42   : > { %4164 = vmatpush3.bf16.msra.mxu1 %v4666_v39  ;;  %4309 = vmatprep.subr.bf16.mxu0 %v4764_v1  ;;  %v632_v39 = vshll.u32 %v4695_v29, 16 }
  0x43   : > { %4165 = vmatprep.subr.bf16.mxu1 %v4764_v1 }
  0x44   : > { %v634_v47 = vrot.slane %v632_v39, 1  ;;  %v4714_v39 = vld [vmem:[%s5691_s1 + $0xe0] sm:$0xff]  }
  0x45   : > { %4310 = vmatpush3.bf16.msra.mxu0 %v4667_v42  ;;  %v1450_v42 = vshll.u32 %v3871_v32, 16 }
  0x46   : > { %4166 = vmatpush3.bf16.msra.mxu1 %v4668_v44  ;;  %4331 = vmatprep.subr.bf16.mxu0 %v4764_v1  ;;  %v630_v44 = vshrl.u32 %v4695_v29, 16 }
  0x47   : > { %4148 = vmatmul.mubr.bf16.gmra.mrb[16].mxu1 %v4664_v41  ;;  %4187 = vmatprep.subr.bf16.mxu1 %v4764_v1  ;;  %v4693_v41 = vld [vmem:[%s5691_s1 + $0x1b8] sm:$0xff]   ;;  %v1452_v49 = vrot.slane %v1450_v42, 1 }
  0x48   : > { %4292 = vmatmul.mubr.bf16.gmra.mrb[16].mxu0 %v4665_v45  ;;  %4167 = vmatprep.mubr.msk.bf16.mxu1 %vm4765_vm0, %v4764_v1  ;;  %v637_v45 = vshll.u32 %v4696_v35, 16  ;;  %v1475_v35 = vshrl.u32 %v5068_v27, 16 }
  0x49   : > { %4311 = vmatprep.mubr.msk.bf16.mxu0 %vm4765_vm0, %v4764_v1 }
  0x4f   : > { %4168 = vmatmul.mubr.bf16.vlgmr.msra.gmra.mrb[0].mxu1 %v4669_v52  ;;  %v635_v52 = vor.u32 %v634_v47, %v630_v44  ;;  %v4715_v44 = vld [vmem:[%s5691_s1 + $0x1e8] sm:$0xff]  }
  0x50   : > { %4312 = vmatmul.mubr.bf16.vlgmr.msra.gmra.mrb[0].mxu0 %v1233_v54  ;;  %4171 = vmatprep.mubr.msk.bf16.mxu1 %vm4765_vm0, %v4764_v1  ;;  %v1453_v54 = vor.u32 %v1452_v49, %v1448_v48  ;;  %v4717_v48 = vld [vmem:[%s5691_s1 + $0x1f0] sm:$0xff]  }
  0x51   : > { %4332 = vmatpush3.bf16.msra.mxu0 %v4672_v53  ;;  %4315 = vmatprep.mubr.msk.bf16.mxu0 %vm4765_vm0, %v4764_v1  ;;  %v639_v53 = vrot.slane %v637_v45, 1  ;;  %v4716_v45 = vld [vmem:[%s5691_s1 + $0xe8] sm:$0xff]   ;;  %v4722_v49 = vld [vmem:[%s4858_s16 + $0x34] sm:$0xff]  }
  0x52   : > { %4333 = vmatprep.subr.bf16.mxu0 %v4764_v1  ;;  %4188 = vmatpush3.bf16.msra.mxu1 %v4676_v57  ;;  %v645_v57 = vshll.u32 %v4701_v51, 16  ;;  %v665_v51 = vshrl.u32 %v4712_v22, 16 }
  0x53   : > { %4189 = vmatprep.subr.bf16.mxu1 %v4764_v1  ;;  %v640_v58 = vsel %vm628_vm1, %v635_v52, %v639_v53 }
  0x55   : > { %4334 = vmatpush3.bf16.msra.mxu0 %v4673_v59  ;;  %v1458_v59 = vsel %vm628_vm1, %v1453_v54, %v1457_v55  ;;  %v4723_v54 = vld [vmem:[%s4858_s16 + $0x3c] sm:$0xff]  }
  0x56   : > { %4335 = vmatprep.subr.bf16.mxu0 %v4764_v1  ;;  %4190 = vmatpush3.bf16.msra.mxu1 %v4678_v62  ;;  %v1463_v62 = vshll.u32 %v5061_v25, 16 }
  0x57   : > { %4172 = vmatmul.mubr.bf16.gmra.mrb[4].mxu1 %v4674_v63  ;;  %4191 = vmatprep.subr.bf16.mxu1 %v4764_v1  ;;  %v4703_v63 = vld [vmem:[%s5691_s1 + $0xc0] sm:$0xff]  }
  0x58   : > { %4316 = vmatmul.mubr.bf16.gmra.mrb[4].mxu0 %v1241_v2  ;;  %4175 = vmatprep.mubr.msk.bf16.mxu1 %vm4765_vm0, %v4764_v1  ;;  %v643_v2 = vor.u32 %v641_v56, %v639_v53  ;;  %v1465_v8 = vrot.slane %v1463_v62, 1  ;;  %v4719_v53 = vld [vmem:[%s5691_s1 + $0x1f8] sm:$0xff]  }
  0x59   : > { %4336 = vmatpush3.bf16.msra.mxu0 %v4677_v3  ;;  %4319 = vmatprep.mubr.msk.bf16.mxu0 %vm4765_vm0, %v4764_v1  ;;  %v647_v3 = vrot.slane %v645_v57, 1  ;;  %v4720_v56 = vld [vmem:[%s5691_s1 + $0xf8] sm:$0xff]  }
  0x5a   : > { %4337 = vmatprep.subr.bf16.mxu0 %v4764_v1  ;;  %4192 = vmatpush3.bf16.msra.mxu1 %v4682_v5  ;;  %v3939_v5 = vcombine.low %v1845_v0, %v5054_v23  ;;  %v4727_v0 = vld [vmem:[%s4858_s16 + $0x44] sm:$0xff]  }
  0x5b   : > { %4193 = vmatprep.subr.bf16.mxu1 %v4764_v1 }
  0x5d   : > { %4338 = vmatpush3.bf16.msra.mxu0 %v4681_v7  ;;  %v1461_v7 = vor.u32 %v1459_v61, %v1457_v55  ;;  %v1675_v55 = vshll.u32 %v4722_v49, 16  ;;  %v1680_v61 = vshll.u32 %v4723_v54, 16 }
  0x5e   : > { %4339 = vmatprep.subr.bf16.mxu0 %v4764_v1  ;;  %4194 = vmatpush3.bf16.msra.mxu1 %v4683_v10  ;;  %v1867_v10 = vrot.slane %v3939_v5, 1  ;;  %v1684_v5 = vshrl.u32 %v4723_v54, 16 }
  0x5f   : > { %4176 = vmatmul.mubr.bf16.gmra.mrb[8].mxu1 %v4679_v11  ;;  %4195 = vmatprep.subr.bf16.mxu1 %v4764_v1  ;;  %v648_v11 = vsel %vm628_vm1, %v643_v2, %v647_v3  ;;  %v1466_v15 = vsel %vm628_vm1, %v1461_v7, %v1465_v8  ;;  %v4721_v2 = vld [vmem:[%s4858_s16 + $0x60] sm:$0xff]   ;;  %v4725_v7 = vld [vmem:[%s5691_s1 + $0x208] sm:$0xff]  }
  0x60   : > { %4320 = vmatmul.mubr.bf16.gmra.mrb[8].mxu0 %v1249_v13  ;;  %4179 = vmatprep.mubr.msk.bf16.mxu1 %vm4765_vm0, %v4764_v1  ;;  %v653_v13 = vshll.u32 %v4706_v4, 16 }
  0x61   : > { %4340 = vmatpush3.bf16.msra.mxu0 %v4684_v14  ;;  %4323 = vmatprep.mubr.msk.bf16.mxu0 %vm4765_vm0, %v4764_v1  ;;  %v5143_v14 = vsel %vm1866_vm2, %v1867_v10, %v1868_v30  ;;  %v657_v30 = vshrl.u32 %v4706_v4, 16  ;;  %v4724_v4 = vld [vmem:[%s5691_s1 + $0x200] sm:$0xff]   ;;  %v4730_v10 = vld [vmem:[%s4858_s16 + $0x4c] sm:$0xff]  }
  0x62   : > { %4196 = vmatpush3.bf16.msra.mxu1 %v4687_v16  ;;  %4341 = vmatprep.subr.bf16.mxu0 %v4764_v1  ;;  %v4704_v16 = vld [vmem:[%s5691_s1 + $0x1d0] sm:$0xff]   ;;  %v655_v21 = vrot.slane %v653_v13, 1 }
  0x63   : > { %4197 = vmatprep.subr.bf16.mxu1 %v4764_v1  ;;  %v4728_v13 = vld [vmem:[%s5691_s1 + $0x210] sm:$0xff]  }
  0x65   : > { %4342 = vmatpush3.bf16.msra.mxu0 %v4688_v17  ;;  %v1467_v17 = vshrl.u32 %v5061_v25, 16  ;;  %v4708_v25 = vld [vmem:[%s5691_s1 + $0x1d8] sm:$0xff]  }
  0x66   : > { %4198 = vmatpush3.bf16.msra.mxu1 %v4689_v18  ;;  %4343 = vmatprep.subr.bf16.mxu0 %v4764_v1  ;;  %v1471_v18 = vshll.u32 %v5068_v27, 16 }
  0x67   : > { %4180 = vmatmul.mubr.bf16.gmra.mrb[12].mxu1 %v4685_v20  ;;  %4199 = vmatprep.subr.bf16.mxu1 %v4764_v1  ;;  %v651_v20 = vor.u32 %v649_v12, %v647_v3  ;;  %v1469_v23 = vor.u32 %v1467_v17, %v1465_v8 }
  0x68   : > { %4324 = vmatmul.mubr.bf16.gmra.mrb[12].mxu0 %v1257_v31  ;;  %4183 = vmatprep.mubr.msk.bf16.mxu1 %vm4765_vm0, %v4764_v1  ;;  %v1473_v24 = vrot.slane %v1471_v18, 1  ;;  %v661_v31 = vshll.u32 %v4712_v22, 16 }
  0x69   : > { %4327 = vmatprep.mubr.msk.bf16.mxu0 %vm4765_vm0, %v4764_v1  ;;  %4344 = vmatpush3.bf16.msra.mxu0 %v4690_v26  ;;  %v5165_v26 = vld [vmem:[%s4858_s16 + $0x24] sm:$0x1f]   ;;  %v656_v29 = vsel %vm628_vm1, %v651_v20, %v655_v21  ;;  %v4734_v20 = vld [vmem:[%s4858_s16 + $0x54] sm:$0x1f]  }
  0x6a   : > { %4200 = vmatpush3.bf16.msra.mxu1 %v4692_v28  ;;  %4345 = vmatprep.subr.bf16.mxu0 %v4764_v1  ;;  %v4710_v28 = vld [vmem:[%s5691_s1 + $0xd8] sm:$0xff]   ;;  %v1474_v32 = vsel %vm628_vm1, %v1469_v23, %v1473_v24  ;;  %v1479_v38 = vshll.u32 %v5165_v26, 16  ;;  %v1477_v42 = vor.u32 %v1475_v35, %v1473_v24  ;;  %v1483_v52 = vshrl.u32 %v5165_v26, 16  ;;  %v4732_v23 = vld [vmem:[%s5691_s1 + $0x220] sm:$0xff]  }
  0x6b   : > { %4201 = vmatprep.subr.bf16.mxu1 %v4764_v1  ;;  %v1700_v24 = vshrl.u32 %v4730_v10, 16  ;;  %v1708_v35 = vshrl.u32 %v4734_v20, 16 }
  0x6d   : > { %4346 = vmatpush3.bf16.msra.mxu0 %v4693_v41  ;;  %v663_v41 = vrot.slane %v661_v31, 1  ;;  %v4733_v31 = vld [vmem:[%s4858_s16 + $0x78] sm:$0xff]  }
  0x6e   : > { %4202 = vmatpush3.bf16.msra.mxu1 %v4694_v43  ;;  %4367 = vmatprep.subr.bf16.mxu0 %v4764_v1  ;;  %v1481_v43 = vrot.slane %v1479_v38, 1  ;;  %v4738_v38 = vld [vmem:[%s5691_s1 + $0x238] sm:$0xff]  }
  0x6f   : > { %4184 = vmatmul.mubr.bf16.gmra.mrb[16].mxu1 %v4691_v40  ;;  %4223 = vmatprep.subr.bf16.mxu1 %v4764_v1  ;;  %v659_v40 = vor.u32 %v657_v30, %v655_v21  ;;  %v667_v57 = vor.u32 %v665_v51, %v663_v41  ;;  %v4729_v21 = vld [vmem:[%s4858_s16 + $0x70] sm:$0xff]   ;;  %v4735_v30 = vld [vmem:[%s5691_s1 + $0x228] sm:$0xff]  }
  0x70   : > { %4328 = vmatmul.mubr.bf16.gmra.mrb[16].mxu0 %v1260_v46  ;;  %4203 = vmatprep.mubr.msk.bf16.mxu1 %vm4765_vm0, %v4764_v1  ;;  %v1482_v47 = vsel %vm628_vm1, %v1477_v42, %v1481_v43 }
  0x71   : > { %4347 = vmatprep.mubr.msk.bf16.mxu0 %vm4765_vm0, %v4764_v1  ;;  %v664_v46 = vsel %vm628_vm1, %v659_v40, %v663_v41  ;;  %v1874_v41 = vrot.slane %v5165_v26, 1 }
  0x73   : > { %v1875_v42 = vsel %vm1866_vm2, %v1872_v33, %v1874_v41 }
  0x77   : > { %4204 = vmatmul.mubr.bf16.vlgmr.msra.gmra.mrb[0].mxu1 %v640_v58  ;;  %v1485_v58 = vor.u32 %v1483_v52, %v1481_v43 }
  0x78   : > { %4348 = vmatmul.mubr.bf16.vlgmr.msra.gmra.mrb[0].mxu0 %v1458_v59  ;;  %4207 = vmatprep.mubr.msk.bf16.mxu1 %vm4765_vm0, %v4764_v1  ;;  %v1673_v59 = vshrl.u32 %v4722_v49, 16 }
  0x79   : > { %4368 = vmatpush3.bf16.msra.mxu0 %v4699_v60  ;;  %4351 = vmatprep.mubr.msk.bf16.mxu0 %vm4765_vm0, %v4764_v1  ;;  %v1677_v60 = vrot.slane %v1675_v55, 1 }
  0x7a   : > { %4369 = vmatprep.subr.bf16.mxu0 %v4764_v1  ;;  %4224 = vmatpush3.bf16.msra.mxu1 %v4703_v63  ;;  %v1682_v63 = vrot.slane %v1680_v61, 1 }
  0x7b   : > { %4225 = vmatprep.subr.bf16.mxu1 %v4764_v1  ;;  %v1678_v62 = vor.u32 %v1677_v60, %v1673_v59  ;;  %v2023_v60 = vlaneseq }
  0x7c   : > { %v1686_v8 = vor.u32 %v1684_v5, %v1682_v63 }
  0x7d   : > { %4370 = vmatpush3.bf16.msra.mxu0 %v4700_v6  ;;  %v1683_v3 = vsel %vm628_vm1, %v1678_v62, %v1682_v63  ;;  %v1688_v6 = vshll.u32 %v4727_v0, 16 }
  0x7e   : > { %4371 = vmatprep.subr.bf16.mxu0 %v4764_v1  ;;  %4226 = vmatpush3.bf16.msra.mxu1 %v4705_v9 }
  0x7f   : > { %4208 = vmatmul.mubr.bf16.gmra.mrb[4].mxu1 %v648_v11  ;;  %4227 = vmatprep.subr.bf16.mxu1 %v4764_v1  ;;  %v1690_v9 = vrot.slane %v1688_v6, 1  ;;  %v4726_v11 = vld [vmem:[%s4858_s16 + $0x68] sm:$0xff]  }
  0x80   : > { %4352 = vmatmul.mubr.bf16.gmra.mrb[4].mxu0 %v1466_v15  ;;  %4211 = vmatprep.mubr.msk.bf16.mxu1 %vm4765_vm0, %v4764_v1  ;;  %v1692_v15 = vshrl.u32 %v4727_v0, 16 }
  0x81   : > { %4372 = vmatpush3.bf16.msra.mxu0 %v4704_v16  ;;  %4355 = vmatprep.mubr.msk.bf16.mxu0 %vm4765_vm0, %v4764_v1  ;;  %v1691_v12 = vsel %vm628_vm1, %v1686_v8, %v1690_v9  ;;  %v1696_v16 = vshll.u32 %v4730_v10, 16 }
  0x82   : > { %4373 = vmatprep.subr.bf16.mxu0 %v4764_v1  ;;  %4228 = vmatpush3.bf16.msra.mxu1 %v4709_v19  ;;  %v1694_v17 = vor.u32 %v1692_v15, %v1690_v9  ;;  %v4731_v19 = vld [vmem:[%s5691_s1 + $0x218] sm:$0xff]  }
  0x83   : > { %4229 = vmatprep.subr.bf16.mxu1 %v4764_v1  ;;  %v1698_v18 = vrot.slane %v1696_v16, 1 }
  0x85   : > { %4374 = vmatpush3.bf16.msra.mxu0 %v4708_v25  ;;  %v1699_v22 = vsel %vm628_vm1, %v1694_v17, %v1698_v18  ;;  %v1704_v25 = vshll.u32 %v4734_v20, 16 }
  0x86   : > { %4375 = vmatprep.subr.bf16.mxu0 %v4764_v1  ;;  %4230 = vmatpush3.bf16.msra.mxu1 %v4710_v28  ;;  %v1702_v28 = vor.u32 %v1700_v24, %v1698_v18 }
  0x87   : > { %4212 = vmatmul.mubr.bf16.gmra.mrb[8].mxu1 %v656_v29  ;;  %4231 = vmatprep.subr.bf16.mxu1 %v4764_v1  ;;  %v1706_v29 = vrot.slane %v1704_v25, 1 }
  0x88   : > { %4356 = vmatmul.mubr.bf16.gmra.mrb[8].mxu0 %v1474_v32  ;;  %4215 = vmatprep.mubr.msk.bf16.mxu1 %vm4765_vm0, %v4764_v1 }
  0x89   : > { %4376 = vmatpush3.bf16.msra.mxu0 %v4711_v34  ;;  %4359 = vmatprep.mubr.msk.bf16.mxu0 %vm4765_vm0, %v4764_v1  ;;  %v1707_v32 = vsel %vm628_vm1, %v1702_v28, %v1706_v29  ;;  %v4736_v34 = vld [vmem:[%s5691_s1 + $0x230] sm:$0xff]   ;;  %v1710_v40 = vor.u32 %v1708_v35, %v1706_v29 }
  0x8a   : > { %4232 = vmatpush3.bf16.msra.mxu1 %v4714_v39  ;;  %4377 = vmatprep.subr.bf16.mxu0 %v4764_v1  ;;  %v4737_v39 = vld [vmem:[%s4858_s16 + $0x80] ss:$0 sps:$4 sm:$0xff]   ;;  %s3966_s16 = sshll.u32 %s5700_s12, 5 }
  0x8b   : > { %4233 = vmatprep.subr.bf16.mxu1 %v4764_v1  ;;  %s5567_s6 = scalar_lea.vmem %s5692_s2, %s3966_s16 }
  0x8d   : > { %4378 = vmatpush3.bf16.msra.mxu0 %v4715_v44 }
  0x8e   : > { %4234 = vmatpush3.bf16.msra.mxu1 %v4716_v45  ;;  %4379 = vmatprep.subr.bf16.mxu0 %v4764_v1 }
  0x8f   : > { %4216 = vmatmul.mubr.bf16.gmra.mrb[12].mxu1 %v664_v46  ;;  %4235 = vmatprep.subr.bf16.mxu1 %v4764_v1 }
  0x90   : > { %4360 = vmatmul.mubr.bf16.gmra.mrb[12].mxu0 %v1482_v47  ;;  %4219 = vmatprep.mubr.msk.bf16.mxu1 %vm4765_vm0, %v4764_v1 }
  0x91   : > { %4363 = vmatprep.mubr.msk.bf16.mxu0 %vm4765_vm0, %v4764_v1  ;;  %4380 = vmatpush3.bf16.msra.mxu0 %v4717_v48 }
  0x92   : > { %4236 = vmatpush3.bf16.msra.mxu1 %v4718_v50  ;;  %4381 = vmatprep.subr.bf16.mxu0 %v4764_v1 }
  0x93   : > { %4237 = vmatprep.subr.bf16.mxu1 %v4764_v1 }
  0x95   : > { %4382 = vmatpush3.bf16.msra.mxu0 %v4719_v53 }
  0x96   : > { %4238 = vmatpush3.bf16.msra.mxu1 %v4720_v56  ;;  %4403 = vmatprep.subr.bf16.mxu0 %v4764_v1 }
  0x97   : > { %4220 = vmatmul.mubr.bf16.gmra.mrb[16].mxu1 %v667_v57  ;;  %4439 = vmatprep.subr.bf16.mxu1 %v4764_v1 }
  0x98   : > { %4364 = vmatmul.mubr.bf16.gmra.mrb[16].mxu0 %v1485_v58  ;;  %4239 = vmatprep.mubr.msk.bf16.mxu1 %vm4765_vm0, %v4764_v1  ;;  %v4766_v58 = vmov 1966171168  }
  0x99   : > { %4383 = vmatprep.mubr.msk.bf16.mxu0 %vm4765_vm0, %v4764_v1  ;;  %v2021_v59 = vunpack.c.l.s4 %v4766_v58 }
  0x9b   : > { %v2022_v6 = vunpack.c.0.s8 %v2021_v59 }
  0x9f   : > { %4240 = vmatmul.mubr.bf16.vlgmr.msra.gmra.mrb[0].mxu1 %v4721_v2 }
  0xa0   : > { %4384 = vmatmul.mubr.bf16.vlgmr.msra.gmra.mrb[0].mxu0 %v1683_v3  ;;  %4243 = vmatprep.mubr.msk.bf16.mxu1 %vm4765_vm0, %v4764_v1 }
  0xa1   : > { %4404 = vmatpush3.bf16.msra.mxu0 %v4724_v4  ;;  %4387 = vmatprep.mubr.msk.bf16.mxu0 %vm4765_vm0, %v4764_v1 }
  0xa2   : > { %4405 = vmatprep.subr.bf16.mxu0 %v4764_v1  ;;  %4447 = vmatpush3.bf16.msra.mxu1 %v4724_v4 }
  0xa3   : > { %4440 = vmatprep.subr.bf16.mxu1 %v4764_v1 }
  0xa5   : > { %4406 = vmatpush3.bf16.msra.mxu0 %v4725_v7 }
  0xa6   : > { %4407 = vmatprep.subr.bf16.mxu0 %v4764_v1  ;;  %4448 = vmatpush3.bf16.msra.mxu1 %v4725_v7  ;;  %v2024_v7 = vshrl.u32 %v2023_v60, 7 }
  0xa7   : > { %4244 = vmatmul.mubr.bf16.gmra.mrb[4].mxu1 %v4726_v11  ;;  %4441 = vmatprep.subr.bf16.mxu1 %v4764_v1 }
  0xa8   : > { %4388 = vmatmul.mubr.bf16.gmra.mrb[4].mxu0 %v1691_v12  ;;  %4247 = vmatprep.mubr.msk.bf16.mxu1 %vm4765_vm0, %v4764_v1  ;;  %v5320_v9 = vsub.s32 %v2022_v6, %v2024_v7 }
  0xa9   : > { %4408 = vmatpush3.bf16.msra.mxu0 %v4728_v13  ;;  %4391 = vmatprep.mubr.msk.bf16.mxu0 %vm4765_vm0, %v4764_v1 }
  0xaa   : > { %4409 = vmatprep.subr.bf16.mxu0 %v4764_v1  ;;  %4449 = vmatpush3.bf16.msra.mxu1 %v4728_v13 }
  0xab   : > { %4442 = vmatprep.subr.bf16.mxu1 %v4764_v1 }
  0xad   : > { %4410 = vmatpush3.bf16.msra.mxu0 %v4731_v19 }
  0xae   : > { %4411 = vmatprep.subr.bf16.mxu0 %v4764_v1  ;;  %4450 = vmatpush3.bf16.msra.mxu1 %v4731_v19 }
  0xaf   : > { %4248 = vmatmul.mubr.bf16.gmra.mrb[8].mxu1 %v4729_v21  ;;  %4443 = vmatprep.subr.bf16.mxu1 %v4764_v1 }
  0xb0   : > { %4392 = vmatmul.mubr.bf16.gmra.mrb[8].mxu0 %v1699_v22  ;;  %4251 = vmatprep.mubr.msk.bf16.mxu1 %vm4765_vm0, %v4764_v1 }
  0xb1   : > { %4412 = vmatpush3.bf16.msra.mxu0 %v4732_v23  ;;  %4395 = vmatprep.mubr.msk.bf16.mxu0 %vm4765_vm0, %v4764_v1 }
  0xb2   : > { %4451 = vmatpush3.bf16.msra.mxu1 %v4732_v23  ;;  %4413 = vmatprep.subr.bf16.mxu0 %v4764_v1 }
  0xb3   : > { %4444 = vmatprep.subr.bf16.mxu1 %v4764_v1 }
  0xb5   : > { %4414 = vmatpush3.bf16.msra.mxu0 %v4735_v30 }
  0xb6   : > { %4452 = vmatpush3.bf16.msra.mxu1 %v4735_v30  ;;  %4415 = vmatprep.subr.bf16.mxu0 %v4764_v1 }
  0xb7   : > { %4252 = vmatmul.mubr.bf16.gmra.mrb[12].mxu1 %v4733_v31  ;;  %4445 = vmatprep.subr.bf16.mxu1 %v4764_v1 }
  0xb8   : > { %4396 = vmatmul.mubr.bf16.gmra.mrb[12].mxu0 %v1707_v32  ;;  %4255 = vmatprep.mubr.msk.bf16.mxu1 %vm4765_vm0, %v4764_v1 }
  0xb9   : > { %4399 = vmatprep.mubr.msk.bf16.mxu0 %vm4765_vm0, %v4764_v1  ;;  %4416 = vmatpush3.bf16.msra.mxu0 %v4736_v34 }
  0xba   : > { %4453 = vmatpush3.bf16.msra.mxu1 %v4736_v34  ;;  %4417 = vmatprep.subr.bf16.mxu0 %v4764_v1 }
  0xbb   : > { %4446 = vmatprep.subr.bf16.mxu1 %v4764_v1 }
  0xbd   : > { %4418 = vmatpush3.bf16.msra.mxu0 %v4738_v38 }
  0xbe   : > { %4454 = vmatpush3.bf16.msra.mxu1 %v4738_v38 }
  0xbf   : > { %4256 = vmatmul.mubr.bf16.gmra.mrb[16].mxu1 %v4737_v39 }
  0xc0   : > { %4400 = vmatmul.mubr.bf16.gmra.mrb[16].mxu0 %v1710_v40  ;;  %4431 = vmatprep.mubr.msk.bf16.mxu1 %vm4765_vm0, %v4764_v1 }
  0xc1   : > { %4419 = vmatprep.mubr.msk.bf16.mxu0 %vm4765_vm0, %v4764_v1 }
  0xc7   : > { %4432 = vmatmul.mubr.bf16.vlgmr.msra.gmra.mrb[20].mxu1 %v1875_v42 }
  0xc8   : > { %4420 = vmatmul.mubr.bf16.vlgmr.msra.gmra.mrb[0].mxu0 %v5143_v14  ;;  %4435 = vmatprep.mubr.msk.bf16.mxu1 %vm4765_vm0, %v4764_v1 }
  0xc9   : > { %4423 = vmatprep.mubr.msk.bf16.mxu0 %vm4765_vm0, %v4764_v1 }
  0xcf   : > { %4436 = vmatmul.mubr.bf16.gmra.mrb[24].mxu1 %v1874_v41 }
  0xd0   : > { %4424 = vmatmul.mubr.bf16.gmra.mrb[4].mxu0 %v5085_v36 }
  0xd1   : > { %4427 = vmatprep.mubr.msk.bf16.mxu0 %vm4765_vm0, %v4764_v1 }
  0xd8   : > { %4428 = vmatmul.mubr.bf16.gmra.mrb[8].mxu0 %v5090_v37 }
 0x172   : > { %v939_v27 = vpop.f32.mrb[0].mxu1 }
 0x173   : > { %v4241_v26 = vpop.f32.mrb[1].mxu1 }
 0x174   : > { %v942_v33 = vpop.f32.mrb[2].mxu1 }
 0x175   : > { %v4242_v43 = vpop.f32.mrb[3].mxu1 }
 0x17a   : > { %v5310_v44 = vpop.f32.mrb[4].mxu1 }
 0x17b   : > { %v4245_v14 = vpop.f32.mrb[5].mxu1 }
 0x17c   : > { %v5312_v45 = vpop.f32.mrb[6].mxu1 }
 0x17d   : > { %v4246_v46 = vpop.f32.mrb[7].mxu1 }
 0x182   : > { %v5314_v47 = vpop.f32.mrb[8].mxu1 }
 0x183   : > { %v4249_v48 = vpop.f32.mrb[9].mxu1 }
 0x184   : > { %v5316_v49 = vpop.f32.mrb[10].mxu1 }
 0x185   : > { %v4250_v36 = vpop.f32.mrb[11].mxu1 }
 0x18a   : > { %v963_v50 = vpop.f32.mrb[12].mxu1 }
 0x18b   : > { %v1822_v1 = vpop.f32.mrb[12].mxu0  ;;  %v4253_v51 = vpop.f32.mrb[13].mxu1 }
 0x18c   : > { %v4461_v37 = vadd.f32 %v1822_v1, %v963_v50  ;;  %v4397_v52 = vpop.f32.mrb[13].mxu0  ;;  %v966_v53 = vpop.f32.mrb[14].mxu1 }
 0x18d   : > { %v1825_v54 = vpop.f32.mrb[14].mxu0  ;;  %v4254_v55 = vpop.f32.mrb[15].mxu1 }
 0x18e   : > { %v4463_v56 = vadd.f32 %v1825_v54, %v966_v53  ;;  %v4398_v57 = vpop.f32.mrb[15].mxu0 }
 0x192   : > { %v971_v61 = vpop.f32.mrb[16].mxu1 }
 0x193   : > { %v1830_v62 = vpop.f32.mrb[16].mxu0  ;;  %v4257_v63 = vpop.f32.mrb[17].mxu1 }
 0x194   : > { %v5318_v0 = vadd.f32 %v1830_v62, %v971_v61  ;;  %v4401_v2 = vpop.f32.mrb[17].mxu0  ;;  %v974_v3 = vpop.f32.mrb[18].mxu1 }
 0x195   : > { %v1833_v4 = vpop.f32.mrb[18].mxu0  ;;  %v4258_v5 = vpop.f32.mrb[19].mxu1 }
 0x196   : > { %v4402_v8 = vpop.f32.mrb[19].mxu0 }
 0x19a   : > { %v1987_v10 = vpop.f32.mrb[20].mxu1 }
 0x19b   : > { %v1963_v11 = vpop.f32.mrb[0].mxu0  ;;  %v4462_v12 = vadd.f32 %v4461_v37, %v1987_v10  ;;  %v4433_v13 = vpop.f32.mrb[21].mxu1 }
 0x19c   : > { %v4455_v15 = vadd.f32 %v1963_v11, %v939_v27  ;;  %v4421_v16 = vpop.f32.mrb[1].mxu0  ;;  %v1990_v17 = vpop.f32.mrb[22].mxu1 }
 0x19d   : > { %v2311_v18 = vcombine.high %v4462_v12, %v4462_v12  ;;  %v2318_v19 = vrot.slane %v4462_v12, %v5320_v9  ;;  %v1966_v20 = vpop.f32.mrb[2].mxu0  ;;  %v5323_v21 = vadd.f32 %v4463_v56, %v1990_v17  ;;  %v4434_v22 = vpop.f32.mrb[23].mxu1 }
 0x19e   : > { %v2019_v23 = vcombine.high %v4455_v15, %v4455_v15  ;;  %v2026_v24 = vrot.slane %v4455_v15, %v5320_v9  ;;  %v5326_v25 = vadd.f32 %v1966_v20, %v942_v33  ;;  %v4422_v28 = vpop.f32.mrb[3].mxu0 }
 0x19f   : > { %v2325_v29 = vrot.slane %v2311_v18, %v5320_v9  ;;  %v2326_v30 = vcombine.high %v2318_v19, %v2318_v19  ;;  %v5330_v31 = vrot.slane %v2318_v19, %v5320_v9 }
 0x1a0   : > { %v2033_v32 = vrot.slane %v2019_v23, %v5320_v9  ;;  %v2034_v34 = vcombine.high %v2026_v24, %v2026_v24  ;;  %v2042_v35 = vrot.slane %v2026_v24, %v5320_v9 }
 0x1a1   : > { %v2327_v38 = vcombine.high %v2325_v29, %v2325_v29  ;;  %v5335_v39 = vrot.slane %v2325_v29, %v5320_v9  ;;  %v5338_v40 = vrot.slane %v2326_v30, %v5320_v9  ;;  %v2356_v46 = vcombine.high %v5330_v31, %v5330_v31 }
 0x1a2   : > { %v2035_v41 = vcombine.high %v2033_v32, %v2033_v32  ;;  %v2049_v42 = vrot.slane %v2033_v32, %v5320_v9  ;;  %v2056_v27 = vrot.slane %v2034_v34, %v5320_v9  ;;  %v2064_v26 = vcombine.high %v2042_v35, %v2042_v35  ;;  %v5342_v33 = vpop.f32.mrb[24].mxu1 }
 0x1a3   : > { %v2974_v43 = vmul.f32 %v2042_v35, %v2042_v35  ;;  %v5345_v14 = vrot.slane %v2327_v38, %v5320_v9  ;;  %v2358_v48 = vcombine.high %v5338_v40, %v5338_v40  ;;  %v5351_v36 = vpop.f32.mrb[4].mxu0  ;;  %v4437_v50 = vpop.f32.mrb[25].mxu1  ;;  %v2767_v19 = vcombine.low %v5338_v40, %v2356_v46 }
 0x1a4   : > { %v2063_v1 = vrot.slane %v2035_v41, %v5320_v9  ;;  %v2065_v51 = vcombine.high %v2049_v42, %v2049_v42  ;;  %v2066_v37 = vcombine.high %v2056_v27, %v2056_v27  ;;  %v2520_v52 = vcombine.low %v2042_v35, %v2056_v27  ;;  %v4425_v53 = vpop.f32.mrb[5].mxu0  ;;  %v1998_v54 = vpop.f32.mrb[26].mxu1 }
 0x1a5   : > { %v3948_v55 = vcombine.high %v2042_v35, %v2056_v27  ;;  %v2975_v56 = vmul.f32 %v2056_v27, %v2056_v27  ;;  %v2976_v57 = vmul.f32 %v2064_v26, %v2064_v26  ;;  %v2978_v58 = vmul.f32 %v2049_v42, %v2049_v42  ;;  %v5354_v59 = vpop.f32.mrb[6].mxu0  ;;  %v4438_v60 = vpop.f32.mrb[27].mxu1 }
 0x1a6   : > { %v2067_v61 = vcombine.high %v2063_v1, %v2063_v1  ;;  %v2522_v62 = vcombine.low %v2049_v42, %v2063_v1  ;;  %v3949_v63 = vcombine.high %v2049_v42, %v2063_v1  ;;  %v2530_v2 = vrot.slane %v2520_v52, %v5320_v9  ;;  %v4426_v3 = vpop.f32.mrb[7].mxu0 }
 0x1a7   : > { %v2537_v4 = vrot.slane %v3948_v55, %v5320_v9  ;;  %v2977_v5 = vmul.f32 %v2066_v37, %v2066_v37  ;;  %v2979_v6 = vmul.f32 %v2063_v1, %v2063_v1  ;;  %v2980_v7 = vmul.f32 %v2065_v51, %v2065_v51 }
 0x1a8   : > { %v2544_v8 = vrot.slane %v2522_v62, %v5320_v9  ;;  %v2551_v10 = vrot.slane %v3949_v63, %v5320_v9  ;;  %v2981_v11 = vmul.f32 %v2067_v61, %v2067_v61  ;;  %v3102_v12 = vcombine.low %v2974_v43, %v2975_v56 }
 0x1a9   : > { %v3103_v13 = vcombine.low %v2976_v57, %v2977_v5  ;;  %v3104_v15 = vcombine.low %v2978_v58, %v2979_v6  ;;  %v2552_v16 = vcombine.low %v2530_v2, %v2537_v4  ;;  %v2768_v23 = vcombine.low %v2358_v48, %v5335_v39 }
 0x1aa   : > { %v2553_v17 = vcombine.low %v2544_v8, %v2551_v10  ;;  %v3105_v18 = vcombine.low %v2980_v7, %v2981_v11  ;;  %v3112_v20 = vrot.slane %v3102_v12, %v5320_v9  ;;  %v2357_v29 = vcombine.high %v5335_v39, %v5335_v39 }
 0x1ab   : > { %v3119_v22 = vrot.slane %v3103_v13, %v5320_v9  ;;  %v5364_v24 = vpop.f32.mrb[8].mxu0  ;;  %v2359_v30 = vcombine.high %v5345_v14, %v5345_v14  ;;  %v2068_v32 = vcombine.high %v5326_v25, %v5326_v25  ;;  %v3126_v35 = vrot.slane %v3104_v15, %v5320_v9 }
 0x1ac   : > { %v3133_v28 = vrot.slane %v3105_v18, %v5320_v9  ;;  %v4429_v34 = vpop.f32.mrb[9].mxu0  ;;  %v5375_v41 = vrot.slane %v2768_v23, %v5320_v9  ;;  %v3954_v42 = vcombine.high %v5335_v39, %v5345_v14  ;;  %v5382_v26 = vrot.slane %v2552_v16, %v5320_v9 }
 0x1ad   : > { %v3134_v38 = vcombine.low %v3112_v20, %v3119_v22  ;;  %v5379_v27 = vpop.f32.mrb[10].mxu0  ;;  %v5385_v43 = vrot.slane %v2553_v17, %v5320_v9  ;;  %v5388_v50 = vrot.slane %v2767_v19, %v5320_v9  ;;  %v2360_v1 = vcombine.high %v5323_v21, %v5323_v21 }
 0x1ae   : > { %v4430_v51 = vpop.f32.mrb[11].mxu0  ;;  %v3135_v37 = vcombine.low %v3126_v35, %v3133_v28  ;;  %v5394_v52 = vmul.f32 %v5330_v31, %v5330_v31  ;;  %v5398_v14 = vmul.f32 %v5338_v40, %v5338_v40  ;;  %v5400_v53 = vmul.f32 %v2356_v46, %v2356_v46 }
 0x1af   : > { %v5402_v54 = vmul.f32 %v2358_v48, %v2358_v48  ;;  %v3022_v55 = vmul.f32 %v2357_v29, %v2357_v29  ;;  %v3023_v56 = vmul.f32 %v2359_v30, %v2359_v30  ;;  %v2075_v57 = vrot.slane %v5326_v25, %v5320_v9 }
 0x1b0   : > { %v5407_v58 = vrot.slane %v3134_v38, %v5320_v9  ;;  %v2798_v60 = vcombine.low %v5388_v50, %v5375_v41  ;;  %v5412_v61 = vrot.slane %v3954_v42, %v5320_v9  ;;  %v2082_v40 = vrot.slane %v2068_v32, %v5320_v9 }
 0x1b1   : > { %v5417_v46 = vmul.f32 %v5335_v39, %v5335_v39  ;;  %v3396_v48 = vcombine.low %v3022_v55, %v3023_v56  ;;  %v2083_v62 = vcombine.high %v2075_v57, %v2075_v57  ;;  %v2091_v63 = vrot.slane %v2075_v57, %v5320_v9 }
 0x1b2   : > { %v5421_v25 = vrot.slane %v3135_v37, %v5320_v9  ;;  %v2084_v2 = vcombine.high %v2082_v40, %v2082_v40  ;;  %v2098_v3 = vrot.slane %v2082_v40, %v5320_v9  ;;  %v2367_v4 = vrot.slane %v5323_v21, %v5320_v9 }
 0x1b3   : > { %v3349_v5 = vcombine.low %v5398_v14, %v5400_v53  ;;  %v3350_v39 = vcombine.low %v5402_v54, %v5417_v46  ;;  %v2105_v6 = vrot.slane %v2083_v62, %v5320_v9  ;;  %v2113_v7 = vcombine.high %v2091_v63, %v2091_v63 }
 0x1b4   : > { %v5432_v8 = vrot.slane %v3396_v48, %v5320_v9  ;;  %v2112_v10 = vrot.slane %v2084_v2, %v5320_v9  ;;  %v2114_v11 = vcombine.high %v2098_v3, %v2098_v3  ;;  %v2374_v12 = vrot.slane %v2360_v1, %v5320_v9 }
 0x1b5   : > { %v2115_v13 = vcombine.high %v2105_v6, %v2105_v6  ;;  %v2569_v15 = vcombine.low %v2105_v6, %v2113_v7  ;;  %v2982_v21 = vmul.f32 %v2105_v6, %v2105_v6  ;;  %v2983_v16 = vmul.f32 %v2113_v7, %v2113_v7 }
 0x1b6   : > { %v5436_v17 = vcombine.high %v2112_v10, %v2112_v10  ;;  %v2571_v18 = vcombine.low %v2112_v10, %v2114_v11  ;;  %v2986_v19 = vmul.f32 %v2112_v10, %v2112_v10  ;;  %v2375_v20 = vcombine.high %v2367_v4, %v2367_v4 }
 0x1b7   : > { %v2570_v22 = vcombine.low %v2115_v13, %v2098_v3  ;;  %v2984_v23 = vmul.f32 %v2115_v13, %v2115_v13  ;;  %v2985_v28 = vmul.f32 %v2098_v3, %v2098_v3  ;;  %v2987_v29 = vmul.f32 %v2114_v11, %v2114_v11 }
 0x1b8   : > { %v2579_v30 = vrot.slane %v2569_v15, %v5320_v9  ;;  %v5440_v32 = vrot.slane %v2571_v18, %v5320_v9  ;;  %v3151_v34 = vcombine.low %v2982_v21, %v2983_v16  ;;  %v2376_v35 = vcombine.high %v2374_v12, %v2374_v12 }
 0x1b9   : > { %v2586_v38 = vrot.slane %v2570_v22, %v5320_v9  ;;  %v3152_v42 = vcombine.low %v2984_v23, %v2985_v28  ;;  %v3153_v1 = vcombine.low %v2986_v19, %v2987_v29  ;;  %v2383_v51 = vrot.slane %v2367_v4, %v5320_v9 }
 0x1ba   : > { %v5446_v37 = vmul.f32 %v5436_v17, %v5436_v17  ;;  %v2390_v55 = vrot.slane %v2374_v12, %v5320_v9  ;;  %v2397_v56 = vrot.slane %v2375_v20, %v5320_v9  ;;  %v2404_v57 = vrot.slane %v2376_v35, %v5320_v9 }
 0x1bb   : > { %v2601_v40 = vcombine.low %v2579_v30, %v2586_v38  ;;  %v3161_v48 = vrot.slane %v3151_v34, %v5320_v9  ;;  %v3168_v62 = vrot.slane %v3152_v42, %v5320_v9  ;;  %v2405_v63 = vcombine.high %v2383_v51, %v2383_v51 }
 0x1bc   : > { %v2406_v2 = vcombine.high %v2397_v56, %v2397_v56  ;;  %v2815_v3 = vcombine.low %v2383_v51, %v2397_v56  ;;  %v3955_v6 = vcombine.high %v2383_v51, %v2397_v56  ;;  %v2817_v4 = vcombine.low %v2390_v55, %v2404_v57 }
 0x1bd   : > { %v5454_v7 = vrot.slane %v2601_v40, %v5320_v9  ;;  %v5457_v10 = vrot.slane %v3153_v1, %v5320_v9  ;;  %v3183_v11 = vcombine.low %v3161_v48, %v3168_v62  ;;  %v3025_v12 = vmul.f32 %v2397_v56, %v2397_v56 }
 0x1be   : > { %v2831_v13 = vrot.slane %v2815_v3, %v5320_v9  ;;  %v2838_v15 = vrot.slane %v3955_v6, %v5320_v9  ;;  %v2845_v21 = vrot.slane %v2817_v4, %v5320_v9  ;;  %v3024_v16 = vmul.f32 %v2383_v51, %v2383_v51 }
 0x1bf   : > { %v3026_v18 = vmul.f32 %v2405_v63, %v2405_v63  ;;  %v3027_v19 = vmul.f32 %v2406_v2, %v2406_v2  ;;  %v3028_v20 = vmul.f32 %v2390_v55, %v2390_v55  ;;  %v3029_v22 = vmul.f32 %v2404_v57, %v2404_v57 }
 0x1c0   : > { %v2846_v23 = vcombine.low %v5412_v61, %v2831_v13  ;;  %v2847_v28 = vcombine.low %v2838_v15, %v2845_v21  ;;  %v3397_v29 = vcombine.low %v3024_v16, %v3025_v12  ;;  %v4457_v30 = vadd.f32 %v5351_v36, %v5310_v44 }
 0x1c1   : > { %v5466_v34 = vrot.slane %v3183_v11, %v5320_v9  ;;  %v3398_v35 = vcombine.low %v3026_v18, %v3027_v19  ;;  %v3399_v38 = vcombine.low %v3028_v20, %v3029_v22  ;;  %v4466_v42 = vadd.f32 %v5318_v0, %v5342_v33 }
 0x1c2   : > { %v2854_v1 = vrot.slane %v2846_v23, %v5320_v9  ;;  %v2861_v51 = vrot.slane %v2847_v28, %v5320_v9  ;;  %v3413_v55 = vrot.slane %v3397_v29, %v5320_v9  ;;  %v2117_v61 = vcombine.high %v4457_v30, %v4457_v30 }
 0x1c3   : > { %v3420_v56 = vrot.slane %v3398_v35, %v5320_v9  ;;  %v3427_v40 = vrot.slane %v3399_v38, %v5320_v9  ;;  %v2124_v44 = vrot.slane %v4457_v30, %v5320_v9  ;;  %v2408_v36 = vcombine.high %v4466_v42, %v4466_v42 }
 0x1c4   : > { %v5476_v48 = vcombine.low %v2854_v1, %v2861_v51  ;;  %v3428_v62 = vcombine.low %v5432_v8, %v3413_v55  ;;  %v2131_v0 = vrot.slane %v2117_v61, %v5320_v9  ;;  %v2415_v33 = vrot.slane %v4466_v42, %v5320_v9 }
 0x1c5   : > { %v3429_v63 = vcombine.low %v3420_v56, %v3427_v40  ;;  %v2132_v2 = vcombine.high %v2124_v44, %v2124_v44  ;;  %v2140_v3 = vrot.slane %v2124_v44, %v5320_v9  ;;  %v2407_v6 = vcombine.high %v2404_v57, %v2404_v57 }
 0x1c6   : > { %v5483_v4 = vrot.slane %v3428_v62, %v5320_v9  ;;  %v2133_v11 = vcombine.high %v2131_v0, %v2131_v0  ;;  %v5486_v12 = vrot.slane %v2131_v0, %v5320_v9  ;;  %v2422_v13 = vrot.slane %v2408_v36, %v5320_v9 }
 0x1c7   : > { %v5490_v8 = vrot.slane %v3429_v63, %v5320_v9  ;;  %v2154_v15 = vrot.slane %v2132_v2, %v5320_v9  ;;  %v2162_v21 = vcombine.high %v2140_v3, %v2140_v3  ;;  %v2572_v16 = vcombine.low %v5436_v17, %v2140_v3 }
 0x1c8   : > { %v5495_v18 = vrot.slane %v2133_v11, %v5320_v9  ;;  %v2163_v57 = vcombine.high %v5486_v12, %v5486_v12  ;;  %v2989_v19 = vmul.f32 %v2140_v3, %v2140_v3  ;;  %v2423_v20 = vcombine.high %v2415_v33, %v2415_v33 }
 0x1c9   : > { %v2164_v23 = vcombine.high %v2154_v15, %v2154_v15  ;;  %v2600_v28 = vrot.slane %v2572_v16, %v5320_v9  ;;  %v3950_v29 = vcombine.high %v2140_v3, %v2154_v15  ;;  %v2992_v35 = vmul.f32 %v5486_v12, %v5486_v12 }
 0x1ca   : > { %v2165_v30 = vcombine.high %v5495_v18, %v5495_v18  ;;  %v2619_v17 = vcombine.low %v5486_v12, %v5495_v18  ;;  %v2993_v38 = vmul.f32 %v5495_v18, %v5495_v18  ;;  %v2990_v51 = vmul.f32 %v2162_v21, %v2162_v21 }
 0x1cb   : > { %v2602_v42 = vcombine.low %v5440_v32, %v2600_v28  ;;  %v2628_v1 = vrot.slane %v3950_v29, %v5320_v9  ;;  %v2991_v55 = vmul.f32 %v2164_v23, %v2164_v23  ;;  %v5513_v56 = vmul.f32 %v2163_v57, %v2163_v57 }
 0x1cc   : > { %v2635_v61 = vrot.slane %v2619_v17, %v5320_v9  ;;  %v3154_v40 = vcombine.low %v5446_v37, %v2989_v19  ;;  %v3201_v44 = vcombine.low %v2992_v35, %v2993_v38  ;;  %v5516_v36 = vmul.f32 %v2165_v30, %v2165_v30 }
 0x1cd   : > { %v3200_v62 = vcombine.low %v2990_v51, %v2991_v55  ;;  %v2424_v0 = vcombine.high %v2422_v13, %v2422_v13  ;;  %v2431_v63 = vrot.slane %v2415_v33, %v5320_v9  ;;  %v2438_v11 = vrot.slane %v2422_v13, %v5320_v9 }
 0x1ce   : > { %v2650_v2 = vcombine.low %v2628_v1, %v2635_v61  ;;  %v3182_v32 = vrot.slane %v3154_v40, %v5320_v9  ;;  %v5521_v3 = vrot.slane %v3201_v44, %v5320_v9  ;;  %v2445_v37 = vrot.slane %v2423_v20, %v5320_v9 }
 0x1cf   : > { %v5525_v15 = vrot.slane %v3200_v62, %v5320_v9  ;;  %v2452_v21 = vrot.slane %v2424_v0, %v5320_v9  ;;  %v2453_v16 = vcombine.high %v2431_v63, %v2431_v63  ;;  %v2616_v57 = vrot.slane %v2602_v42, %v5320_v9 }
 0x1d0   : > { %v3184_v33 = vcombine.low %v5457_v10, %v3182_v32  ;;  %v2454_v19 = vcombine.high %v2438_v11, %v2438_v11  ;;  %v2863_v23 = vcombine.low %v2407_v6, %v2431_v63  ;;  %v5532_v28 = vrot.slane %v2650_v2, %v5320_v9 }
 0x1d1   : > { %v3232_v13 = vcombine.low %v5525_v15, %v5521_v3  ;;  %v2455_v29 = vcombine.high %v2445_v37, %v2445_v37  ;;  %v2864_v30 = vcombine.low %v2445_v37, %v2453_v16  ;;  %v3030_v35 = vmul.f32 %v2407_v6, %v2407_v6 }
 0x1d2   : > { %v5537_v17 = vrot.slane %v3184_v33, %v5320_v9  ;;  %v2866_v20 = vcombine.low %v2452_v21, %v2454_v19  ;;  %v3031_v38 = vmul.f32 %v2431_v63, %v2431_v63  ;;  %v2873_v42 = vrot.slane %v2863_v23, %v5320_v9 }
 0x1d3   : > { %v2865_v1 = vcombine.low %v2455_v29, %v2438_v11  ;;  %v2880_v10 = vrot.slane %v2864_v30, %v5320_v9  ;;  %v3032_v51 = vmul.f32 %v2445_v37, %v2445_v37  ;;  %v3033_v61 = vmul.f32 %v2453_v16, %v2453_v16 }
 0x1d4   : > { %v2894_v55 = vrot.slane %v2866_v20, %v5320_v9  ;;  %v3034_v40 = vmul.f32 %v2455_v29, %v2455_v29  ;;  %v3035_v44 = vmul.f32 %v2438_v11, %v2438_v11  ;;  %v3036_v2 = vmul.f32 %v2452_v21, %v2452_v21 }
 0x1d5   : > { %v2887_v62 = vrot.slane %v2865_v1, %v5320_v9  ;;  %v2895_v0 = vcombine.low %v2873_v42, %v2880_v10  ;;  %v3037_v32 = vmul.f32 %v2454_v19, %v2454_v19  ;;  %v3445_v33 = vcombine.low %v3030_v35, %v3031_v38 }
 0x1d6   : > { %v3446_v6 = vcombine.low %v3032_v51, %v3033_v61  ;;  %v3447_v63 = vcombine.low %v3034_v40, %v3035_v44  ;;  %v4458_v23 = vadd.f32 %v5354_v59, %v5312_v45  ;;  %v2568_v16 = vcombine.low %v5382_v26, %v5385_v43 }
 0x1d7   : > { %v2896_v22 = vcombine.low %v2887_v62, %v2894_v55  ;;  %v2903_v37 = vrot.slane %v2895_v0, %v5320_v9  ;;  %v3448_v30 = vcombine.low %v3036_v2, %v3037_v32  ;;  %v3455_v11 = vrot.slane %v3445_v33, %v5320_v9 }
 0x1d8   : > { %v3462_v29 = vrot.slane %v3446_v6, %v5320_v9  ;;  %v3469_v21 = vrot.slane %v3447_v63, %v5320_v9  ;;  %v2166_v19 = vcombine.high %v4458_v23, %v4458_v23  ;;  %v2173_v45 = vrot.slane %v4458_v23, %v5320_v9 }
 0x1d9   : > { %v2910_v20 = vrot.slane %v2896_v22, %v5320_v9  ;;  %v3476_v35 = vrot.slane %v3448_v30, %v5320_v9  ;;  %v2617_v59 = vcombine.low %v5454_v7, %v2616_v57  ;;  %v3951_v26 = vcombine.high %v5486_v12, %v5495_v18 }
 0x1da   : > { %v3477_v38 = vcombine.low %v3455_v11, %v3462_v29  ;;  %v2180_v1 = vrot.slane %v2166_v19, %v5320_v9  ;;  %v3150_v43 = vcombine.low %v5407_v58, %v5421_v25  ;;  %v2181_v51 = vcombine.high %v2173_v45, %v2173_v45 }
 0x1db   : > { %v5561_v42 = vcombine.low %v2903_v37, %v2910_v20  ;;  %v3478_v10 = vcombine.low %v3469_v21, %v3476_v35  ;;  %v2189_v22 = vrot.slane %v2173_v45, %v5320_v9  ;;  %v2642_v58 = vrot.slane %v3951_v26, %v5320_v9 }
 0x1dc   : > { %v5570_v7 = vrot.slane %v3477_v38, %v5320_v9  ;;  %v2182_v12 = vcombine.high %v2180_v1, %v2180_v1  ;;  %v2196_v18 = vrot.slane %v2180_v1, %v5320_v9  ;;  %v2203_v55 = vrot.slane %v2181_v51, %v5320_v9 }
 0x1dd   : > { %v3993_v25 = vpack.c.bf16 %v5561_v42, %v5476_v48  ;;  %v5577_v57 = vrot.slane %v3478_v10, %v5320_v9  ;;  %v3978_v61 = vpack.c.bf16 %v2617_v59, %v2568_v16  ;;  %v2960_v62 = vadd.f32 %v2617_v59, %v2568_v16 }
 0x1de   : > { %v2210_v40 = vrot.slane %v2182_v12, %v5320_v9  ;;  %v2211_v44 = vcombine.high %v2196_v18, %v2196_v18  ;;  %v2996_v0 = vmul.f32 %v2189_v22, %v2189_v22  ;;  %v2212_v32 = vcombine.high %v2203_v55, %v2203_v55 }
 0x1df   : > { %3997 = vst [vmem:[%s5567_s6 + $0x18] sm:$0xff] %v3993_v25   ;;  %v3493_v2 = vcombine.low %v5570_v7, %v5577_v57  ;;  %v2621_v33 = vcombine.low %v2189_v22, %v2203_v55  ;;  %3979 = vst [vmem:[%s5567_s6] sm:$0xff] %v3978_v61   ;;  %v2997_v6 = vmul.f32 %v2203_v55, %v2203_v55 }
 0x1e0   : > { %v2668_v63 = vcombine.low %v2210_v40, %v2211_v44  ;;  %v2999_v23 = vmul.f32 %v2196_v18, %v2196_v18  ;;  %v3000_v37 = vmul.f32 %v2210_v40, %v2210_v40  ;;  %v3001_v30 = vmul.f32 %v2211_v44, %v2211_v44 }
 0x1e1   : > { %v2649_v11 = vrot.slane %v2621_v33, %v5320_v9  ;;  %v2667_v29 = vcombine.low %v2212_v32, %v2196_v18  ;;  %v2998_v21 = vmul.f32 %v2212_v32, %v2212_v32  ;;  %v3199_v16 = vcombine.low %v5466_v34, %v5537_v17 }
 0x1e2   : > { %v2684_v19 = vrot.slane %v2668_v63, %v5320_v9  ;;  %v3202_v20 = vcombine.low %v5513_v56, %v5516_v36  ;;  %v3203_v35 = vcombine.low %v2996_v0, %v2997_v6  ;;  %v3250_v45 = vcombine.low %v3000_v37, %v3001_v30 }
 0x1e3   : > { %v2651_v59 = vcombine.low %v2642_v58, %v2649_v11  ;;  %v2677_v38 = vrot.slane %v2667_v29, %v5320_v9  ;;  %v3249_v1 = vcombine.low %v2998_v21, %v2999_v23  ;;  %v3502_v26 = vadd.f32 %v3199_v16, %v3150_v43 }
 0x1e4   : > { %v3224_v10 = vrot.slane %v3202_v20, %v5320_v9  ;;  %v3231_v51 = vrot.slane %v3203_v35, %v5320_v9  ;;  %v3266_v22 = vrot.slane %v3250_v45, %v5320_v9  ;;  %v4459_v34 = vadd.f32 %v5364_v24, %v5314_v47 }
 0x1e5   : > { %v2665_v17 = vrot.slane %v2651_v59, %v5320_v9  ;;  %v2699_v12 = vcombine.low %v2677_v38, %v2684_v19  ;;  %v3259_v56 = vrot.slane %v3249_v1, %v5320_v9  ;;  %v2213_v36 = vcombine.high %v2210_v40, %v2210_v40 }
 0x1e6   : > { %v3233_v18 = vcombine.low %v3224_v10, %v3231_v51  ;;  %v2214_v58 = vcombine.high %v4459_v34, %v4459_v34  ;;  %v2221_v25 = vrot.slane %v4459_v34, %v5320_v9  ;;  %v4460_v43 = vadd.f32 %v5379_v27, %v5316_v49 }
 0x1e7   : > { %v5606_v55 = vrot.slane %v3350_v39, %v5320_v9  ;;  %v3240_v47 = vrot.slane %v3232_v13, %v5320_v9  ;;  %v5613_v24 = vcombine.low %v5532_v28, %v2665_v17  ;;  %v2707_v61 = vrot.slane %v2699_v12, %v5320_v9 }
 0x1e8   : > { %v3247_v40 = vrot.slane %v3233_v18, %v5320_v9  ;;  %v2228_v49 = vrot.slane %v2214_v58, %v5320_v9  ;;  %v2229_v27 = vcombine.high %v2221_v25, %v2221_v25  ;;  %v2237_v44 = vrot.slane %v2221_v25, %v5320_v9 }
 0x1e9   : > { %v2961_v54 = vadd.f32 %v2960_v62, %v5613_v24  ;;  %v3281_v46 = vcombine.low %v3259_v56, %v3266_v22  ;;  %v3002_v39 = vmul.f32 %v2213_v36, %v2213_v36  ;;  %v2262_v0 = vcombine.high %v4460_v43, %v4460_v43 }
 0x1ea   : > { %v3248_v32 = vcombine.low %v3240_v47, %v3247_v40  ;;  %v2230_v3 = vcombine.high %v2228_v49, %v2228_v49  ;;  %v2244_v15 = vrot.slane %v2228_v49, %v5320_v9  ;;  %v2251_v28 = vrot.slane %v2229_v27, %v5320_v9 }
 0x1eb   : > { %v2259_v13 = vcombine.high %v2237_v44, %v2237_v44  ;;  %v2669_v33 = vcombine.low %v2213_v36, %v2237_v44  ;;  %v3003_v6 = vmul.f32 %v2237_v44, %v2237_v44  ;;  %v2269_v63 = vrot.slane %v4460_v43, %v5320_v9 }
 0x1ec   : > { %v3503_v23 = vadd.f32 %v3502_v26, %v3248_v32  ;;  %v2258_v37 = vrot.slane %v2230_v3, %v5320_v9  ;;  %v3004_v30 = vmul.f32 %v2251_v28, %v2251_v28  ;;  %v2276_v62 = vrot.slane %v2262_v0, %v5320_v9 }
 0x1ed   : > { %v2260_v11 = vcombine.high %v2244_v15, %v2244_v15  ;;  %v2670_v29 = vcombine.low %v2251_v28, %v2259_v13  ;;  %v3005_v21 = vmul.f32 %v2259_v13, %v2259_v13  ;;  %v3006_v16 = vmul.f32 %v2244_v15, %v2244_v15 }
 0x1ee   : > { %v2261_v19 = vcombine.high %v2258_v37, %v2258_v37  ;;  %v2716_v20 = vcombine.low %v2244_v15, %v2258_v37  ;;  %v3952_v35 = vcombine.high %v2244_v15, %v2258_v37  ;;  %v3007_v45 = vmul.f32 %v2258_v37, %v2258_v37 }
 0x1ef   : > { %v2691_v59 = vrot.slane %v2669_v33, %v5320_v9  ;;  %v2698_v38 = vrot.slane %v2670_v29, %v5320_v9  ;;  %v3251_v1 = vcombine.low %v3002_v39, %v3003_v6  ;;  %v3252_v10 = vcombine.low %v3004_v30, %v3005_v21 }
 0x1f0   : > { %v2726_v26 = vrot.slane %v2716_v20, %v5320_v9  ;;  %v2733_v51 = vrot.slane %v3952_v35, %v5320_v9  ;;  %v3009_v22 = vmul.f32 %v2261_v19, %v2261_v19  ;;  %v3298_v34 = vcombine.low %v3006_v16, %v3007_v45 }
 0x1f1   : > { %v2700_v17 = vcombine.low %v2691_v59, %v2698_v38  ;;  %v3273_v12 = vrot.slane %v3251_v1, %v5320_v9  ;;  %v3280_v56 = vrot.slane %v3252_v10, %v5320_v9  ;;  %v2277_v36 = vcombine.high %v2269_v63, %v2269_v63 }
 0x1f2   : > { %v3289_v18 = vrot.slane %v3281_v46, %v5320_v9  ;;  %v2748_v58 = vcombine.low %v2726_v26, %v2733_v51  ;;  %v3008_v25 = vmul.f32 %v2260_v11, %v2260_v11  ;;  %v2278_v43 = vcombine.high %v2276_v62, %v2276_v62 }
 0x1f3   : > { %v2714_v47 = vrot.slane %v2700_v17, %v5320_v9  ;;  %v3282_v40 = vcombine.low %v3273_v12, %v3280_v56  ;;  %v2285_v49 = vrot.slane %v2269_v63, %v5320_v9  ;;  %v2292_v27 = vrot.slane %v2276_v62, %v5320_v9 }
 0x1f4   : > { %v3299_v44 = vcombine.low %v3008_v25, %v3009_v22  ;;  %v3308_v39 = vrot.slane %v3298_v34, %v5320_v9  ;;  %v2299_v0 = vrot.slane %v2277_v36, %v5320_v9  ;;  %v2306_v32 = vrot.slane %v2278_v43, %v5320_v9 }
 0x1f5   : > { %v2715_v3 = vcombine.low %v2707_v61, %v2714_v47  ;;  %v2756_v46 = vrot.slane %v2748_v58, %v5320_v9  ;;  %v3296_v15 = vrot.slane %v3282_v40, %v5320_v9  ;;  %v2308_v28 = vcombine.high %v2292_v27, %v2292_v27 }
 0x1f6   : > { %v2307_v13 = vcombine.high %v2285_v49, %v2285_v49  ;;  %v2309_v33 = vcombine.high %v2299_v0, %v2299_v0  ;;  %v2310_v6 = vcombine.high %v2306_v32, %v2306_v32  ;;  %v2718_v63 = vcombine.low %v2285_v49, %v2299_v0 }
 0x1f7   : > { %v3983_v37 = vpack.c.bf16 %v2715_v3, %v5613_v24  ;;  %v2962_v30 = vadd.f32 %v2961_v54, %v2715_v3  ;;  %v3297_v62 = vcombine.low %v3289_v18, %v3296_v15  ;;  %v3953_v11 = vcombine.high %v2285_v49, %v2299_v0 }
 0x1f8   : > { %v3315_v29 = vrot.slane %v3299_v44, %v5320_v9  ;;  %v2740_v21 = vrot.slane %v2718_v63, %v5320_v9  ;;  %v2765_v61 = vcombine.low %v2306_v32, %v2308_v28  ;;  %v2766_v16 = vcombine.low %v2310_v6, %v5330_v31 }
 0x1f9   : > { %3995 = vst [vmem:[%s5567_s6 + $0x8] sm:$0xff] %v3983_v37   ;;  %v3504_v19 = vadd.f32 %v3503_v23, %v3297_v62  ;;  %v2747_v20 = vrot.slane %v3953_v11, %v5320_v9  ;;  %v3010_v35 = vmul.f32 %v2285_v49, %v2285_v49  ;;  %v3011_v45 = vmul.f32 %v2299_v0, %v2299_v0 }
 0x1fa   : > { %v2775_v59 = vrot.slane %v2765_v61, %v5320_v9  ;;  %v2782_v24 = vrot.slane %v2766_v16, %v5320_v9  ;;  %v3012_v54 = vmul.f32 %v2307_v13, %v2307_v13  ;;  %v3013_v38 = vmul.f32 %v2309_v33, %v2309_v33 }
 0x1fb   : > { %v2749_v1 = vcombine.low %v2740_v21, %v2747_v20  ;;  %v3014_v10 = vmul.f32 %v2306_v32, %v2306_v32  ;;  %v3015_v26 = vmul.f32 %v2308_v28, %v2308_v28  ;;  %v3016_v51 = vmul.f32 %v2310_v6, %v2310_v6 }
 0x1fc   : > { %v3330_v22 = vcombine.low %v3308_v39, %v3315_v29  ;;  %v2797_v34 = vcombine.low %v2775_v59, %v2782_v24  ;;  %v3300_v17 = vcombine.low %v3010_v35, %v3011_v45  ;;  %v3301_v31 = vcombine.low %v3012_v54, %v3013_v38 }
 0x1fd   : > { %v3371_v23 = vrot.slane %v3349_v5, %v5320_v9  ;;  %v2763_v12 = vrot.slane %v2749_v1, %v5320_v9  ;;  %v3347_v56 = vcombine.low %v3014_v10, %v3015_v26  ;;  %v3348_v36 = vcombine.low %v3016_v51, %v5394_v52 }
 0x1fe   : > { %v2812_v18 = vrot.slane %v2798_v60, %v5320_v9  ;;  %v2805_v58 = vrot.slane %v2797_v34, %v5320_v9  ;;  %v3322_v25 = vrot.slane %v3300_v17, %v5320_v9  ;;  %v3329_v43 = vrot.slane %v3301_v31, %v5320_v9 }
 0x1ff   : > { %v3380_v14 = vcombine.low %v3371_v23, %v5606_v55  ;;  %v2764_v53 = vcombine.low %v2756_v46, %v2763_v12  ;;  %v3357_v5 = vrot.slane %v3347_v56, %v5320_v9  ;;  %v3364_v47 = vrot.slane %v3348_v36, %v5320_v9 }
 0x200   : > { %v3338_v52 = vrot.slane %v3330_v22, %v5320_v9  ;;  %v2813_v40 = vcombine.low %v2805_v58, %v2812_v18  ;;  %v3331_v49 = vcombine.low %v3322_v25, %v3329_v43  ;;  %v5694_v33 = vcombine.low %v5483_v4, %v5490_v8 }
 0x201   : > { %v2963_v41 = vadd.f32 %v2962_v30, %v2764_v53  ;;  %v3379_v50 = vcombine.low %v3357_v5, %v3364_v47  ;;  %v3394_v44 = vrot.slane %v3380_v14, %v5320_v9 }
 0x202   : > { %v3988_v60 = vpack.c.bf16 %v2813_v40, %v2764_v53  ;;  %v3345_v27 = vrot.slane %v3331_v49, %v5320_v9 }
 0x203   : > { %v2964_v39 = vadd.f32 %v2963_v41, %v2813_v40  ;;  %v3387_v55 = vrot.slane %v3379_v50, %v5320_v9 }
 0x204   : > { %3996 = vst [vmem:[%s5567_s6 + $0x10] sm:$0xff] %v3988_v60   ;;  %v3346_v0 = vcombine.low %v3338_v52, %v3345_v27 }
 0x205   : > { %v2965_v32 = vadd.f32 %v2964_v39, %v5476_v48  ;;  %v3395_v3 = vcombine.low %v3387_v55, %v3394_v44 }
 0x206   : > { %v3505_v46 = vadd.f32 %v3504_v19, %v3346_v0 }
 0x207   : > { %v2966_v15 = vadd.f32 %v2965_v32, %v5561_v42 }
 0x208   : > { %v3506_v28 = vadd.f32 %v3505_v46, %v3395_v3 }
 0x209   : > { %v2967_v13 = vrot.slane %v2966_v15, 4 }
 0x20a   : > { %v3507_v6 = vadd.f32 %v3506_v28, %v5694_v33 }
 0x20b   : > { %v2968_v63 = vadd.f32 %v2967_v13, %v2966_v15 }
 0x20c   : > { %v3508_v37 = vadd.f32 %v3507_v6, %v3493_v2 }
 0x20d   : > { %v2969_v9 = vrot.slane %v2968_v63, 2 }
 0x20e   : > { %v3509_v30 = vrot.slane %v3508_v37, 4 }
 0x20f   : > { %v2970_v62 = vadd.f32 %v2969_v9, %v2968_v63 }
 0x210   : > { %v3510_v48 = vadd.f32 %v3509_v30, %v3508_v37 }
 0x211   : > { %v2971_v11 = vrot.slane %v2970_v62, 1 }
 0x212   : > { %v3511_v42 = vrot.slane %v3510_v48, 2 }
 0x213   : > { %v2972_v29 = vadd.f32 %v2971_v11, %v2970_v62 }
 0x214   : > { %v3512_v21 = vadd.f32 %v3511_v42, %v3510_v48 }
 0x215   : > { %2973 = vst [vmem:[%s226_s10] sm:$0x1] %v2972_v29 }
 0x216   : > { %v3513_v4 = vrot.slane %v3512_v21, 1 }
 0x218   : > { %v3514_v8 = vadd.f32 %v3513_v4, %v3512_v21 }
 0x21a   : > { %3515 = vst [vmem:[%s226_s10 + $0x1] sm:$0x1] %v3514_v8 }
 0x21b PF: > { %s14_s14 = sadd.s32 1, %s4762_s14   ;;  %s5695_s12 = smov %s4758_s13 }
 0x21c   : > { %p11_p5 = scmp.ge.s32.totalorder %s14_s14, 4   ;;  %s5696_s13 = smov %s5698_s15 }
 0x21e   :  { %13 = sbr.rel (!%p11_p5) target bundleno = 2 (0x2), region = 84 }

// kernel: residual_block.6
= control target key start
LH: loop header
LB: loop body
LE: loop exit
PB: predicated region body
PF: predicated region fallthrough
CT: control target
= control target key end

     0   :  { %s3742_s12 = smov 0   ;;  %s3744_s13 = smov 0   ;;  %s4499_s0 = inlined_call_operand.vmem [shape: bf16[2,1,110,128], index: 0, kind: input, shape index: {}]   ;;  %s4500_s1 = inlined_call_operand.vmem [shape: bf16[9,128,128], index: 1, kind: input, shape index: {}]   ;;  %s4501_s2 = inlined_call_operand.vmem [shape: bf16[2,64,128], index: 2, kind: output, shape index: {0}]   ;;  %s4502_s3 = inlined_call_operand.vmem [shape: f32[2,2,128], index: 3, kind: output, shape index: {1}]  }
   0x1   :  { %s3746_s14 = smov 0  }
   0x2 LB: > { %s23_s15 = sadd.s32 1, %s3713_s13  ;;  %p2699_p0 = scmp.ge.s32.totalorder %s3717_s14, 1  ;;  %s3717_s14 = sphi %s3746_s14, %s14_s14   ;;  %s3713_s13 = sphi %s3744_s13, %s4504_s13   ;;  %s3709_s12 = sphi %s3742_s12, %s4503_s12  }
   0x3   : > { %p24_p1 = scmp.ge.s32.totalorder %s23_s15, 2  ;;  %p165_p2 = scmp.lt.s32.totalorder %s3717_s14, 3 }
   0x5   : > { %s4506_s15 = smov (%p24_p1, %s23_s15), 0  ;;  %p166_p3 = pnand %p2699_p0, %p165_p2 }
   0x6   : > { %v3600_v0 = vld [vmem:[%s4500_s1 + $0x40] sm:$0xff] (!%p166_p3)   ;;  %v3719_v1 = vmov (!%p166_p3), 0.0   ;;  %v3602_v3 = vld [vmem:[%s4500_s1 + $0x48] sm:$0xff] (!%p166_p3)   ;;  %vm3720_vm0 = vmmov (!%p166_p3), 0   ;;  %p203_p4 = scmp.lt.s32.totalorder (!%p166_p3), %s3709_s12, 1  ;;  %v3604_v5 = vld [vmem:[%s4500_s1 + $0x50] sm:$0xff] (!%p166_p3)  }
   0x7   : > { %169 = sbr.rel (%p166_p3) target bundleno = 486 (0x1e6), region = 28  ;;  %3086 = vmatprep.subr.bf16.mxu1 (!%p166_p3), %v3719_v1  ;;  %3230 = vmatprep.subr.bf16.mxu0 (!%p166_p3), %v3719_v1  ;;  %v3601_v2 = vld [vmem:[%s4500_s1 + $0x100] sm:$0xff] (!%p166_p3)   ;;  %v3603_v4 = vld [vmem:[%s4500_s1 + $0x108] sm:$0xff] (!%p166_p3)   ;;  %v3605_v6 = vld [vmem:[%s4500_s1 + $0x110] sm:$0xff] (!%p166_p3)   ;;  %vm300_vm1 = vsmask.f32 (!%p166_p3), 7424 }
   0x8   : > { %3087 = vmatpush3.bf16.msra.mxu1 (!%p166_p3), %v3600_v0  ;;  %3102 = vmatprep.mubr.msk.bf16.mxu1 (!%p166_p3), %vm3720_vm0, %v3719_v1  ;;  %v3606_v7 = vld [vmem:[%s4500_s1 + $0x58] sm:$0xff] (!%p166_p3)   ;;  %v3608_v9 = vld [vmem:[%s4500_s1 + $0x60] sm:$0xff] (!%p166_p3)   ;;  %v3610_v11 = vld [vmem:[%s4500_s1 + $0x68] sm:$0xff] (!%p166_p3)   ;;  %vm990_vm2 = vsmask.f32 (!%p166_p3), 6400  ;;  %vm618_vm3 = vcmask (!%p166_p3), 1046528  }
   0x9   : > { %3231 = vmatpush3.bf16.msra.mxu0 (!%p166_p3), %v3601_v2  ;;  %3088 = vmatprep.subr.bf16.mxu1 (!%p166_p3), %v3719_v1  ;;  %v3607_v8 = vld [vmem:[%s4500_s1 + $0x118] sm:$0xff] (!%p166_p3)   ;;  %v3609_v10 = vld [vmem:[%s4500_s1 + $0x120] sm:$0xff] (!%p166_p3)   ;;  %v3611_v19 = vld [vmem:[%s4500_s1 + $0x128] sm:$0xff] (!%p166_p3)   ;;  %vm1201_vm4 = vcmask (!%p166_p3), 1045504   ;;  %vm1784_vm5 = vcmask (!%p166_p3), 1044480  }
   0xa   : > { %3232 = vmatprep.subr.bf16.mxu0 (!%p166_p3), %v3719_v1  ;;  %3246 = vmatprep.mubr.msk.bf16.mxu0 (!%p166_p3), %vm3720_vm0, %v3719_v1  ;;  %v3612_v22 = vld [vmem:[%s4500_s1 + $0x70] sm:$0xff] (!%p166_p3)   ;;  %v3614_v36 = vld [vmem:[%s4500_s1 + $0x78] sm:$0xff] (!%p166_p3)   ;;  %v3620_v45 = vld [vmem:[%s4500_s1 + $0x140] sm:$0xff] (!%p166_p3)   ;;  %vm1573_vm6 = vsmask.f32 (!%p166_p3), 5376 }
   0xb   : > { %v3613_v25 = vld [vmem:[%s4500_s1 + $0x130] sm:$0xff] (!%p166_p3)   ;;  %v3615_v41 = vld [vmem:[%s4500_s1 + $0x138] sm:$0xff] (!%p166_p3)   ;;  %v3624_v53 = vld [vmem:[%s4500_s1] sm:$0xff] (!%p166_p3)  }
   0xc   : > { %3089 = vmatpush3.bf16.msra.mxu1 (!%p166_p3), %v3602_v3  ;;  %v3621_v54 = vld [vmem:[%s4500_s1 + $0x148] sm:$0xff] (!%p166_p3)   ;;  %v3625_v3 = vld [vmem:[%s4500_s1 + $0x150] sm:$0xff] (!%p166_p3)  }
   0xd   : > { %3233 = vmatpush3.bf16.msra.mxu0 (!%p166_p3), %v3603_v4  ;;  %3090 = vmatprep.subr.bf16.mxu1 (!%p166_p3), %v3719_v1  ;;  %v3626_v61 = vld [vmem:[%s4500_s1 + $0x8] sm:$0xff] (!%p166_p3)  }
   0xe   : > { %s4508_s12 = smov (!%p203_p4, %s3709_s12), 1  ;;  %3234 = vmatprep.subr.bf16.mxu0 %v3719_v1 }
   0xf   : > { %s3572_s28 = smul.u32 56, %s4508_s12  ;;  %s2937_s30 = sshll.u32 %s4508_s12, 5 }
  0x10   : > { %3091 = vmatpush3.bf16.msra.mxu1 %v3604_v5  ;;  %s4432_s6 = scalar_lea.vmem %s4501_s2, %s2937_s30  ;;  %s2703_s7 = sshll.u32 %s4508_s12, 1 }
  0x11   : > { %3235 = vmatpush3.bf16.msra.mxu0 %v3605_v6  ;;  %3092 = vmatprep.subr.bf16.mxu1 %v3719_v1  ;;  %s3802_s8 = scalar_lea.vmem %s4499_s0, %s3572_s28  ;;  %s226_s11 = scalar_lea.vmem %s4502_s3, %s2703_s7 }
  0x12   : > { %3236 = vmatprep.subr.bf16.mxu0 %v3719_v1  ;;  %v228_v12 = vld [vmem:[%s3802_s8] sm:$0xf]  ;;  %v3817_v13 = vld [vmem:[%s3802_s8 + $0x4] sm:$0xf]  ;;  %v3823_v15 = vld [vmem:[%s3802_s8 + $0x8] sm:$0xff]  }
  0x13   : > { %v3820_v14 = vcombine.low %v228_v12, %v3817_v13  ;;  %v3826_v16 = vld [vmem:[%s3802_s8 + $0xc] sm:$0xff]   ;;  %v766_v17 = vld [vmem:[%s3802_s8 + $0x4] sm:$0xe]  ;;  %v3830_v18 = vld [vmem:[%s3802_s8 + $0x8] sm:$0xf]  ;;  %v309_v26 = vshll.u32 %v3823_v15, 16 }
  0x14   : > { %3093 = vmatpush3.bf16.msra.mxu1 %v3606_v7  ;;  %v3838_v21 = vcombine.low %v766_v17, %v3830_v18  ;;  %v1000_v23 = vshrl.u32 %v3826_v16, 16  ;;  %v1003_v24 = vshll.u32 %v3826_v16, 16  ;;  %v3856_v35 = vld [vmem:[%s3802_s8 + $0x14] sm:$0xff]   ;;  %v313_v46 = vshrl.u32 %v3823_v15, 16  ;;  %v3880_v52 = vld [vmem:[%s3802_s8 + $0x1c] sm:$0xff]   ;;  %v3911_v6 = vld [vmem:[%s3802_s8 + $0x24] sm:$0xff]  }
  0x15   : > { %3237 = vmatpush3.bf16.msra.mxu0 %v3607_v8  ;;  %3094 = vmatprep.subr.bf16.mxu1 %v3719_v1  ;;  %v304_v20 = vshll.u32 %v3820_v14, 16  ;;  %v302_v29 = vshrl.u32 %v3820_v14, 16  ;;  %v311_v37 = vrot.slane %v309_v26, 1  ;;  %v3862_v39 = vld [vmem:[%s3802_s8 + $0x10] sm:$0xff]   ;;  %v1009_v40 = vshrl.u32 %v3856_v35, 16  ;;  %v3892_v57 = vld [vmem:[%s3802_s8 + $0x18] sm:$0xff]  }
  0x16   : > { %3238 = vmatprep.subr.bf16.mxu0 %v3719_v1  ;;  %v992_v27 = vshrl.u32 %v3838_v21, 16  ;;  %v995_v28 = vshll.u32 %v3838_v21, 16  ;;  %v1002_v33 = vrot.slane %v1000_v23, 1  ;;  %v1005_v34 = vrot.slane %v1003_v24, 2  ;;  %v3630_v7 = vld [vmem:[%s4500_s1 + $0x10] sm:$0xff]   ;;  %v3629_v12 = vld [vmem:[%s4500_s1 + $0x158] sm:$0xff]  }
  0x17   : > { %v306_v30 = vrot.slane %v304_v20, 1  ;;  %v1012_v44 = vshll.u32 %v3856_v35, 16  ;;  %v317_v48 = vshll.u32 %v3862_v39, 16  ;;  %v1011_v49 = vrot.slane %v1009_v40, 1  ;;  %v3631_v20 = vld [vmem:[%s4500_s1 + $0x18] sm:$0xff]  }
  0x18   : > { %3095 = vmatpush3.bf16.msra.mxu1 %v3608_v9  ;;  %v994_v31 = vrot.slane %v992_v27, 1  ;;  %v997_v32 = vrot.slane %v995_v28, 2  ;;  %v1006_v43 = vor.u32 %v1005_v34, %v1002_v33  ;;  %v315_v55 = vor.u32 %v313_v46, %v311_v37  ;;  %v3942_v26 = vld [vmem:[%s3802_s8 + $0x2c] ss:$0 sps:$4 sm:$0x33]  }
  0x19   : > { %3239 = vmatpush3.bf16.msra.mxu0 %v3609_v10  ;;  %3096 = vmatprep.subr.bf16.mxu1 %v3719_v1  ;;  %v307_v38 = vor.u32 %v306_v30, %v302_v29  ;;  %v1014_v51 = vrot.slane %v1012_v44, 2  ;;  %v319_v56 = vrot.slane %v317_v48, 1  ;;  %v1018_v59 = vshrl.u32 %v3880_v52, 16  ;;  %v3921_v10 = vld [vmem:[%s3802_s8 + $0x20] sm:$0xff]  }
  0x1a   : > { %3240 = vmatprep.subr.bf16.mxu0 %v3719_v1  ;;  %v998_v42 = vor.u32 %v997_v32, %v994_v31  ;;  %v1021_v60 = vshll.u32 %v3880_v52, 16  ;;  %v321_v63 = vshrl.u32 %v3862_v39, 16  ;;  %v325_v0 = vshll.u32 %v3892_v57, 16  ;;  %v3635_v30 = vld [vmem:[%s4500_s1 + $0x20] sm:$0xff]   ;;  %v3636_v32 = vld [vmem:[%s4500_s1 + $0x168] sm:$0xff]  }
  0x1b   : > { %v312_v47 = vsel %vm300_vm1, %v307_v38, %v311_v37  ;;  %v1015_v58 = vor.u32 %v1014_v51, %v1011_v49  ;;  %v320_v62 = vsel %vm300_vm1, %v315_v55, %v319_v56  ;;  %v1020_v4 = vrot.slane %v1018_v59, 1  ;;  %v3950_v31 = vld [vmem:[%s3802_s8 + $0x28] ss:$0 sps:$4 sm:$0x11]   ;;  %v3641_v51 = vld [vmem:[%s4500_s1 + $0x30] sm:$0xff]  }
  0x1c   : > { %3097 = vmatpush3.bf16.msra.mxu1 %v3610_v11  ;;  %v1007_v50 = vsel %vm990_vm2, %v998_v42, %v1006_v43  ;;  %v1023_v5 = vrot.slane %v1021_v60, 2  ;;  %v323_v8 = vor.u32 %v321_v63, %v319_v56  ;;  %v327_v9 = vrot.slane %v325_v0, 1  ;;  %v3643_v63 = vld [vmem:[%s4500_s1 + $0x38] sm:$0xff]  }
  0x1d   : > { %3241 = vmatpush3.bf16.msra.mxu0 %v3611_v19  ;;  %3098 = vmatprep.subr.bf16.mxu1 %v3719_v1  ;;  %v1016_v2 = vsel %vm990_vm2, %v1006_v43, %v1015_v58  ;;  %v1027_v17 = vshrl.u32 %v3911_v6, 16  ;;  %v1030_v19 = vshll.u32 %v3911_v6, 16  ;;  %v329_v23 = vshrl.u32 %v3892_v57, 16  ;;  %v3638_v43 = vld [vmem:[%s4500_s1 + $0x170] sm:$0xff]  }
  0x1e   : > { %3242 = vmatprep.subr.bf16.mxu0 %v3719_v1  ;;  %v1024_v11 = vor.u32 %v1023_v5, %v1020_v4  ;;  %v328_v24 = vsel %vm300_vm1, %v323_v8, %v327_v9  ;;  %v1036_v38 = vshrl.u32 %v3942_v26, 16  ;;  %v1039_v40 = vshll.u32 %v3942_v26, 16 }
  0x1f   : > { %v1029_v28 = vrot.slane %v1027_v17, 1  ;;  %v1032_v29 = vrot.slane %v1030_v19, 2  ;;  %v331_v33 = vor.u32 %v329_v23, %v327_v9  ;;  %v622_v42 = vrot.slane %v3862_v39, 1  ;;  %v597_v9 = vld [vmem:[%s3802_s8] sm:$0xe] }
  0x20   : > { %3099 = vmatpush3.bf16.msra.mxu1 %v3612_v22  ;;  %v3632_v22 = vld [vmem:[%s4500_s1 + $0x160] sm:$0xff]   ;;  %v1025_v27 = vsel %vm990_vm2, %v1015_v58, %v1024_v11  ;;  %v341_v46 = vshll.u32 %v3950_v31, 16  ;;  %v1038_v49 = vrot.slane %v1036_v38, 1  ;;  %v825_v59 = vrot.slane %v3856_v35, 1  ;;  %v4107_v38 = vld [vmem:[%s3802_s8 + $0x18] sm:$0xff]  }
  0x21   : > { %3243 = vmatpush3.bf16.msra.mxu0 %v3613_v25  ;;  %3100 = vmatprep.subr.bf16.mxu1 %v3719_v1  ;;  %v333_v25 = vshll.u32 %v3921_v10, 16  ;;  %v1033_v37 = vor.u32 %v1032_v29, %v1029_v28  ;;  %v1180_v58 = vld [vmem:[%s3802_s8 + $0x4] sm:$0xc]  ;;  %v1205_v23 = vrot.slane %v3856_v35, 2  ;;  %v3651_v35 = vld [vmem:[%s4500_s1 + $0x90] sm:$0xff]   ;;  %v3650_v28 = vld [vmem:[%s4500_s1 + $0x198] sm:$0xff]  }
  0x22   : > { %3244 = vmatprep.subr.bf16.mxu0 %v3719_v1  ;;  %v343_v56 = vrot.slane %v341_v46, 1  ;;  %v2838_v8 = vcombine.low %v1180_v58, %v3830_v18  ;;  %v1203_v18 = vrot.slane %v3826_v16, 2  ;;  %v3659_v58 = vld [vmem:[%s4500_s1 + $0x1b8] sm:$0xff]  }
  0x23   : > { %v335_v34 = vrot.slane %v333_v25, 1  ;;  %v1034_v48 = vsel %vm990_vm2, %v1024_v11, %v1033_v37  ;;  %v2758_v11 = vcombine.low %v597_v9, %v3817_v13  ;;  %v3648_v25 = vld [vmem:[%s4500_s1 + $0x190] sm:$0xff]   ;;  %v3667_v9 = vld [vmem:[%s4500_s1 + $0xc0] sm:$0xff]  }
  0x24   : > { %3101 = vmatpush3.bf16.msra.mxu1 %v3614_v36  ;;  %v3637_v36 = vld [vmem:[%s4500_s1 + $0x28] sm:$0xff]   ;;  %v1202_v17 = vrot.slane %v2838_v8, 2  ;;  %v3664_v8 = vld [vmem:[%s4500_s1 + $0x1c0] sm:$0xff]  }
  0x25   : > { %3245 = vmatpush3.bf16.msra.mxu0 %v3615_v41  ;;  %3122 = vmatprep.subr.bf16.mxu1 %v3719_v1  ;;  %v620_v41 = vrot.slane %v3823_v15, 1  ;;  %v336_v44 = vsel %vm300_vm1, %v331_v33, %v335_v34  ;;  %v3655_v33 = vld [vmem:[%s4500_s1 + $0x1a8] sm:$0xff]  }
  0x26   : > { %3266 = vmatprep.subr.bf16.mxu0 %v3719_v1  ;;  %v1204_v13 = vsel %vm1201_vm4, %v1202_v17, %v1203_v18  ;;  %v3669_v17 = vld [vmem:[%s4500_s1 + $0xc8] sm:$0xff]  }
  0x27   : > { %3103 = vmatmul.mubr.bf16.vlgmr.msra.gmra.mrb[0].mxu1 %v312_v47  ;;  %v3978_v47 = vsel %vm618_vm3, %v620_v41, %v622_v42 }
  0x28   : > { %3247 = vmatmul.mubr.bf16.vlgmr.msra.gmra.mrb[0].mxu0 %v1007_v50  ;;  %3106 = vmatprep.mubr.msk.bf16.mxu1 %vm3720_vm0, %v3719_v1  ;;  %v1041_v50 = vrot.slane %v1039_v40, 2  ;;  %v3691_v40 = vld [vmem:[%s3802_s8 + $0x2c] ss:$0 sps:$4 sm:$0x11]  }
  0x29   : > { %3267 = vmatpush3.bf16.msra.mxu0 %v3620_v45  ;;  %3250 = vmatprep.mubr.msk.bf16.mxu0 %vm3720_vm0, %v3719_v1  ;;  %v337_v45 = vshrl.u32 %v3921_v10, 16  ;;  %v831_v46 = vrot.slane %v3691_v40, 1 }
  0x2a   : > { %3268 = vmatprep.subr.bf16.mxu0 %v3719_v1  ;;  %3123 = vmatpush3.bf16.msra.mxu1 %v3624_v53  ;;  %v822_v53 = vrot.slane %v3838_v21, 1  ;;  %v1042_v60 = vor.u32 %v1041_v50, %v1038_v49  ;;  %v3642_v21 = vld [vmem:[%s4500_s1 + $0x178] sm:$0xff]   ;;  %v1350_v49 = vld [vmem:[%s3802_s8 + $0xc] sm:$0xf]  ;;  %v1763_v50 = vld [vmem:[%s3802_s8 + $0x8] sm:$0x8] }
  0x2b   : > { %3124 = vmatprep.subr.bf16.mxu1 %v3719_v1  ;;  %v339_v55 = vor.u32 %v337_v45, %v335_v34  ;;  %v3656_v34 = vld [vmem:[%s4500_s1 + $0xa8] sm:$0xff]  }
  0x2d   : > { %3269 = vmatpush3.bf16.msra.mxu0 %v3621_v54  ;;  %v823_v54 = vrot.slane %v3826_v16, 1  ;;  %v344_v4 = vsel %vm300_vm1, %v339_v55, %v343_v56  ;;  %v3646_v16 = vld [vmem:[%s4500_s1 + $0x188] sm:$0xff]  }
  0x2e   : > { %3270 = vmatprep.subr.bf16.mxu0 %v3719_v1  ;;  %3125 = vmatpush3.bf16.msra.mxu1 %v3626_v61 }
  0x2f   : > { %3107 = vmatmul.mubr.bf16.gmra.mrb[4].mxu1 %v320_v62  ;;  %3126 = vmatprep.subr.bf16.mxu1 %v3719_v1  ;;  %v3998_v61 = vsel %vm618_vm3, %v822_v53, %v823_v54  ;;  %v827_v62 = vrot.slane %v3880_v52, 1  ;;  %v4006_v0 = vsel %vm618_vm3, %v823_v54, %v825_v59  ;;  %v2918_v54 = vcombine.low %v1763_v50, %v1350_v49 }
  0x30   : > { %3251 = vmatmul.mubr.bf16.gmra.mrb[4].mxu0 %v1016_v2  ;;  %3110 = vmatprep.mubr.msk.bf16.mxu1 %vm3720_vm0, %v3719_v1  ;;  %v829_v2 = vrot.slane %v3911_v6, 1 }
  0x31   : > { %3271 = vmatpush3.bf16.msra.mxu0 %v3625_v3  ;;  %3254 = vmatprep.mubr.msk.bf16.mxu0 %vm3720_vm0, %v3719_v1  ;;  %v4011_v3 = vsel %vm618_vm3, %v825_v59, %v827_v62  ;;  %v1785_v59 = vrot.slane %v2918_v54, 3 }
  0x32   : > { %3272 = vmatprep.subr.bf16.mxu0 %v3719_v1  ;;  %3127 = vmatpush3.bf16.msra.mxu1 %v3630_v7  ;;  %v4017_v5 = vsel %vm618_vm3, %v827_v62, %v829_v2  ;;  %v1043_v7 = vsel %vm990_vm2, %v1033_v37, %v1042_v60  ;;  %v3657_v37 = vld [vmem:[%s4500_s1 + $0x1b0] sm:$0xff]   ;;  %v4128_v53 = vsel %vm618_vm3, %v829_v2, %v831_v46  ;;  %v3660_v60 = vld [vmem:[%s4500_s1 + $0xb8] sm:$0xff]  }
  0x33   : > { %3128 = vmatprep.subr.bf16.mxu1 %v3719_v1 }
  0x35   : > { %3273 = vmatpush3.bf16.msra.mxu0 %v3629_v12  ;;  %v619_v12 = vrot.slane %v2758_v11, 1  ;;  %v3665_v11 = vld [vmem:[%s4500_s1 + $0x1c8] sm:$0xff]  }
  0x36   : > { %3274 = vmatprep.subr.bf16.mxu0 %v3719_v1  ;;  %3129 = vmatpush3.bf16.msra.mxu1 %v3631_v20  ;;  %v3645_v20 = vld [vmem:[%s4500_s1 + $0x180] sm:$0xff]  }
  0x37   : > { %3111 = vmatmul.mubr.bf16.gmra.mrb[8].mxu1 %v328_v24  ;;  %3130 = vmatprep.subr.bf16.mxu1 %v3719_v1  ;;  %v4031_v19 = vsel %vm618_vm3, %v619_v12, %v620_v41  ;;  %v1206_v24 = vsel %vm1201_vm4, %v1203_v18, %v1205_v23  ;;  %v3658_v41 = vld [vmem:[%s4500_s1 + $0xb0] sm:$0xff]   ;;  %v1408_v12 = vrot.slane %v4107_v38, 2 }
  0x38   : > { %3255 = vmatmul.mubr.bf16.gmra.mrb[8].mxu0 %v1025_v27  ;;  %3114 = vmatprep.mubr.msk.bf16.mxu1 %vm3720_vm0, %v3719_v1  ;;  %v1207_v27 = vrot.slane %v3880_v52, 2  ;;  %v3653_v52 = vld [vmem:[%s4500_s1 + $0x1a0] sm:$0xff]  }
  0x39   : > { %3275 = vmatpush3.bf16.msra.mxu0 %v3632_v22  ;;  %3258 = vmatprep.mubr.msk.bf16.mxu0 %vm3720_vm0, %v3719_v1  ;;  %v3647_v22 = vld [vmem:[%s4500_s1 + $0x80] sm:$0xff]  }
  0x3a   : > { %3131 = vmatpush3.bf16.msra.mxu1 %v3635_v30  ;;  %3276 = vmatprep.subr.bf16.mxu0 %v3719_v1  ;;  %v1208_v29 = vsel %vm1201_vm4, %v1205_v23, %v1207_v27  ;;  %v3654_v30 = vld [vmem:[%s4500_s1 + $0xa0] sm:$0xff]  }
  0x3b   : > { %3132 = vmatprep.subr.bf16.mxu1 %v3719_v1 }
  0x3d   : > { %3277 = vmatpush3.bf16.msra.mxu0 %v3636_v32  ;;  %v1209_v32 = vrot.slane %v3911_v6, 2  ;;  %v1211_v6 = vrot.slane %v3942_v26, 2 }
  0x3e   : > { %3133 = vmatpush3.bf16.msra.mxu1 %v3637_v36  ;;  %3278 = vmatprep.subr.bf16.mxu0 %v3719_v1  ;;  %v4100_v36 = vld [vmem:[%s3802_s8 + $0x10] sm:$0xff]  }
  0x3f   : > { %3115 = vmatmul.mubr.bf16.gmra.mrb[12].mxu1 %v336_v44  ;;  %3134 = vmatprep.subr.bf16.mxu1 %v3719_v1  ;;  %v1786_v44 = vrot.slane %v4100_v36, 3  ;;  %v1210_v45 = vsel %vm1201_vm4, %v1207_v27, %v1209_v32  ;;  %v1212_v26 = vsel %vm1201_vm4, %v1209_v32, %v1211_v6  ;;  %v3678_v27 = vld [vmem:[%s4500_s1 + $0xe8] sm:$0xff]   ;;  %v1583_v40 = vshrl.u32 %v4100_v36, 16 }
  0x40   : > { %3259 = vmatmul.mubr.bf16.gmra.mrb[12].mxu0 %v1034_v48  ;;  %3118 = vmatprep.mubr.msk.bf16.mxu1 %vm3720_vm0, %v3719_v1  ;;  %v1788_v48 = vrot.slane %v4107_v38, 3  ;;  %v1592_v6 = vshrl.u32 %v4107_v38, 16 }
  0x41   : > { %3262 = vmatprep.mubr.msk.bf16.mxu0 %vm3720_vm0, %v3719_v1  ;;  %3279 = vmatpush3.bf16.msra.mxu0 %v3638_v43  ;;  %v4114_v43 = vld [vmem:[%s3802_s8 + $0x20] sm:$0xff]   ;;  %v4153_v62 = vsel %vm1784_vm5, %v1785_v59, %v1786_v44 }
  0x42   : > { %3135 = vmatpush3.bf16.msra.mxu1 %v3641_v51  ;;  %3280 = vmatprep.subr.bf16.mxu0 %v3719_v1  ;;  %v1790_v51 = vrot.slane %v4114_v43, 3  ;;  %v4131_v55 = vsel %vm1784_vm5, %v1786_v44, %v1788_v48 }
  0x43   : > { %3136 = vmatprep.subr.bf16.mxu1 %v3719_v1 }
  0x44   : > { %v4138_v56 = vsel %vm1784_vm5, %v1788_v48, %v1790_v51 }
  0x45   : > { %3281 = vmatpush3.bf16.msra.mxu0 %v3642_v21  ;;  %v1349_v21 = vld [vmem:[%s3802_s8 + $0x8] sm:$0xc] }
  0x46   : > { %3137 = vmatpush3.bf16.msra.mxu1 %v3643_v63  ;;  %3302 = vmatprep.subr.bf16.mxu0 %v3719_v1  ;;  %v4156_v63 = vcombine.low %v1349_v21, %v1350_v49  ;;  %v1585_v49 = vrot.slane %v1583_v40, 2  ;;  %v1594_v21 = vrot.slane %v1592_v6, 2 }
  0x47   : > { %3119 = vmatmul.mubr.bf16.gmra.mrb[16].mxu1 %v344_v4  ;;  %3158 = vmatprep.subr.bf16.mxu1 %v3719_v1  ;;  %v1406_v4 = vrot.slane %v4100_v36, 2 }
  0x48   : > { %3263 = vmatmul.mubr.bf16.gmra.mrb[16].mxu0 %v1043_v7  ;;  %3138 = vmatprep.mubr.msk.bf16.mxu1 %vm3720_vm0, %v3719_v1  ;;  %v1405_v2 = vrot.slane %v4156_v63, 2  ;;  %v1575_v32 = vshrl.u32 %v4156_v63, 16 }
  0x49   : > { %3282 = vmatprep.mubr.msk.bf16.mxu0 %vm3720_vm0, %v3719_v1  ;;  %v1409_v18 = vsel %vm1201_vm4, %v1406_v4, %v1408_v12 }
  0x4a   : > { %v1407_v7 = vsel %vm1201_vm4, %v1405_v2, %v1406_v4  ;;  %v1601_v2 = vshrl.u32 %v4114_v43, 16  ;;  %v1604_v4 = vshll.u32 %v4114_v43, 16 }
  0x4f   : > { %3139 = vmatmul.mubr.bf16.vlgmr.msra.gmra.mrb[0].mxu1 %v3820_v14  ;;  %v3649_v14 = vld [vmem:[%s4500_s1 + $0x88] sm:$0xff]  }
  0x50   : > { %3283 = vmatmul.mubr.bf16.vlgmr.msra.gmra.mrb[0].mxu0 %v1204_v13  ;;  %3142 = vmatprep.mubr.msk.bf16.mxu1 %vm3720_vm0, %v3719_v1  ;;  %v3672_v13 = vld [vmem:[%s4500_s1 + $0xd0] sm:$0xff]  }
  0x51   : > { %3303 = vmatpush3.bf16.msra.mxu0 %v3645_v20  ;;  %3286 = vmatprep.mubr.msk.bf16.mxu0 %vm3720_vm0, %v3719_v1  ;;  %v624_v20 = vrot.slane %v3892_v57, 1 }
  0x52   : > { %3304 = vmatprep.subr.bf16.mxu0 %v3719_v1  ;;  %3159 = vmatpush3.bf16.msra.mxu1 %v3647_v22  ;;  %v1410_v22 = vrot.slane %v4114_v43, 2 }
  0x53   : > { %3160 = vmatprep.subr.bf16.mxu1 %v3719_v1 }
  0x54   : > { %v1411_v23 = vsel %vm1201_vm4, %v1408_v12, %v1410_v22  ;;  %v3687_v12 = vld [vmem:[%s4500_s1 + $0x218] sm:$0xff]  }
  0x55   : > { %3305 = vmatpush3.bf16.msra.mxu0 %v3646_v16  ;;  %v3671_v16 = vld [vmem:[%s4500_s1 + $0x1d8] sm:$0xff]  }
  0x56   : > { %3306 = vmatprep.subr.bf16.mxu0 %v3719_v1  ;;  %3161 = vmatpush3.bf16.msra.mxu1 %v3649_v14  ;;  %v3674_v14 = vld [vmem:[%s4500_s1 + $0x1e0] sm:$0xff]  }
  0x57   : > { %3143 = vmatmul.mubr.bf16.gmra.mrb[4].mxu1 %v3823_v15  ;;  %3162 = vmatprep.subr.bf16.mxu1 %v3719_v1  ;;  %v3652_v15 = vld [vmem:[%s4500_s1 + $0x98] sm:$0xff]  }
  0x58   : > { %3287 = vmatmul.mubr.bf16.gmra.mrb[4].mxu0 %v1206_v24  ;;  %3146 = vmatprep.mubr.msk.bf16.mxu1 %vm3720_vm0, %v3719_v1  ;;  %v4220_v24 = vld [vmem:[%s3802_s8 + $0x28] sm:$0xff]  }
  0x59   : > { %3307 = vmatpush3.bf16.msra.mxu0 %v3648_v25  ;;  %3290 = vmatprep.mubr.msk.bf16.mxu0 %vm3720_vm0, %v3719_v1  ;;  %v3676_v25 = vld [vmem:[%s4500_s1 + $0xe0] sm:$0xff]  }
  0x5a   : > { %3308 = vmatprep.subr.bf16.mxu0 %v3719_v1  ;;  %3163 = vmatpush3.bf16.msra.mxu1 %v3651_v35  ;;  %v3677_v35 = vld [vmem:[%s4500_s1 + $0x1e8] sm:$0xff]  }
  0x5b   : > { %3164 = vmatprep.subr.bf16.mxu1 %v3719_v1 }
  0x5d   : > { %3309 = vmatpush3.bf16.msra.mxu0 %v3650_v28 }
  0x5e   : > { %3310 = vmatprep.subr.bf16.mxu0 %v3719_v1  ;;  %3165 = vmatpush3.bf16.msra.mxu1 %v3652_v15  ;;  %v3679_v15 = vld [vmem:[%s4500_s1 + $0x1f0] sm:$0xff]  }
  0x5f   : > { %3147 = vmatmul.mubr.bf16.gmra.mrb[8].mxu1 %v3862_v39  ;;  %3166 = vmatprep.subr.bf16.mxu1 %v3719_v1  ;;  %v626_v39 = vrot.slane %v3921_v10, 1 }
  0x60   : > { %3291 = vmatmul.mubr.bf16.gmra.mrb[8].mxu0 %v1208_v29  ;;  %3150 = vmatprep.mubr.msk.bf16.mxu1 %vm3720_vm0, %v3719_v1  ;;  %v3680_v29 = vld [vmem:[%s3802_s8 + $0x30] ss:$0 sps:$4 sm:$0x33]  }
  0x61   : > { %3311 = vmatpush3.bf16.msra.mxu0 %v3653_v52  ;;  %3294 = vmatprep.mubr.msk.bf16.mxu0 %vm3720_vm0, %v3719_v1  ;;  %v3681_v52 = vld [vmem:[%s4500_s1 + $0xf0] sm:$0xff]  }
  0x62   : > { %3167 = vmatpush3.bf16.msra.mxu1 %v3654_v30  ;;  %3312 = vmatprep.subr.bf16.mxu0 %v3719_v1  ;;  %v628_v30 = vrot.slane %v3950_v31, 1  ;;  %v3683_v31 = vld [vmem:[%s4500_s1 + $0xf8] sm:$0xff]  }
  0x63   : > { %3168 = vmatprep.subr.bf16.mxu1 %v3719_v1 }
  0x64   : > { %v629_v44 = vsel %vm618_vm3, %v626_v39, %v628_v30 }
  0x65   : > { %3313 = vmatpush3.bf16.msra.mxu0 %v3655_v33  ;;  %v1414_v33 = vrot.slane %v3680_v29, 2 }
  0x66   : > { %3169 = vmatpush3.bf16.msra.mxu1 %v3656_v34  ;;  %3314 = vmatprep.subr.bf16.mxu0 %v3719_v1  ;;  %v3682_v34 = vld [vmem:[%s4500_s1 + $0x1f8] sm:$0xff]  }
  0x67   : > { %3151 = vmatmul.mubr.bf16.gmra.mrb[12].mxu1 %v3892_v57  ;;  %3170 = vmatprep.subr.bf16.mxu1 %v3719_v1  ;;  %v625_v57 = vsel %vm618_vm3, %v622_v42, %v624_v20  ;;  %v1412_v42 = vrot.slane %v4220_v24, 2 }
  0x68   : > { %3295 = vmatmul.mubr.bf16.gmra.mrb[12].mxu0 %v1210_v45  ;;  %3154 = vmatprep.mubr.msk.bf16.mxu1 %vm3720_vm0, %v3719_v1  ;;  %v1577_v45 = vrot.slane %v1575_v32, 2 }
  0x69   : > { %3298 = vmatprep.mubr.msk.bf16.mxu0 %vm3720_vm0, %v3719_v1  ;;  %3315 = vmatpush3.bf16.msra.mxu0 %v3657_v37  ;;  %v1413_v28 = vsel %vm1201_vm4, %v1410_v22, %v1412_v42  ;;  %v1578_v37 = vshll.u32 %v4156_v63, 16  ;;  %v1415_v46 = vsel %vm1201_vm4, %v1412_v42, %v1414_v33  ;;  %v3692_v22 = vld [vmem:[%s3802_s8 + $0x30] ss:$0 sps:$4 sm:$0x77]  }
  0x6a   : > { %3171 = vmatpush3.bf16.msra.mxu1 %v3658_v41  ;;  %3316 = vmatprep.subr.bf16.mxu0 %v3719_v1  ;;  %v1586_v41 = vshll.u32 %v4100_v36, 16 }
  0x6b   : > { %3172 = vmatprep.subr.bf16.mxu1 %v3719_v1  ;;  %v1580_v48 = vrot.slane %v1578_v37, 3 }
  0x6c   : > { %v1588_v50 = vrot.slane %v1586_v41, 3 }
  0x6d   : > { %3317 = vmatpush3.bf16.msra.mxu0 %v3659_v58  ;;  %v1581_v36 = vor.u32 %v1580_v48, %v1577_v45  ;;  %v1595_v58 = vshll.u32 %v4107_v38, 16  ;;  %v3685_v38 = vld [vmem:[%s4500_s1 + $0x208] sm:$0xff]  }
  0x6e   : > { %3173 = vmatpush3.bf16.msra.mxu1 %v3660_v60  ;;  %3338 = vmatprep.subr.bf16.mxu0 %v3719_v1  ;;  %v1589_v54 = vor.u32 %v1588_v50, %v1585_v49  ;;  %v3684_v60 = vld [vmem:[%s4500_s1 + $0x200] sm:$0xff]   ;;  %v3721_v49 = vmov 1983009808  }
  0x6f   : > { %3155 = vmatmul.mubr.bf16.gmra.mrb[16].mxu1 %v3921_v10  ;;  %3194 = vmatprep.subr.bf16.mxu1 %v3719_v1  ;;  %v627_v10 = vsel %vm618_vm3, %v624_v20, %v626_v39  ;;  %v1944_v50 = vunpack.c.l.s4 %v3721_v49 }
  0x70   : > { %3299 = vmatmul.mubr.bf16.gmra.mrb[16].mxu0 %v1212_v26  ;;  %3174 = vmatprep.mubr.msk.bf16.mxu1 %vm3720_vm0, %v3719_v1  ;;  %v1590_v59 = vsel %vm1573_vm6, %v1581_v36, %v1589_v54  ;;  %v1597_v26 = vrot.slane %v1595_v58, 3  ;;  %v1946_v36 = vlaneseq }
  0x71   : > { %3318 = vmatprep.mubr.msk.bf16.mxu0 %vm3720_vm0, %v3719_v1 }
  0x72   : > { %v1598_v63 = vor.u32 %v1597_v26, %v1594_v21 }
  0x77   : > { %3175 = vmatmul.mubr.bf16.vlgmr.msra.gmra.mrb[0].mxu1 %v4031_v19  ;;  %v3668_v19 = vld [vmem:[%s4500_s1 + $0x1d0] sm:$0xff]  }
  0x78   : > { %3319 = vmatmul.mubr.bf16.vlgmr.msra.gmra.mrb[0].mxu0 %v1407_v7  ;;  %3178 = vmatprep.mubr.msk.bf16.mxu1 %vm3720_vm0, %v3719_v1  ;;  %v3686_v7 = vld [vmem:[%s4500_s1 + $0x210] sm:$0xff]  }
  0x79   : > { %3339 = vmatpush3.bf16.msra.mxu0 %v3664_v8  ;;  %3322 = vmatprep.mubr.msk.bf16.mxu0 %vm3720_vm0, %v3719_v1  ;;  %v1603_v8 = vrot.slane %v1601_v2, 2  ;;  %v1947_v2 = vshrl.u32 %v1946_v36, 7 }
  0x7a   : > { %3340 = vmatprep.subr.bf16.mxu0 %v3719_v1  ;;  %3195 = vmatpush3.bf16.msra.mxu1 %v3667_v9  ;;  %v1606_v9 = vrot.slane %v1604_v4, 3 }
  0x7b   : > { %3196 = vmatprep.subr.bf16.mxu1 %v3719_v1 }
  0x7d   : > { %3341 = vmatpush3.bf16.msra.mxu0 %v3665_v11  ;;  %v1607_v11 = vor.u32 %v1606_v9, %v1603_v8 }
  0x7e   : > { %3342 = vmatprep.subr.bf16.mxu0 %v3719_v1  ;;  %3197 = vmatpush3.bf16.msra.mxu1 %v3669_v17  ;;  %v1610_v17 = vshrl.u32 %v4220_v24, 16 }
  0x7f   : > { %3179 = vmatmul.mubr.bf16.gmra.mrb[4].mxu1 %v3978_v47  ;;  %3198 = vmatprep.subr.bf16.mxu1 %v3719_v1  ;;  %v3673_v47 = vld [vmem:[%s4500_s1 + $0xd8] sm:$0xff]  }
  0x80   : > { %3323 = vmatmul.mubr.bf16.gmra.mrb[4].mxu0 %v1409_v18  ;;  %3182 = vmatprep.mubr.msk.bf16.mxu1 %vm3720_vm0, %v3719_v1  ;;  %v1608_v18 = vsel %vm1573_vm6, %v1598_v63, %v1607_v11 }
  0x81   : > { %3343 = vmatpush3.bf16.msra.mxu0 %v3668_v19  ;;  %3326 = vmatprep.mubr.msk.bf16.mxu0 %vm3720_vm0, %v3719_v1  ;;  %v3688_v19 = vld [vmem:[%s4500_s1 + $0x220] sm:$0xff]  }
  0x82   : > { %3344 = vmatprep.subr.bf16.mxu0 %v3719_v1  ;;  %3199 = vmatpush3.bf16.msra.mxu1 %v3672_v13  ;;  %v1612_v13 = vrot.slane %v1610_v17, 2 }
  0x83   : > { %3200 = vmatprep.subr.bf16.mxu1 %v3719_v1 }
  0x85   : > { %3345 = vmatpush3.bf16.msra.mxu0 %v3671_v16 }
  0x86   : > { %3346 = vmatprep.subr.bf16.mxu0 %v3719_v1  ;;  %3201 = vmatpush3.bf16.msra.mxu1 %v3673_v47  ;;  %v3689_v47 = vld [vmem:[%s4500_s1 + $0x228] sm:$0xff]  }
  0x87   : > { %3183 = vmatmul.mubr.bf16.gmra.mrb[8].mxu1 %v625_v57  ;;  %3202 = vmatprep.subr.bf16.mxu1 %v3719_v1  ;;  %v1619_v57 = vshrl.u32 %v3692_v22, 16 }
  0x88   : > { %3327 = vmatmul.mubr.bf16.gmra.mrb[8].mxu0 %v1411_v23  ;;  %3186 = vmatprep.mubr.msk.bf16.mxu1 %vm3720_vm0, %v3719_v1  ;;  %v1622_v23 = vshll.u32 %v3692_v22, 16 }
  0x89   : > { %3347 = vmatpush3.bf16.msra.mxu0 %v3674_v14  ;;  %3330 = vmatprep.mubr.msk.bf16.mxu0 %vm3720_vm0, %v3719_v1  ;;  %v3690_v14 = vld [vmem:[%s4500_s1 + $0x230] sm:$0xff]  }
  0x8a   : > { %3203 = vmatpush3.bf16.msra.mxu1 %v3676_v25  ;;  %3348 = vmatprep.subr.bf16.mxu0 %v3719_v1  ;;  %v1621_v25 = vrot.slane %v1619_v57, 2  ;;  %v1624_v39 = vrot.slane %v1622_v23, 3 }
  0x8b   : > { %3204 = vmatprep.subr.bf16.mxu1 %v3719_v1 }
  0x8c   : > { %v1625_v42 = vor.u32 %v1624_v39, %v1621_v25 }
  0x8d   : > { %3349 = vmatpush3.bf16.msra.mxu0 %v3677_v35  ;;  %v3693_v35 = vld [vmem:[%s4500_s1 + $0x238] sm:$0xff]  }
  0x8e   : > { %3205 = vmatpush3.bf16.msra.mxu1 %v3678_v27  ;;  %3350 = vmatprep.subr.bf16.mxu0 %v3719_v1  ;;  %v1792_v27 = vrot.slane %v4220_v24, 3 }
  0x8f   : > { %3187 = vmatmul.mubr.bf16.gmra.mrb[12].mxu1 %v627_v10  ;;  %3206 = vmatprep.subr.bf16.mxu1 %v3719_v1 }
  0x90   : > { %3331 = vmatmul.mubr.bf16.gmra.mrb[12].mxu0 %v1413_v28  ;;  %3190 = vmatprep.mubr.msk.bf16.mxu1 %vm3720_vm0, %v3719_v1  ;;  %v1793_v10 = vsel %vm1784_vm5, %v1790_v51, %v1792_v27 }
  0x91   : > { %3334 = vmatprep.mubr.msk.bf16.mxu0 %vm3720_vm0, %v3719_v1  ;;  %3351 = vmatpush3.bf16.msra.mxu0 %v3679_v15 }
  0x92   : > { %3207 = vmatpush3.bf16.msra.mxu1 %v3681_v52  ;;  %3352 = vmatprep.subr.bf16.mxu0 %v3719_v1 }
  0x93   : > { %3208 = vmatprep.subr.bf16.mxu1 %v3719_v1 }
  0x95   : > { %3353 = vmatpush3.bf16.msra.mxu0 %v3682_v34 }
  0x96   : > { %3209 = vmatpush3.bf16.msra.mxu1 %v3683_v31  ;;  %3374 = vmatprep.subr.bf16.mxu0 %v3719_v1 }
  0x97   : > { %3191 = vmatmul.mubr.bf16.gmra.mrb[16].mxu1 %v629_v44  ;;  %3410 = vmatprep.subr.bf16.mxu1 %v3719_v1 }
  0x98   : > { %3335 = vmatmul.mubr.bf16.gmra.mrb[16].mxu0 %v1415_v46  ;;  %3210 = vmatprep.mubr.msk.bf16.mxu1 %vm3720_vm0, %v3719_v1 }
  0x99   : > { %3354 = vmatprep.mubr.msk.bf16.mxu0 %vm3720_vm0, %v3719_v1 }
  0x9f   : > { %3211 = vmatmul.mubr.bf16.vlgmr.msra.gmra.mrb[0].mxu1 %v3998_v61  ;;  %v1599_v61 = vsel %vm1573_vm6, %v1589_v54, %v1598_v63  ;;  %v1945_v63 = vunpack.c.0.s8 %v1944_v50 }
  0xa0   : > { %3355 = vmatmul.mubr.bf16.vlgmr.msra.gmra.mrb[0].mxu0 %v1590_v59  ;;  %3214 = vmatprep.mubr.msk.bf16.mxu1 %vm3720_vm0, %v3719_v1 }
  0xa1   : > { %3375 = vmatpush3.bf16.msra.mxu0 %v3684_v60  ;;  %3358 = vmatprep.mubr.msk.bf16.mxu0 %vm3720_vm0, %v3719_v1 }
  0xa2   : > { %3376 = vmatprep.subr.bf16.mxu0 %v3719_v1  ;;  %3418 = vmatpush3.bf16.msra.mxu1 %v3684_v60 }
  0xa3   : > { %3411 = vmatprep.subr.bf16.mxu1 %v3719_v1 }
  0xa5   : > { %3377 = vmatpush3.bf16.msra.mxu0 %v3685_v38 }
  0xa6   : > { %3378 = vmatprep.subr.bf16.mxu0 %v3719_v1  ;;  %3419 = vmatpush3.bf16.msra.mxu1 %v3685_v38 }
  0xa7   : > { %3215 = vmatmul.mubr.bf16.gmra.mrb[4].mxu1 %v4006_v0  ;;  %3412 = vmatprep.subr.bf16.mxu1 %v3719_v1  ;;  %v1613_v0 = vshll.u32 %v4220_v24, 16 }
  0xa8   : > { %3359 = vmatmul.mubr.bf16.gmra.mrb[4].mxu0 %v1599_v61  ;;  %3218 = vmatprep.mubr.msk.bf16.mxu1 %vm3720_vm0, %v3719_v1 }
  0xa9   : > { %3379 = vmatpush3.bf16.msra.mxu0 %v3686_v7  ;;  %3362 = vmatprep.mubr.msk.bf16.mxu0 %vm3720_vm0, %v3719_v1  ;;  %v1615_v20 = vrot.slane %v1613_v0, 3 }
  0xaa   : > { %3380 = vmatprep.subr.bf16.mxu0 %v3719_v1  ;;  %3420 = vmatpush3.bf16.msra.mxu1 %v3686_v7  ;;  %v4378_v7 = vsub.s32 %v1945_v63, %v1947_v2 }
  0xab   : > { %3413 = vmatprep.subr.bf16.mxu1 %v3719_v1  ;;  %v1616_v16 = vor.u32 %v1615_v20, %v1612_v13 }
  0xad   : > { %3381 = vmatpush3.bf16.msra.mxu0 %v3687_v12 }
  0xae   : > { %3382 = vmatprep.subr.bf16.mxu0 %v3719_v1  ;;  %3421 = vmatpush3.bf16.msra.mxu1 %v3687_v12 }
  0xaf   : > { %3219 = vmatmul.mubr.bf16.gmra.mrb[8].mxu1 %v4011_v3  ;;  %3414 = vmatprep.subr.bf16.mxu1 %v3719_v1  ;;  %v1617_v3 = vsel %vm1573_vm6, %v1607_v11, %v1616_v16 }
  0xb0   : > { %3363 = vmatmul.mubr.bf16.gmra.mrb[8].mxu0 %v1608_v18  ;;  %3222 = vmatprep.mubr.msk.bf16.mxu1 %vm3720_vm0, %v3719_v1 }
  0xb1   : > { %3383 = vmatpush3.bf16.msra.mxu0 %v3688_v19  ;;  %3366 = vmatprep.mubr.msk.bf16.mxu0 %vm3720_vm0, %v3719_v1 }
  0xb2   : > { %3422 = vmatpush3.bf16.msra.mxu1 %v3688_v19  ;;  %3384 = vmatprep.subr.bf16.mxu0 %v3719_v1 }
  0xb3   : > { %3415 = vmatprep.subr.bf16.mxu1 %v3719_v1 }
  0xb5   : > { %3385 = vmatpush3.bf16.msra.mxu0 %v3689_v47 }
  0xb6   : > { %3423 = vmatpush3.bf16.msra.mxu1 %v3689_v47  ;;  %3386 = vmatprep.subr.bf16.mxu0 %v3719_v1 }
  0xb7   : > { %3223 = vmatmul.mubr.bf16.gmra.mrb[12].mxu1 %v4017_v5  ;;  %3416 = vmatprep.subr.bf16.mxu1 %v3719_v1  ;;  %v1626_v5 = vsel %vm1573_vm6, %v1616_v16, %v1625_v42 }
  0xb8   : > { %3367 = vmatmul.mubr.bf16.gmra.mrb[12].mxu0 %v1617_v3  ;;  %3226 = vmatprep.mubr.msk.bf16.mxu1 %vm3720_vm0, %v3719_v1 }
  0xb9   : > { %3370 = vmatprep.mubr.msk.bf16.mxu0 %vm3720_vm0, %v3719_v1  ;;  %3387 = vmatpush3.bf16.msra.mxu0 %v3690_v14 }
  0xba   : > { %3424 = vmatpush3.bf16.msra.mxu1 %v3690_v14  ;;  %3388 = vmatprep.subr.bf16.mxu0 %v3719_v1 }
  0xbb   : > { %3417 = vmatprep.subr.bf16.mxu1 %v3719_v1 }
  0xbd   : > { %3389 = vmatpush3.bf16.msra.mxu0 %v3693_v35 }
  0xbe   : > { %3425 = vmatpush3.bf16.msra.mxu1 %v3693_v35 }
  0xbf   : > { %3227 = vmatmul.mubr.bf16.gmra.mrb[16].mxu1 %v4128_v53  ;;  %v1794_v53 = vrot.slane %v3692_v22, 3 }
  0xc0   : > { %3371 = vmatmul.mubr.bf16.gmra.mrb[16].mxu0 %v1626_v5  ;;  %3402 = vmatprep.mubr.msk.bf16.mxu1 %vm3720_vm0, %v3719_v1 }
  0xc1   : > { %3390 = vmatprep.mubr.msk.bf16.mxu0 %vm3720_vm0, %v3719_v1  ;;  %v1795_v28 = vsel %vm1784_vm5, %v1792_v27, %v1794_v53 }
  0xc7   : > { %3403 = vmatmul.mubr.bf16.vlgmr.msra.gmra.mrb[20].mxu1 %v1793_v10 }
  0xc8   : > { %3391 = vmatmul.mubr.bf16.vlgmr.msra.gmra.mrb[0].mxu0 %v4153_v62  ;;  %3406 = vmatprep.mubr.msk.bf16.mxu1 %vm3720_vm0, %v3719_v1 }
  0xc9   : > { %3394 = vmatprep.mubr.msk.bf16.mxu0 %vm3720_vm0, %v3719_v1 }
  0xcf   : > { %3407 = vmatmul.mubr.bf16.gmra.mrb[24].mxu1 %v1795_v28 }
  0xd0   : > { %3395 = vmatmul.mubr.bf16.gmra.mrb[4].mxu0 %v4131_v55 }
  0xd1   : > { %3398 = vmatprep.mubr.msk.bf16.mxu0 %vm3720_vm0, %v3719_v1 }
  0xd8   : > { %3399 = vmatmul.mubr.bf16.gmra.mrb[8].mxu0 %v4138_v56 }
 0x172   : > { %v920_v43 = vpop.f32.mrb[0].mxu1 }
 0x173   : > { %v3212_v51 = vpop.f32.mrb[1].mxu1 }
 0x174   : > { %v923_v62 = vpop.f32.mrb[2].mxu1 }
 0x175   : > { %v3213_v24 = vpop.f32.mrb[3].mxu1 }
 0x17a   : > { %v4366_v15 = vpop.f32.mrb[4].mxu1 }
 0x17b   : > { %v3216_v29 = vpop.f32.mrb[5].mxu1 }
 0x17c   : > { %v4368_v52 = vpop.f32.mrb[6].mxu1 }
 0x17d   : > { %v3217_v30 = vpop.f32.mrb[7].mxu1 }
 0x182   : > { %v4370_v32 = vpop.f32.mrb[8].mxu1 }
 0x183   : > { %v3220_v33 = vpop.f32.mrb[9].mxu1 }
 0x184   : > { %v4372_v34 = vpop.f32.mrb[10].mxu1 }
 0x185   : > { %v3221_v55 = vpop.f32.mrb[11].mxu1 }
 0x18a   : > { %v944_v37 = vpop.f32.mrb[12].mxu1 }
 0x18b   : > { %v1738_v1 = vpop.f32.mrb[12].mxu0  ;;  %v3224_v40 = vpop.f32.mrb[13].mxu1 }
 0x18c   : > { %v3432_v56 = vadd.f32 %v1738_v1, %v944_v37  ;;  %v3368_v41 = vpop.f32.mrb[13].mxu0  ;;  %v947_v31 = vpop.f32.mrb[14].mxu1 }
 0x18d   : > { %v1741_v44 = vpop.f32.mrb[14].mxu0  ;;  %v3225_v45 = vpop.f32.mrb[15].mxu1 }
 0x18e   : > { %v3434_v46 = vadd.f32 %v1741_v44, %v947_v31  ;;  %v3369_v48 = vpop.f32.mrb[15].mxu0 }
 0x192   : > { %v952_v54 = vpop.f32.mrb[16].mxu1 }
 0x193   : > { %v1746_v6 = vpop.f32.mrb[16].mxu0  ;;  %v3228_v58 = vpop.f32.mrb[17].mxu1 }
 0x194   : > { %v4374_v59 = vadd.f32 %v1746_v6, %v952_v54  ;;  %v3372_v60 = vpop.f32.mrb[17].mxu0  ;;  %v955_v21 = vpop.f32.mrb[18].mxu1 }
 0x195   : > { %v1749_v26 = vpop.f32.mrb[18].mxu0  ;;  %v3229_v38 = vpop.f32.mrb[19].mxu1 }
 0x196   : > { %v4376_v4 = vadd.f32 %v1749_v26, %v955_v21  ;;  %v3373_v61 = vpop.f32.mrb[19].mxu0 }
 0x19a   : > { %v1907_v8 = vpop.f32.mrb[20].mxu1 }
 0x19b   : > { %v1883_v9 = vpop.f32.mrb[0].mxu0  ;;  %v3433_v11 = vadd.f32 %v3432_v56, %v1907_v8  ;;  %v3404_v12 = vpop.f32.mrb[21].mxu1 }
 0x19c   : > { %v3426_v17 = vadd.f32 %v1883_v9, %v920_v43  ;;  %v3392_v0 = vpop.f32.mrb[1].mxu0  ;;  %v1910_v18 = vpop.f32.mrb[22].mxu1 }
 0x19d   : > { %v2042_v19 = vcombine.high %v3433_v11, %v3433_v11  ;;  %v2049_v13 = vrot.slane %v3433_v11, %v4378_v7  ;;  %v1886_v20 = vpop.f32.mrb[2].mxu0  ;;  %v3435_v22 = vadd.f32 %v3434_v46, %v1910_v18  ;;  %v3405_v16 = vpop.f32.mrb[23].mxu1 }
 0x19e   : > { %v1942_v47 = vcombine.high %v3426_v17, %v3426_v17  ;;  %v1949_v57 = vrot.slane %v3426_v17, %v4378_v7  ;;  %v3427_v23 = vadd.f32 %v1886_v20, %v923_v62  ;;  %v3393_v3 = vpop.f32.mrb[3].mxu0 }
 0x19f   : > { %v2056_v14 = vrot.slane %v2042_v19, %v4378_v7  ;;  %v2057_v25 = vcombine.high %v2049_v13, %v2049_v13  ;;  %v2059_v39 = vcombine.high %v3435_v22, %v3435_v22  ;;  %v2066_v42 = vrot.slane %v3435_v22, %v4378_v7 }
 0x1a0   : > { %v1956_v35 = vrot.slane %v1942_v47, %v4378_v7  ;;  %v1957_v5 = vcombine.high %v1949_v57, %v1949_v57  ;;  %v2338_v27 = vmul.f32 %v1949_v57, %v1949_v57  ;;  %v1959_v10 = vcombine.high %v3427_v23, %v3427_v23 }
 0x1a1   : > { %v2225_v53 = vcombine.low %v2057_v25, %v2056_v14  ;;  %v2358_v28 = vmul.f32 %v2057_v25, %v2057_v25  ;;  %v2359_v43 = vmul.f32 %v2056_v14, %v2056_v14  ;;  %v1966_v51 = vrot.slane %v3427_v23, %v4378_v7 }
 0x1a2   : > { %v1958_v24 = vcombine.high %v1956_v35, %v1956_v35  ;;  %v2140_v29 = vcombine.low %v1949_v57, %v1957_v5  ;;  %v2339_v62 = vmul.f32 %v1957_v5, %v1957_v5  ;;  %v2340_v30 = vmul.f32 %v1956_v35, %v1956_v35  ;;  %v1915_v33 = vpop.f32.mrb[24].mxu1 }
 0x1a3   : > { %v2233_v55 = vrot.slane %v2225_v53, %v4378_v7  ;;  %v2487_v37 = vcombine.low %v2358_v28, %v2359_v43  ;;  %v1973_v1 = vrot.slane %v1959_v10, %v4378_v7  ;;  %v1974_v40 = vcombine.high %v1966_v51, %v1966_v51  ;;  %v1891_v56 = vpop.f32.mrb[4].mxu0  ;;  %v3408_v41 = vpop.f32.mrb[25].mxu1 }
 0x1a4   : > { %v2141_v31 = vcombine.low %v1956_v35, %v1958_v24  ;;  %v2148_v44 = vrot.slane %v2140_v29, %v4378_v7  ;;  %v2341_v45 = vmul.f32 %v1958_v24, %v1958_v24  ;;  %v2402_v46 = vcombine.low %v2338_v27, %v2339_v62  ;;  %v3396_v48 = vpop.f32.mrb[5].mxu0  ;;  %v4389_v49 = vpop.f32.mrb[26].mxu1 }
 0x1a5   : > { %v4392_v50 = vrot.slane %v2487_v37, %v4378_v7  ;;  %v2157_v36 = vcombine.low %v1974_v40, %v1973_v1  ;;  %v2342_v54 = vmul.f32 %v1974_v40, %v1974_v40  ;;  %v2343_v6 = vmul.f32 %v1973_v1, %v1973_v1  ;;  %v1894_v58 = vpop.f32.mrb[6].mxu0  ;;  %v3409_v60 = vpop.f32.mrb[27].mxu1 }
 0x1a6   : > { %v2155_v21 = vrot.slane %v2141_v31, %v4378_v7  ;;  %v2403_v26 = vcombine.low %v2340_v30, %v2341_v45  ;;  %v4396_v38 = vrot.slane %v2402_v46, %v4378_v7  ;;  %v2058_v63 = vcombine.high %v2056_v14, %v2056_v14  ;;  %v3397_v2 = vpop.f32.mrb[7].mxu0 }
 0x1a7   : > { %v2165_v61 = vrot.slane %v2157_v36, %v4378_v7  ;;  %v2419_v8 = vcombine.low %v2342_v54, %v2343_v6  ;;  %v2073_v9 = vrot.slane %v2059_v39, %v4378_v7  ;;  %v2361_v11 = vmul.f32 %v2066_v42, %v2066_v42 }
 0x1a8   : > { %v2156_v12 = vcombine.low %v2148_v44, %v2155_v21  ;;  %v4401_v17 = vrot.slane %v2403_v26, %v4378_v7  ;;  %v2226_v0 = vcombine.low %v2058_v63, %v2066_v42  ;;  %v2360_v18 = vmul.f32 %v2058_v63, %v2058_v63 }
 0x1a9   : > { %v2427_v19 = vrot.slane %v2419_v8, %v4378_v7  ;;  %v2074_v13 = vcombine.high %v2073_v9, %v2073_v9  ;;  %v2362_v20 = vmul.f32 %v2073_v9, %v2073_v9  ;;  %v3428_v22 = vadd.f32 %v1891_v56, %v4366_v15 }
 0x1aa   : > { %v2418_v16 = vcombine.low %v4396_v38, %v4401_v17  ;;  %v2240_v47 = vrot.slane %v2226_v0, %v4378_v7  ;;  %v2488_v57 = vcombine.low %v2360_v18, %v2361_v11  ;;  %v1975_v23 = vcombine.high %v1973_v1, %v1973_v1 }
 0x1ab   : > { %v2242_v3 = vcombine.low %v2073_v9, %v2074_v13  ;;  %v2363_v14 = vmul.f32 %v2074_v13, %v2074_v13  ;;  %v1976_v25 = vcombine.high %v3428_v22, %v3428_v22  ;;  %v1983_v39 = vrot.slane %v3428_v22, %v4378_v7  ;;  %v1899_v42 = vpop.f32.mrb[8].mxu0 }
 0x1ac   : > { %v4409_v35 = vcombine.low %v2233_v55, %v2240_v47  ;;  %v4412_v5 = vrot.slane %v2488_v57, %v4378_v7  ;;  %v2344_v15 = vmul.f32 %v1975_v23, %v1975_v23  ;;  %v3437_v27 = vadd.f32 %v4374_v59, %v1915_v33  ;;  %v3400_v10 = vpop.f32.mrb[9].mxu0 }
 0x1ad   : > { %v2250_v53 = vrot.slane %v2242_v3, %v4378_v7  ;;  %v2504_v28 = vcombine.low %v2362_v20, %v2363_v14  ;;  %v1990_v43 = vrot.slane %v1976_v25, %v4378_v7  ;;  %v2158_v51 = vcombine.low %v1975_v23, %v1983_v39  ;;  %v4417_v24 = vpop.f32.mrb[10].mxu0 }
 0x1ae   : > { %v2503_v29 = vcombine.low %v4392_v50, %v4412_v5  ;;  %v2345_v62 = vmul.f32 %v1983_v39, %v1983_v39  ;;  %v2075_v30 = vcombine.high %v3437_v27, %v3437_v27  ;;  %v2082_v55 = vrot.slane %v3437_v27, %v4378_v7  ;;  %v3401_v37 = vpop.f32.mrb[11].mxu0 }
 0x1af   : > { %v4423_v1 = vrot.slane %v2504_v28, %v4378_v7  ;;  %v1991_v59 = vcombine.high %v1990_v43, %v1990_v43  ;;  %v2172_v33 = vrot.slane %v2158_v51, %v4378_v7  ;;  %v2346_v40 = vmul.f32 %v1990_v43, %v1990_v43 }
 0x1b0   : > { %v2420_v56 = vcombine.low %v2344_v15, %v2345_v62  ;;  %v2089_v41 = vrot.slane %v2075_v30, %v4378_v7  ;;  %v2090_v31 = vcombine.high %v2082_v55, %v2082_v55  ;;  %v2364_v44 = vmul.f32 %v2082_v55, %v2082_v55 }
 0x1b1   : > { %v2173_v45 = vcombine.low %v2165_v61, %v2172_v33  ;;  %v2174_v46 = vcombine.low %v1990_v43, %v1991_v59  ;;  %v2347_v48 = vmul.f32 %v1991_v59, %v1991_v59  ;;  %v3429_v36 = vadd.f32 %v1894_v58, %v4368_v52 }
 0x1b2   : > { %v2434_v54 = vrot.slane %v2420_v56, %v4378_v7  ;;  %v2091_v6 = vcombine.high %v2089_v41, %v2089_v41  ;;  %v2243_v60 = vcombine.low %v2082_v55, %v2090_v31  ;;  %v2365_v21 = vmul.f32 %v2090_v31, %v2090_v31 }
 0x1b3   : > { %v2182_v26 = vrot.slane %v2174_v46, %v4378_v7  ;;  %v2949_v38 = vpack.c.bf16 %v2173_v45, %v2156_v12  ;;  %v2324_v63 = vadd.f32 %v2173_v45, %v2156_v12  ;;  %v2436_v2 = vcombine.low %v2346_v40, %v2347_v48 }
 0x1b4   : > { %v2435_v61 = vcombine.low %v2427_v19, %v2434_v54  ;;  %v2257_v8 = vrot.slane %v2243_v60, %v4378_v7  ;;  %v2366_v52 = vmul.f32 %v2091_v6, %v2091_v6  ;;  %v2505_v58 = vcombine.low %v2364_v44, %v2365_v21 }
 0x1b5   : > { %2950 = vst [vmem:[%s4432_s6] sm:$0xff] %v2949_v38   ;;  %v2444_v9 = vrot.slane %v2436_v2, %v4378_v7  ;;  %v1992_v11 = vcombine.high %v3429_v36, %v3429_v36  ;;  %v1999_v17 = vrot.slane %v3429_v36, %v4378_v7  ;;  %v3439_v0 = vadd.f32 %v4376_v4, %v4389_v49 }
 0x1b6   : > { %v2546_v18 = vadd.f32 %v2435_v61, %v2418_v16  ;;  %v4442_v13 = vcombine.low %v2250_v53, %v2257_v8  ;;  %v4445_v12 = vrot.slane %v2505_v58, %v4378_v7  ;;  %v3430_v19 = vadd.f32 %v1899_v42, %v4370_v32 }
 0x1b7   : > { %v2006_v20 = vrot.slane %v1992_v11, %v4378_v7  ;;  %v2007_v22 = vcombine.high %v1999_v17, %v1999_v17  ;;  %v2348_v47 = vmul.f32 %v1999_v17, %v1999_v17  ;;  %v2092_v57 = vcombine.high %v3439_v0, %v3439_v0 }
 0x1b8   : > { %v2520_v23 = vcombine.low %v4423_v1, %v4445_v12  ;;  %v2099_v3 = vrot.slane %v3439_v0, %v4378_v7  ;;  %v2009_v14 = vcombine.high %v3430_v19, %v3430_v19  ;;  %v2016_v4 = vrot.slane %v3430_v19, %v4378_v7 }
 0x1b9   : > { %v2008_v49 = vcombine.high %v2006_v20, %v2006_v20  ;;  %v2175_v16 = vcombine.low %v1999_v17, %v2007_v22  ;;  %v2349_v25 = vmul.f32 %v2007_v22, %v2007_v22  ;;  %v2106_v39 = vrot.slane %v2092_v57, %v4378_v7 }
 0x1ba   : > { %v2107_v15 = vcombine.high %v2099_v3, %v2099_v3  ;;  %v2259_v32 = vcombine.low %v2091_v6, %v2099_v3  ;;  %v2367_v42 = vmul.f32 %v2099_v3, %v2099_v3  ;;  %v2023_v27 = vrot.slane %v2009_v14, %v4378_v7 }
 0x1bb   : > { %v2189_v10 = vrot.slane %v2175_v16, %v4378_v7  ;;  %v2350_v53 = vmul.f32 %v2008_v49, %v2008_v49  ;;  %v2437_v28 = vcombine.low %v2348_v47, %v2349_v25  ;;  %v2369_v43 = vmul.f32 %v2106_v39, %v2106_v39 }
 0x1bc   : > { %v2260_v51 = vcombine.low %v2107_v15, %v2106_v39  ;;  %v2267_v62 = vrot.slane %v2259_v32, %v4378_v7  ;;  %v2368_v30 = vmul.f32 %v2107_v15, %v2107_v15  ;;  %v2521_v55 = vcombine.low %v2366_v52, %v2367_v42 }
 0x1bd   : > { %v2190_v37 = vcombine.low %v2182_v26, %v2189_v10  ;;  %v2451_v59 = vrot.slane %v2437_v28, %v4378_v7  ;;  %v2024_v33 = vcombine.high %v2016_v4, %v2016_v4  ;;  %v2191_v40 = vcombine.low %v2008_v49, %v2016_v4 }
 0x1be   : > { %v2274_v56 = vrot.slane %v2260_v51, %v4378_v7  ;;  %v2522_v41 = vcombine.low %v2368_v30, %v2369_v43  ;;  %v2529_v31 = vrot.slane %v2521_v55, %v4378_v7  ;;  %v2351_v44 = vmul.f32 %v2016_v4, %v2016_v4 }
 0x1bf   : > { %v2325_v45 = vadd.f32 %v2324_v63, %v2190_v37  ;;  %v2452_v46 = vcombine.low %v2444_v9, %v2451_v59  ;;  %v2192_v48 = vcombine.low %v2024_v33, %v2023_v27  ;;  %v2199_v36 = vrot.slane %v2191_v40, %v4378_v7 }
 0x1c0   : > { %v2275_v54 = vcombine.low %v2267_v62, %v2274_v56  ;;  %v2536_v6 = vrot.slane %v2522_v41, %v4378_v7  ;;  %v2352_v60 = vmul.f32 %v2024_v33, %v2024_v33  ;;  %v2353_v21 = vmul.f32 %v2023_v27, %v2023_v27 }
 0x1c1   : > { %v2547_v26 = vadd.f32 %v2546_v18, %v2452_v46  ;;  %v2206_v38 = vrot.slane %v2192_v48, %v4378_v7  ;;  %v2453_v2 = vcombine.low %v2350_v53, %v2351_v44  ;;  %v3431_v61 = vadd.f32 %v4417_v24, %v4372_v34 }
 0x1c2   : > { %v2964_v63 = vpack.c.bf16 %v2275_v54, %v4442_v13  ;;  %v2537_v8 = vcombine.low %v2529_v31, %v2536_v6  ;;  %v2454_v52 = vcombine.low %v2352_v60, %v2353_v21 }
 0x1c3   : > { %v2207_v58 = vcombine.low %v2199_v36, %v2206_v38  ;;  %v2025_v9 = vcombine.high %v3431_v61, %v3431_v61  ;;  %v2032_v11 = vrot.slane %v3431_v61, %v4378_v7  ;;  %v2461_v17 = vrot.slane %v2453_v2, %v4378_v7 }
 0x1c4   : > { %2968 = vst [vmem:[%s4432_s6 + $0x18] sm:$0xff] %v2964_v63   ;;  %v2468_v0 = vrot.slane %v2454_v52, %v4378_v7 }
 0x1c5   : > { %v2954_v18 = vpack.c.bf16 %v2207_v58, %v2190_v37  ;;  %v2326_v19 = vadd.f32 %v2325_v45, %v2207_v58  ;;  %v2039_v20 = vrot.slane %v2025_v9, %v4378_v7  ;;  %v2040_v22 = vcombine.high %v2032_v11, %v2032_v11 }
 0x1c6   : > { %v2469_v47 = vcombine.low %v2461_v17, %v2468_v0  ;;  %v2354_v57 = vmul.f32 %v2032_v11, %v2032_v11 }
 0x1c7   : > { %2966 = vst [vmem:[%s4432_s6 + $0x8] sm:$0xff] %v2954_v18   ;;  %v2041_v34 = vcombine.high %v2039_v20, %v2039_v20  ;;  %v2208_v24 = vcombine.low %v2032_v11, %v2040_v22  ;;  %v2355_v3 = vmul.f32 %v2040_v22, %v2040_v22  ;;  %v2356_v49 = vmul.f32 %v2039_v20, %v2039_v20 }
 0x1c8   : > { %v2548_v14 = vadd.f32 %v2547_v26, %v2469_v47 }
 0x1c9   : > { %v2209_v4 = vcombine.low %v2039_v20, %v2041_v34  ;;  %v2357_v16 = vmul.f32 %v2041_v34, %v2041_v34  ;;  %v2470_v25 = vcombine.low %v2354_v57, %v2355_v3  ;;  %v2216_v39 = vrot.slane %v2208_v24, %v4378_v7 }
 0x1cb   : > { %v2223_v15 = vrot.slane %v2209_v4, %v4378_v7  ;;  %v2471_v32 = vcombine.low %v2356_v49, %v2357_v16  ;;  %v2478_v27 = vrot.slane %v2470_v25, %v4378_v7 }
 0x1cd   : > { %v2224_v42 = vcombine.low %v2216_v39, %v2223_v15  ;;  %v2485_v10 = vrot.slane %v2471_v32, %v4378_v7 }
 0x1cf   : > { %v2959_v53 = vpack.c.bf16 %v4409_v35, %v2224_v42  ;;  %v2327_v28 = vadd.f32 %v2326_v19, %v2224_v42  ;;  %v2486_v43 = vcombine.low %v2478_v27, %v2485_v10 }
 0x1d1   : > { %2967 = vst [vmem:[%s4432_s6 + $0x10] sm:$0xff] %v2959_v53   ;;  %v2328_v51 = vadd.f32 %v2327_v28, %v4409_v35  ;;  %v2549_v62 = vadd.f32 %v2548_v14, %v2486_v43 }
 0x1d3   : > { %v2329_v30 = vadd.f32 %v2328_v51, %v4442_v13  ;;  %v2550_v55 = vadd.f32 %v2549_v62, %v2503_v29 }
 0x1d5   : > { %v2330_v37 = vadd.f32 %v2329_v30, %v2275_v54  ;;  %v2551_v7 = vadd.f32 %v2550_v55, %v2520_v23 }
 0x1d7   : > { %v2331_v59 = vrot.slane %v2330_v37, 4  ;;  %v2552_v33 = vadd.f32 %v2551_v7, %v2537_v8 }
 0x1d9   : > { %v2332_v40 = vadd.f32 %v2331_v59, %v2330_v37  ;;  %v2553_v56 = vrot.slane %v2552_v33, 4 }
 0x1db   : > { %v2333_v41 = vrot.slane %v2332_v40, 2  ;;  %v2554_v31 = vadd.f32 %v2553_v56, %v2552_v33 }
 0x1dd   : > { %v2334_v35 = vadd.f32 %v2333_v41, %v2332_v40  ;;  %v2555_v44 = vrot.slane %v2554_v31, 2 }
 0x1df   : > { %v2335_v45 = vrot.slane %v2334_v35, 1  ;;  %v2556_v13 = vadd.f32 %v2555_v44, %v2554_v31 }
 0x1e1   : > { %v2336_v50 = vadd.f32 %v2335_v45, %v2334_v35  ;;  %v2557_v5 = vrot.slane %v2556_v13, 1 }
 0x1e3   : > { %2337 = vst [vmem:[%s226_s11] sm:$0x1] %v2336_v50  ;;  %v2558_v29 = vadd.f32 %v2557_v5, %v2556_v13 }
 0x1e5   : > { %2559 = vst [vmem:[%s226_s11 + $0x1] sm:$0x1] %v2558_v29 }
 0x1e6 PF: > { %s14_s14 = sadd.s32 1, %s3717_s14   ;;  %s4503_s12 = smov %s3713_s13 }
 0x1e7   : > { %p11_p5 = scmp.ge.s32.totalorder %s14_s14, 4   ;;  %s4504_s13 = smov %s4506_s15 }
 0x1e9   :  { %13 = sbr.rel (!%p11_p5) target bundleno = 2 (0x2), region = 81 }

// kernel: residual_block.5
= control target key start
LH: loop header
LB: loop body
LE: loop exit
PB: predicated region body
PF: predicated region fallthrough
CT: control target
= control target key end

     0   :  { %s797_s12 = smov 0   ;;  %s799_s13 = smov 0   ;;  %s871_s0 = inlined_call_operand.vmem [shape: bf16[2,1,64,128], index: 0, kind: input, shape index: {}]   ;;  %s872_s1 = inlined_call_operand.vmem [shape: bf16[1,128,128], index: 1, kind: input, shape index: {}]   ;;  %s873_s2 = inlined_call_operand.vmem [shape: bf16[2,64,128], index: 2, kind: output, shape index: {0}]   ;;  %s874_s3 = inlined_call_operand.vmem [shape: f32[2,2,128], index: 3, kind: output, shape index: {1}]  }
   0x1   :  { %s801_s14 = smov 0  }
   0x2 LB: > { %s23_s15 = sadd.s32 1, %s771_s13  ;;  %p604_p0 = scmp.ge.s32.totalorder %s775_s14, 1  ;;  %s775_s14 = sphi %s801_s14, %s14_s14   ;;  %s771_s13 = sphi %s799_s13, %s876_s13   ;;  %s767_s12 = sphi %s797_s12, %s875_s12  }
   0x3   : > { %p24_p1 = scmp.ge.s32.totalorder %s23_s15, 2  ;;  %p165_p2 = scmp.lt.s32.totalorder %s775_s14, 3 }
   0x5   : > { %s878_s15 = smov (%p24_p1, %s23_s15), 0  ;;  %p166_p3 = pnand %p604_p0, %p165_p2 }
   0x6   : > { %v741_v0 = vld [vmem:[%s872_s1] sm:$0xff] (!%p166_p3)   ;;  %p203_p4 = scmp.lt.s32.totalorder (!%p166_p3), %s767_s12, 1  ;;  %v742_v1 = vld [vmem:[%s872_s1 + $0x8] sm:$0xff] (!%p166_p3)   ;;  %v743_v2 = vld [vmem:[%s872_s1 + $0x10] sm:$0xff] (!%p166_p3)  }
   0x7   : > { %169 = sbr.rel (%p166_p3) target bundleno = 283 (0x11b), region = 28  ;;  %677 = vmatprep.subr.bf16.mxu0 (!%p166_p3), %v741_v0  ;;  %701 = vmatprep.subr.bf16.mxu1 (!%p166_p3), %v741_v0  ;;  %v744_v3 = vld [vmem:[%s872_s1 + $0x18] sm:$0xff] (!%p166_p3)   ;;  %v745_v6 = vld [vmem:[%s872_s1 + $0x20] sm:$0xff] (!%p166_p3)   ;;  %v746_v7 = vld [vmem:[%s872_s1 + $0x28] sm:$0xff] (!%p166_p3)  }
   0x8   : > { %678 = vmatpush3.bf16.msra.mxu0 (!%p166_p3), %v741_v0  ;;  %709 = vmatpush3.bf16.msra.mxu1 (!%p166_p3), %v741_v0  ;;  %v747_v8 = vld [vmem:[%s872_s1 + $0x30] sm:$0xff] (!%p166_p3)   ;;  %v748_v9 = vld [vmem:[%s872_s1 + $0x38] sm:$0xff] (!%p166_p3)  }
   0x9   : > { %679 = vmatprep.subr.bf16.mxu0 (!%p166_p3), %v742_v1  ;;  %702 = vmatprep.subr.bf16.mxu1 (!%p166_p3), %v742_v1 }
   0xc   : > { %680 = vmatpush3.bf16.msra.mxu0 (!%p166_p3), %v742_v1  ;;  %710 = vmatpush3.bf16.msra.mxu1 (!%p166_p3), %v742_v1 }
   0xd   : > { %681 = vmatprep.subr.bf16.mxu0 (!%p166_p3), %v743_v2  ;;  %703 = vmatprep.subr.bf16.mxu1 (!%p166_p3), %v743_v2 }
   0xe   : > { %s880_s12 = smov (!%p203_p4, %s767_s12), 1 }
   0xf   : > { %s632_s22 = sshll.u32 %s880_s12, 5  ;;  %s609_s16 = sshll.u32 %s880_s12, 1 }
  0x10   : > { %s832_s25 = scalar_lea.vmem %s871_s0, %s632_s22  ;;  %682 = vmatpush3.bf16.msra.mxu0 %v743_v2  ;;  %711 = vmatpush3.bf16.msra.mxu1 %v743_v2  ;;  %s219_s11 = scalar_lea.vmem %s873_s2, %s632_s22 }
  0x11   : > { %v749_v4 = vld [vmem:[%s832_s25] sm:$0xff]   ;;  %v751_v5 = vld [vmem:[%s832_s25 + $0x10] sm:$0xff]   ;;  %683 = vmatprep.subr.bf16.mxu0 %v744_v3  ;;  %704 = vmatprep.subr.bf16.mxu1 %v744_v3  ;;  %v750_v10 = vld [vmem:[%s832_s25 + $0x8] sm:$0xff]   ;;  %s226_s19 = scalar_lea.vmem %s874_s3, %s609_s16 }
  0x12   : > { %693 = vmatprep.mubr.bf16.mxu0 %v749_v4  ;;  %697 = vmatprep.mubr.bf16.mxu1 %v751_v5  ;;  %v752_v11 = vld [vmem:[%s832_s25 + $0x18] sm:$0xff]  }
  0x14   : > { %684 = vmatpush3.bf16.msra.mxu0 %v744_v3  ;;  %712 = vmatpush3.bf16.msra.mxu1 %v744_v3 }
  0x15   : > { %685 = vmatprep.subr.bf16.mxu0 %v745_v6  ;;  %705 = vmatprep.subr.bf16.mxu1 %v745_v6 }
  0x18   : > { %686 = vmatpush3.bf16.msra.mxu0 %v745_v6  ;;  %713 = vmatpush3.bf16.msra.mxu1 %v745_v6 }
  0x19   : > { %687 = vmatprep.subr.bf16.mxu0 %v746_v7  ;;  %706 = vmatprep.subr.bf16.mxu1 %v746_v7 }
  0x1c   : > { %688 = vmatpush3.bf16.msra.mxu0 %v746_v7  ;;  %714 = vmatpush3.bf16.msra.mxu1 %v746_v7 }
  0x1d   : > { %689 = vmatprep.subr.bf16.mxu0 %v747_v8  ;;  %707 = vmatprep.subr.bf16.mxu1 %v747_v8 }
  0x20   : > { %690 = vmatpush3.bf16.msra.mxu0 %v747_v8  ;;  %715 = vmatpush3.bf16.msra.mxu1 %v747_v8 }
  0x21   : > { %691 = vmatprep.subr.bf16.mxu0 %v748_v9  ;;  %708 = vmatprep.subr.bf16.mxu1 %v748_v9 }
  0x24   : > { %692 = vmatpush3.bf16.msra.mxu0 %v748_v9  ;;  %716 = vmatpush3.bf16.msra.mxu1 %v748_v9 }
  0x27   : > { %694 = vmatmul.mubr.bf16.vlgmr.msra.gmra.mrb[0].mxu0 %v750_v10  ;;  %698 = vmatmul.mubr.bf16.vlgmr.msra.gmra.mrb[0].mxu1 %v752_v11 }
  0xfa   : > { %v695_v12 = vpop.f32.mrb[0].mxu0  ;;  %v699_v13 = vpop.f32.mrb[0].mxu1 }
  0xfb   : > { %v358_v14 = vpop.f32.mrb[1].mxu0  ;;  %v374_v15 = vpop.f32.mrb[1].mxu1  ;;  %v445_v27 = vmul.f32 %v695_v12, %v695_v12  ;;  %v449_v39 = vmul.f32 %v699_v13, %v699_v13 }
  0xfc   : > { %v696_v16 = vpop.f32.mrb[2].mxu0  ;;  %v700_v17 = vpop.f32.mrb[2].mxu1  ;;  %v443_v18 = vmul.f32 %v358_v14, %v358_v14  ;;  %v447_v33 = vmul.f32 %v374_v15, %v374_v15 }
  0xfd   : > { %v650_v19 = vpack.c.bf16 %v696_v16, %v695_v12  ;;  %v361_v20 = vpop.f32.mrb[3].mxu0  ;;  %v660_v21 = vpack.c.bf16 %v700_v17, %v699_v13  ;;  %v377_v22 = vpop.f32.mrb[3].mxu1  ;;  %v446_v30 = vmul.f32 %v696_v16, %v696_v16  ;;  %v450_v42 = vmul.f32 %v700_v17, %v700_v17 }
  0xfe   : > { %v645_v23 = vpack.c.bf16 %v361_v20, %v358_v14  ;;  %v429_v24 = vadd.f32 %v361_v20, %v358_v14  ;;  %v444_v25 = vmul.f32 %v361_v20, %v361_v20  ;;  %v655_v26 = vpack.c.bf16 %v377_v22, %v374_v15 }
  0xff   : > { %662 = vst [vmem:[%s219_s11 + $0x8] sm:$0xff] %v650_v19   ;;  %664 = vst [vmem:[%s219_s11 + $0x18] sm:$0xff] %v660_v21   ;;  %v448_v38 = vmul.f32 %v377_v22, %v377_v22 }
 0x100   : > { %646 = vst [vmem:[%s219_s11] sm:$0xff] %v645_v23   ;;  %v430_v28 = vadd.f32 %v695_v12, %v429_v24  ;;  %v451_v29 = vadd.f32 %v444_v25, %v443_v18  ;;  %663 = vst [vmem:[%s219_s11 + $0x10] sm:$0xff] %v655_v26  }
 0x102   : > { %v452_v31 = vadd.f32 %v451_v29, %v445_v27  ;;  %v431_v32 = vadd.f32 %v696_v16, %v430_v28 }
 0x104   : > { %v432_v34 = vadd.f32 %v431_v32, %v374_v15  ;;  %v453_v35 = vadd.f32 %v452_v31, %v446_v30 }
 0x106   : > { %v454_v36 = vadd.f32 %v453_v35, %v447_v33  ;;  %v433_v37 = vadd.f32 %v432_v34, %v377_v22 }
 0x108   : > { %v434_v40 = vadd.f32 %v699_v13, %v433_v37  ;;  %v455_v41 = vadd.f32 %v454_v36, %v448_v38 }
 0x10a   : > { %v435_v43 = vadd.f32 %v700_v17, %v434_v40  ;;  %v456_v44 = vadd.f32 %v455_v41, %v449_v39 }
 0x10c   : > { %v436_v45 = vrot.slane %v435_v43, 4  ;;  %v457_v46 = vadd.f32 %v456_v44, %v450_v42 }
 0x10e   : > { %v437_v47 = vadd.f32 %v436_v45, %v435_v43  ;;  %v458_v48 = vrot.slane %v457_v46, 4 }
 0x110   : > { %v438_v49 = vrot.slane %v437_v47, 2  ;;  %v459_v50 = vadd.f32 %v458_v48, %v457_v46 }
 0x112   : > { %v439_v51 = vadd.f32 %v438_v49, %v437_v47  ;;  %v460_v52 = vrot.slane %v459_v50, 2 }
 0x114   : > { %v440_v53 = vrot.slane %v439_v51, 1  ;;  %v461_v54 = vadd.f32 %v460_v52, %v459_v50 }
 0x116   : > { %v441_v55 = vadd.f32 %v440_v53, %v439_v51  ;;  %v462_v56 = vrot.slane %v461_v54, 1 }
 0x118   : > { %442 = vst [vmem:[%s226_s19] sm:$0x1] %v441_v55  ;;  %v463_v57 = vadd.f32 %v462_v56, %v461_v54 }
 0x11a   : > { %464 = vst [vmem:[%s226_s19 + $0x1] sm:$0x1] %v463_v57 }
 0x11b PF: > { %s14_s14 = sadd.s32 1, %s775_s14   ;;  %s875_s12 = smov %s771_s13 }
 0x11c   : > { %p11_p5 = scmp.ge.s32.totalorder %s14_s14, 4   ;;  %s876_s13 = smov %s878_s15 }
 0x11e   :  { %13 = sbr.rel (!%p11_p5) target bundleno = 2 (0x2), region = 73 }

// kernel: residual_block.7
= control target key start
LH: loop header
LB: loop body
LE: loop exit
PB: predicated region body
PF: predicated region fallthrough
CT: control target
= control target key end

     0   :  { %s528_s0 = inlined_call_operand.vmem [shape: bf16[128,128], index: 0, kind: input, shape index: {}]   ;;  %s529_s1 = inlined_call_operand.vmem [shape: f32[1,128], index: 1, kind: input, shape index: {}]   ;;  %s530_s2 = inlined_call_operand.vmem [shape: f32[1,128], index: 2, kind: input, shape index: {}]   ;;  %s531_s3 = inlined_call_operand.vmem [shape: bf16[128,128], index: 3, kind: input, shape index: {}]   ;;  %s532_s4 = inlined_call_operand.vmem [shape: f32[1,128], index: 4, kind: input, shape index: {}]   ;;  %s533_s5 = inlined_call_operand.vmem [shape: f32[1,128], index: 5, kind: input, shape index: {}]   ;;  %s534_s6 = inlined_call_operand.vmem [shape: f32[128,128], index: 6, kind: output, shape index: {}]  }
   0x1   :  { %v236_v0 = vld [vmem:[%s528_s0] sm:$0xff]   ;;  %v299_v9 = vld [vmem:[%s528_s0 + $0x8] sm:$0xff]   ;;  %v300_v20 = vld [vmem:[%s528_s0 + $0x10] sm:$0xff]  }
   0x2   :  { %v354_v1 = vld [vmem:[%s529_s1] ss:$0 sm:$0xff]  ;;  %v237_v2 = vunpack.c.l.bf16 %v236_v0  ;;  %v238_v5 = vunpack.c.h.bf16 %v236_v0  ;;  %v306_v10 = vld [vmem:[%s531_s3 + $0x8] sm:$0xff]   ;;  %v241_v14 = vunpack.c.l.bf16 %v299_v9  ;;  %v242_v18 = vunpack.c.h.bf16 %v299_v9  ;;  %v307_v21 = vld [vmem:[%s531_s3 + $0x10] sm:$0xff]  }
   0x3   :  { %v268_v3 = vld [vmem:[%s531_s3] sm:$0xff]   ;;  %v273_v15 = vunpack.c.l.bf16 %v306_v10  ;;  %v274_v19 = vunpack.c.h.bf16 %v306_v10  ;;  %v245_v32 = vunpack.c.l.bf16 %v300_v20  ;;  %v277_v33 = vunpack.c.l.bf16 %v307_v21  ;;  %v301_v42 = vld [vmem:[%s528_s0 + $0x18] sm:$0xff]  }
   0x4   :  { %v362_v4 = vld [vmem:[%s532_s4] ss:$0 sm:$0xff]  ;;  %v269_v7 = vunpack.c.l.bf16 %v268_v3  ;;  %v270_v8 = vunpack.c.h.bf16 %v268_v3  ;;  %v62_v11 = vmul.f32 %v237_v2, %v354_v1  ;;  %v63_v13 = vmul.f32 %v238_v5, %v354_v1  ;;  %v308_v43 = vld [vmem:[%s531_s3 + $0x18] sm:$0xff]  }
   0x5   :  { %v367_v6 = vld [vmem:[%s530_s2] ss:$0 sm:$0xff]  ;;  %v64_v24 = vmul.f32 %v241_v14, %v354_v1  ;;  %v142_v25 = vmul.f32 %v273_v15, %v362_v4  ;;  %v65_v28 = vmul.f32 %v242_v18, %v354_v1  ;;  %v143_v29 = vmul.f32 %v274_v19, %v362_v4  ;;  %v303_v14 = vld [vmem:[%s528_s0 + $0x28] sm:$0xff]  }
   0x6   :  { %v379_v12 = vld [vmem:[%s533_s5] ss:$0 sm:$0xff]  ;;  %v140_v16 = vmul.f32 %v269_v7, %v362_v4  ;;  %v141_v17 = vmul.f32 %v270_v8, %v362_v4  ;;  %v85_v22 = vadd.f32 %v367_v6, %v62_v11  ;;  %v86_v23 = vadd.f32 %v367_v6, %v63_v13  ;;  %v310_v19 = vld [vmem:[%s531_s3 + $0x28] sm:$0xff]  }
   0x7   :  { %v87_v30 = vadd.f32 %v367_v6, %v64_v24  ;;  %v165_v31 = vadd.f32 %v379_v12, %v142_v25  ;;  %v88_v36 = vadd.f32 %v367_v6, %v65_v28  ;;  %v166_v37 = vadd.f32 %v379_v12, %v143_v29  ;;  %v302_v52 = vld [vmem:[%s528_s0 + $0x20] sm:$0xff]  }
   0x8   :  { %v163_v26 = vadd.f32 %v379_v12, %v140_v16  ;;  %v164_v27 = vadd.f32 %v379_v12, %v141_v17  ;;  %v66_v39 = vmul.f32 %v245_v32, %v354_v1  ;;  %v144_v40 = vmul.f32 %v277_v33, %v362_v4  ;;  %v309_v57 = vld [vmem:[%s531_s3 + $0x20] sm:$0xff]   ;;  %v304_v32 = vld [vmem:[%s528_s0 + $0x30] sm:$0xff]  }
   0x9   :  { %v181_v38 = vadd.f32 %v165_v31, %v87_v30  ;;  %v246_v41 = vunpack.c.h.bf16 %v300_v20  ;;  %v182_v46 = vadd.f32 %v166_v37, %v88_v36  ;;  %v278_v47 = vunpack.c.h.bf16 %v307_v21  ;;  %v311_v33 = vld [vmem:[%s531_s3 + $0x30] sm:$0xff]  }
   0xa   :  { %v179_v34 = vadd.f32 %v163_v26, %v85_v22  ;;  %v180_v35 = vadd.f32 %v164_v27, %v86_v23  ;;  %v89_v49 = vadd.f32 %v367_v6, %v66_v39  ;;  %v167_v50 = vadd.f32 %v379_v12, %v144_v40 }
   0xb   :  { %v197_v48 = vmax.f32 %v181_v38, 0.0  ;;  %v67_v51 = vmul.f32 %v246_v41, %v354_v1  ;;  %v198_v53 = vmax.f32 %v182_v46, 0.0  ;;  %v145_v54 = vmul.f32 %v278_v47, %v362_v4  ;;  %v305_v46 = vld [vmem:[%s528_s0 + $0x38] sm:$0xff]  }
   0xc   :  { %v195_v44 = vmax.f32 %v179_v34, 0.0  ;;  %v196_v45 = vmax.f32 %v180_v35, 0.0  ;;  %v249_v55 = vunpack.c.l.bf16 %v301_v42  ;;  %v281_v56 = vunpack.c.l.bf16 %v308_v43 }
   0xd   :  { %213 = vst [vmem:[%s534_s6 + $0x10] sm:$0xff] %v197_v48  ;;  %v183_v58 = vadd.f32 %v167_v50, %v89_v49  ;;  %v90_v59 = vadd.f32 %v367_v6, %v67_v51  ;;  %v250_v60 = vunpack.c.h.bf16 %v301_v42  ;;  %v282_v61 = vunpack.c.h.bf16 %v308_v43  ;;  %214 = vst [vmem:[%s534_s6 + $0x18] sm:$0xff] %v198_v53 }
   0xe   :  { %211 = vst [vmem:[%s534_s6] sm:$0xff] %v195_v44  ;;  %212 = vst [vmem:[%s534_s6 + $0x8] sm:$0xff] %v196_v45  ;;  %v168_v62 = vadd.f32 %v379_v12, %v145_v54  ;;  %v68_v63 = vmul.f32 %v249_v55, %v354_v1  ;;  %v146_v0 = vmul.f32 %v281_v56, %v362_v4  ;;  %v253_v2 = vunpack.c.l.bf16 %v302_v52  ;;  %v312_v55 = vld [vmem:[%s531_s3 + $0x38] sm:$0xff]  }
   0xf   :  { %v199_v3 = vmax.f32 %v183_v58, 0.0  ;;  %v69_v5 = vmul.f32 %v250_v60, %v354_v1  ;;  %v147_v7 = vmul.f32 %v282_v61, %v362_v4  ;;  %v285_v8 = vunpack.c.l.bf16 %v309_v57 }
  0x10   :  { %v184_v9 = vadd.f32 %v168_v62, %v90_v59  ;;  %v91_v10 = vadd.f32 %v367_v6, %v68_v63  ;;  %v169_v11 = vadd.f32 %v379_v12, %v146_v0  ;;  %v70_v13 = vmul.f32 %v253_v2, %v354_v1 }
  0x11   :  { %215 = vst [vmem:[%s534_s6 + $0x20] sm:$0xff] %v199_v3  ;;  %v92_v15 = vadd.f32 %v367_v6, %v69_v5  ;;  %v170_v16 = vadd.f32 %v379_v12, %v147_v7  ;;  %v148_v17 = vmul.f32 %v285_v8, %v362_v4  ;;  %v254_v18 = vunpack.c.h.bf16 %v302_v52 }
  0x12   :  { %v200_v20 = vmax.f32 %v184_v9, 0.0  ;;  %v185_v21 = vadd.f32 %v169_v11, %v91_v10  ;;  %v93_v22 = vadd.f32 %v367_v6, %v70_v13  ;;  %v286_v23 = vunpack.c.h.bf16 %v309_v57 }
  0x13   :  { %v186_v24 = vadd.f32 %v170_v16, %v92_v15  ;;  %v171_v25 = vadd.f32 %v379_v12, %v148_v17  ;;  %v71_v26 = vmul.f32 %v254_v18, %v354_v1  ;;  %v257_v27 = vunpack.c.l.bf16 %v303_v14 }
  0x14   :  { %216 = vst [vmem:[%s534_s6 + $0x28] sm:$0xff] %v200_v20  ;;  %v201_v28 = vmax.f32 %v185_v21, 0.0  ;;  %v149_v29 = vmul.f32 %v286_v23, %v362_v4  ;;  %v289_v30 = vunpack.c.l.bf16 %v310_v19  ;;  %v258_v31 = vunpack.c.h.bf16 %v303_v14 }
  0x15   :  { %v202_v34 = vmax.f32 %v186_v24, 0.0  ;;  %v187_v35 = vadd.f32 %v171_v25, %v93_v22  ;;  %v94_v36 = vadd.f32 %v367_v6, %v71_v26  ;;  %v72_v37 = vmul.f32 %v257_v27, %v354_v1 }
  0x16   :  { %217 = vst [vmem:[%s534_s6 + $0x30] sm:$0xff] %v201_v28  ;;  %v172_v38 = vadd.f32 %v379_v12, %v149_v29  ;;  %v150_v39 = vmul.f32 %v289_v30, %v362_v4  ;;  %v73_v40 = vmul.f32 %v258_v31, %v354_v1  ;;  %v290_v41 = vunpack.c.h.bf16 %v310_v19 }
  0x17   :  { %218 = vst [vmem:[%s534_s6 + $0x38] sm:$0xff] %v202_v34  ;;  %v203_v42 = vmax.f32 %v187_v35, 0.0  ;;  %v95_v43 = vadd.f32 %v367_v6, %v72_v37  ;;  %v261_v44 = vunpack.c.l.bf16 %v304_v32  ;;  %v293_v45 = vunpack.c.l.bf16 %v311_v33 }
  0x18   :  { %v188_v47 = vadd.f32 %v172_v38, %v94_v36  ;;  %v173_v48 = vadd.f32 %v379_v12, %v150_v39  ;;  %v96_v49 = vadd.f32 %v367_v6, %v73_v40  ;;  %v151_v50 = vmul.f32 %v290_v41, %v362_v4 }
  0x19   :  { %219 = vst [vmem:[%s534_s6 + $0x40] sm:$0xff] %v203_v42  ;;  %v74_v51 = vmul.f32 %v261_v44, %v354_v1  ;;  %v152_v52 = vmul.f32 %v293_v45, %v362_v4  ;;  %v262_v53 = vunpack.c.h.bf16 %v304_v32  ;;  %v294_v54 = vunpack.c.h.bf16 %v311_v33 }
  0x1a   :  { %v204_v56 = vmax.f32 %v188_v47, 0.0  ;;  %v189_v57 = vadd.f32 %v173_v48, %v95_v43  ;;  %v174_v58 = vadd.f32 %v379_v12, %v151_v50  ;;  %v265_v59 = vunpack.c.l.bf16 %v305_v46 }
  0x1b   :  { %v97_v60 = vadd.f32 %v367_v6, %v74_v51  ;;  %v175_v61 = vadd.f32 %v379_v12, %v152_v52  ;;  %v75_v62 = vmul.f32 %v262_v53, %v354_v1  ;;  %v153_v63 = vmul.f32 %v294_v54, %v362_v4 }
  0x1c   :  { %220 = vst [vmem:[%s534_s6 + $0x48] sm:$0xff] %v204_v56  ;;  %v205_v0 = vmax.f32 %v189_v57, 0.0  ;;  %v190_v2 = vadd.f32 %v174_v58, %v96_v49  ;;  %v76_v3 = vmul.f32 %v265_v59, %v354_v1  ;;  %v297_v5 = vunpack.c.l.bf16 %v312_v55 }
  0x1d   :  { %v191_v7 = vadd.f32 %v175_v61, %v97_v60  ;;  %v98_v8 = vadd.f32 %v367_v6, %v75_v62  ;;  %v176_v9 = vadd.f32 %v379_v12, %v153_v63  ;;  %v266_v10 = vunpack.c.h.bf16 %v305_v46 }
  0x1e   :  { %221 = vst [vmem:[%s534_s6 + $0x50] sm:$0xff] %v205_v0  ;;  %v206_v11 = vmax.f32 %v190_v2, 0.0  ;;  %v99_v13 = vadd.f32 %v367_v6, %v76_v3  ;;  %v154_v14 = vmul.f32 %v297_v5, %v362_v4  ;;  %v298_v15 = vunpack.c.h.bf16 %v312_v55 }
  0x1f   :  { %v207_v16 = vmax.f32 %v191_v7, 0.0  ;;  %v192_v17 = vadd.f32 %v176_v9, %v98_v8  ;;  %v77_v18 = vmul.f32 %v266_v10, %v354_v1 }
  0x20   :  { %222 = vst [vmem:[%s534_s6 + $0x58] sm:$0xff] %v206_v11  ;;  %v177_v19 = vadd.f32 %v379_v12, %v154_v14  ;;  %v155_v20 = vmul.f32 %v298_v15, %v362_v4 }
  0x21   :  { %223 = vst [vmem:[%s534_s6 + $0x60] sm:$0xff] %v207_v16  ;;  %v208_v21 = vmax.f32 %v192_v17, 0.0  ;;  %v100_v22 = vadd.f32 %v367_v6, %v77_v18 }
  0x22   :  { %v193_v23 = vadd.f32 %v177_v19, %v99_v13  ;;  %v178_v24 = vadd.f32 %v379_v12, %v155_v20 }
  0x23   :  { %224 = vst [vmem:[%s534_s6 + $0x68] sm:$0xff] %v208_v21 }
  0x24   :  { %v209_v1 = vmax.f32 %v193_v23, 0.0  ;;  %v194_v25 = vadd.f32 %v178_v24, %v100_v22 }
  0x26   :  { %225 = vst [vmem:[%s534_s6 + $0x70] sm:$0xff] %v209_v1  ;;  %v210_v4 = vmax.f32 %v194_v25, 0.0 }
  0x28   :  { %226 = vst [vmem:[%s534_s6 + $0x78] sm:$0xff] %v210_v4 }

</bundles_post_ra>
